<compile_context>
chip_gen: v6e
topology: v6e:2x2x1
jax: 0.10.0
libtpu: 0.0.40
codegen_flags: <defaults>
</compile_context>

<pallas_src>
import jax
import jax.numpy as jnp
from jax.experimental import pallas as pl
from jax.experimental.pallas import tpu as pltpu


def _round_up(x, m):
    return ((x + m - 1) // m) * m


# ---------------------------------------------------------------------------
# Fused kernel: num_layers LSTM layers (time recurrence fully unrolled,
# static slices only) + final Linear.  No scratch buffers; all intermediates
# are traced values over lane-aligned (T*Bp, .) slabs.
# ---------------------------------------------------------------------------
def make_fused_kernel(num_layers, T, Bp, Hp):
    def kernel(*refs):
        # refs: x (T*Bp, E), then (w_ih, w_hh, b) per layer, lin_w, lin_b, out
        x_ref = refs[0]
        lw_ref = refs[1 + 3 * num_layers]
        lb_ref = refs[2 + 3 * num_layers]
        out_ref = refs[3 + 3 * num_layers]

        xin = x_ref[...].astype(jnp.bfloat16)                  # (T*Bp, Din)
        for layer in range(num_layers):
            wih_ref, whh_ref, b_ref = refs[1 + 3 * layer: 4 + 3 * layer]

            # Hoisted input->hidden matmul for all timesteps at once; bias
            # (already b_ih + b_hh) broadcast-added once, outside the loop.
            gih = jnp.dot(xin, wih_ref[...],
                          preferred_element_type=jnp.float32) + b_ref[...]
            whh = whh_ref[...]                                  # (Hp, 4Hp) bf16

            h = jnp.zeros((Bp, Hp), jnp.float32)
            c = jnp.zeros((Bp, Hp), jnp.float32)
            h_steps = []
            for t in range(T):          # fully unrolled; T is small (<= ~16)
                g = gih[t * Bp:(t + 1) * Bp, :] + jnp.dot(
                    h.astype(jnp.bfloat16), whh,
                    preferred_element_type=jnp.float32)         # (Bp, 4Hp)
                # Gate layout [i, f, o | g]: one sigmoid over the contiguous
                # 3*Hp region, one tanh over the last Hp lanes.
                sg = jax.nn.sigmoid(g[:, :3 * Hp])
                i_g = sg[:, 0 * Hp:1 * Hp]
                f_g = sg[:, 1 * Hp:2 * Hp]
                o_g = sg[:, 2 * Hp:3 * Hp]
                g_g = jnp.tanh(g[:, 3 * Hp:4 * Hp])
                c = f_g * c + i_g * g_g
                h = o_g * jnp.tanh(c)
                h_steps.append(h)
            # (T*Bp, Hp): sublane-aligned concat (Bp == 8), feeds next layer /
            # final Linear with zero relayout.
            xin = jnp.concatenate(h_steps, axis=0).astype(jnp.bfloat16)

        # Fused final Linear over all padded positions; Vp multiple of 128 so
        # the store is lane-dense (unmasked vst).
        out_ref[...] = (jnp.dot(xin, lw_ref[...],
                                preferred_element_type=jnp.float32)
                        + lb_ref[...])
    return kernel


def fused_lstm_linear(x_flat, lstm_params, lin_w, lin_b, T, Bp, Hp, Vp):
    """x_flat: (T*Bp, E) f32, time-major, batch padded to Bp.
    Returns (T*Bp, Vp) f32 logits for every padded position."""
    flat = []
    for w_ih, w_hh, b in lstm_params:
        flat += [w_ih, w_hh, b]
    kernel = make_fused_kernel(len(lstm_params), T, Bp, Hp)
    n_in = 1 + len(flat) + 2
    return pl.pallas_call(
        kernel,
        out_shape=jax.ShapeDtypeStruct((T * Bp, Vp), jnp.float32),
        in_specs=[pl.BlockSpec(memory_space=pltpu.MemorySpace.VMEM)] * n_in,
        out_specs=pl.BlockSpec(memory_space=pltpu.MemorySpace.VMEM),
    )(x_flat, *flat, lin_w, lin_b)


# ---------------------------------------------------------------------------
# Parameter init: PyTorch-shaped weights, padded/laid out for the kernel.
#   - PyTorch gate order [i, f, g, o] remapped to packed order [i, f, o, g]
#     (contiguous sigmoids); b_ih + b_hh combined.
#   - hidden dim padded H -> Hp (multiple of 128); gate slot p occupies
#     columns [p*Hp, p*Hp + H), zeros elsewhere (padded lanes stay exactly 0).
#   - vocab padded V -> Vp (multiple of 128).
#   - matmul weights stored bf16, biases f32.
# ---------------------------------------------------------------------------
_GATE_POS = (0, 1, 3, 2)   # PyTorch gate index (i,f,g,o) -> packed slot


def _pad_gate_matrix(w, H, Hp, in_dim_pad):
    """w: (4H, in_dim) PyTorch layout -> (in_dim_pad, 4*Hp) bf16."""
    in_dim = w.shape[1]
    out = jnp.zeros((in_dim_pad, 4 * Hp), jnp.float32)
    for k in range(4):
        p = _GATE_POS[k]
        out = out.at[:in_dim, p * Hp:p * Hp + H].set(w[k * H:(k + 1) * H, :].T)
    return out.astype(jnp.bfloat16)


def _pad_gate_bias(b, H, Hp):
    out = jnp.zeros((1, 4 * Hp), jnp.float32)
    for k in range(4):
        p = _GATE_POS[k]
        out = out.at[0, p * Hp:p * Hp + H].set(b[k * H:(k + 1) * H])
    return out


def init_params(key, embedding_size, hidden_size, vocab_size, num_layers):
    E, H, V = embedding_size, hidden_size, vocab_size
    Hp = _round_up(H, 128)
    Vp = _round_up(V, 128)
    keys = jax.random.split(key, 3 + 4 * num_layers)
    scale = 1.0 / (H ** 0.5)

    params = {"E": E, "H": H, "V": V, "Hp": Hp, "Vp": Vp}
    params["embedding"] = 0.1 * jax.random.normal(keys[0], (V, E), jnp.float32)

    lstm = []
    k = 1
    for layer in range(num_layers):
        in_dim = E if layer == 0 else H
        in_pad = E if layer == 0 else Hp
        w_ih = jax.random.uniform(keys[k], (4 * H, in_dim), jnp.float32,
                                  -scale, scale); k += 1
        w_hh = jax.random.uniform(keys[k], (4 * H, H), jnp.float32,
                                  -scale, scale); k += 1
        b_ih = jax.random.uniform(keys[k], (4 * H,), jnp.float32,
                                  -scale, scale); k += 1
        b_hh = jax.random.uniform(keys[k], (4 * H,), jnp.float32,
                                  -scale, scale); k += 1
        lstm.append((_pad_gate_matrix(w_ih, H, Hp, in_pad),
                     _pad_gate_matrix(w_hh, H, Hp, Hp),
                     _pad_gate_bias(b_ih + b_hh, H, Hp)))
    params["lstm"] = lstm

    lin_w = jax.random.uniform(keys[k], (V, H), jnp.float32, -scale, scale)
    lin_b = jax.random.uniform(keys[k + 1], (V,), jnp.float32, -scale, scale)
    params["linear_w"] = (jnp.zeros((Hp, Vp), jnp.float32)
                          .at[:H, :V].set(lin_w.T).astype(jnp.bfloat16))
    params["linear_b"] = jnp.zeros((1, Vp), jnp.float32).at[0, :V].set(lin_b)
    return params


# ---------------------------------------------------------------------------
# Forward = LSTMModel.forward
# ---------------------------------------------------------------------------
def lstm_model_forward(params, input_features, capts, lens):
    """input_features: (B, E) f32; capts: (B, Tcap) int32; lens: python list,
    sorted descending (pack_padded_sequence convention), lens[b] <= Tcap+1."""
    V, Vp, Hp, E = params["V"], params["Vp"], params["Hp"], params["E"]
    B = input_features.shape[0]
    Bp = _round_up(max(B, 1), 8)          # pad batch to the sublane width

    emb = jnp.take(params["embedding"], capts, axis=0)                 # (B, Tcap, E)
    x = jnp.concatenate([input_features[:, None, :], emb], axis=1)     # (B, T, E)
    T = x.shape[1]

    # Wrapper-side layout plumbing: time-major, batch padded to Bp, flattened
    # to a lane/sublane-aligned (T*Bp, E) slab so the kernel never relayouts.
    x = jnp.transpose(x, (1, 0, 2))                                    # (T, B, E)
    x = jnp.pad(x, ((0, 0), (0, Bp - B), (0, 0)))                      # (T, Bp, E)
    x = x.reshape(T * Bp, E)

    out = fused_lstm_linear(x, params["lstm"], params["linear_w"],
                            params["linear_b"], T, Bp, Hp, Vp)         # (T*Bp, Vp)
    out = out.reshape(T, Bp, Vp)

    # pack_padded_sequence data ordering: for t in range(T): every batch b
    # with lens[b] > t, in batch order (lens sorted descending).  Padded batch
    # rows (>= B) are never selected.
    # TODO(synk): for an inference decoder, replace this static-lens gather
    # with a max-T padded index/mask array to avoid retracing per lens.
    t_idx, b_idx = [], []
    for t in range(T):
        for b in range(len(lens)):
            if lens[b] > t:
                t_idx.append(t)
                b_idx.append(b)
    packed = out[jnp.asarray(t_idx), jnp.asarray(b_idx)]               # (sum(lens), Vp)
    return packed[:, :V]                                               # (sum(lens), V)


if __name__ == "__main__":
    B, T_cap = 2, 8
    embedding_size = 32
    hidden_size = 32
    vocab_size = 64
    num_layers = 2

    key = jax.random.PRNGKey(0)
    k_param, k_feat, k_cap = jax.random.split(key, 3)

    params = init_params(k_param, embedding_size, hidden_size,
                         vocab_size, num_layers)

    input_features = jax.random.normal(k_feat, (B, embedding_size), jnp.float32)
    capts = jax.random.randint(k_cap, (B, T_cap), 0, vocab_size, jnp.int32)
    lens = [T_cap + 1, T_cap - 1]   # sorted descending, <= T_cap + 1

    out = lstm_model_forward(params, input_features, capts, lens)
    out = jax.block_until_ready(out)
    assert out.shape == (sum(lens), vocab_size), out.shape
    assert out.dtype == jnp.float32
    print("KERNEL_OK")
</pallas_src>

<mosaic_0001>
module attributes {stable_mosaic.version = 11 : i64} {
  func.func @kernel(%arg0: memref<72x32xf32, #tpu.memory_space<vmem>>, %arg1: memref<32x512xbf16, #tpu.memory_space<vmem>>, %arg2: memref<128x512xbf16, #tpu.memory_space<vmem>>, %arg3: memref<1x512xf32, #tpu.memory_space<vmem>>, %arg4: memref<128x512xbf16, #tpu.memory_space<vmem>>, %arg5: memref<128x512xbf16, #tpu.memory_space<vmem>>, %arg6: memref<1x512xf32, #tpu.memory_space<vmem>>, %arg7: memref<128x128xbf16, #tpu.memory_space<vmem>>, %arg8: memref<1x128xf32, #tpu.memory_space<vmem>>, %arg9: memref<72x128xf32, #tpu.memory_space<vmem>>) attributes {dimension_semantics = [], scalar_prefetch = 0 : i64, scratch_operands = 0 : i64, tpu.core_type = #tpu.core_type<tc>} {
    %c0 = arith.constant 0 : index
    %c0_0 = arith.constant 0 : index
    %0 = vector.load %arg0[%c0, %c0_0] : memref<72x32xf32, #tpu.memory_space<vmem>>, vector<72x32xf32>
    %1 = arith.truncf %0 : vector<72x32xf32> to vector<72x32xbf16>
    %c0_1 = arith.constant 0 : index
    %c0_2 = arith.constant 0 : index
    %2 = vector.load %arg1[%c0_1, %c0_2] : memref<32x512xbf16, #tpu.memory_space<vmem>>, vector<32x512xbf16>
    %cst = arith.constant dense<0.000000e+00> : vector<72x512xf32>
    %3 = tpu.matmul %1, %2, %cst {dimension_numbers = #tpu.dot_dimension_numbers<[1], [0], [0], [1], [0, 0, 1, 1], [], []>} : vector<72x32xbf16>, vector<32x512xbf16>, vector<72x512xf32> -> vector<72x512xf32>
    %c0_3 = arith.constant 0 : index
    %c0_4 = arith.constant 0 : index
    %4 = vector.load %arg3[%c0_3, %c0_4] : memref<1x512xf32, #tpu.memory_space<vmem>>, vector<1x512xf32>
    %5 = vector.broadcast %4 : vector<1x512xf32> to vector<72x512xf32>
    %6 = arith.addf %3, %5 : vector<72x512xf32>
    %c0_5 = arith.constant 0 : index
    %c0_6 = arith.constant 0 : index
    %7 = vector.load %arg2[%c0_5, %c0_6] : memref<128x512xbf16, #tpu.memory_space<vmem>>, vector<128x512xbf16>
    %cst_7 = arith.constant 0.000000e+00 : f32
    %8 = vector.broadcast %cst_7 : f32 to vector<8x128xf32>
    %cst_8 = arith.constant 0.000000e+00 : f32
    %9 = vector.broadcast %cst_8 : f32 to vector<8x128xf32>
    %10 = vector.extract_strided_slice %6 {offsets = [0, 0], sizes = [8, 512], strides = [1, 1]} : vector<72x512xf32> to vector<8x512xf32>
    %11 = arith.truncf %8 : vector<8x128xf32> to vector<8x128xbf16>
    %cst_9 = arith.constant dense<0.000000e+00> : vector<8x512xf32>
    %12 = tpu.matmul %11, %7, %cst_9 {dimension_numbers = #tpu.dot_dimension_numbers<[1], [0], [0], [1], [0, 0, 1, 1], [], []>} : vector<8x128xbf16>, vector<128x512xbf16>, vector<8x512xf32> -> vector<8x512xf32>
    %13 = arith.addf %10, %12 : vector<8x512xf32>
    %14 = vector.extract_strided_slice %13 {offsets = [0, 0], sizes = [8, 384], strides = [1, 1]} : vector<8x512xf32> to vector<8x384xf32>
    %15 = arith.negf %14 : vector<8x384xf32>
    %16 = math.exp %15 : vector<8x384xf32>
    %cst_10 = arith.constant 1.000000e+00 : f32
    %17 = vector.broadcast %cst_10 : f32 to vector<8x384xf32>
    %18 = arith.addf %17, %16 : vector<8x384xf32>
    %19 = arith.divf %17, %18 : vector<8x384xf32>
    %20 = vector.extract_strided_slice %19 {offsets = [0, 0], sizes = [8, 128], strides = [1, 1]} : vector<8x384xf32> to vector<8x128xf32>
    %21 = vector.extract_strided_slice %19 {offsets = [0, 128], sizes = [8, 128], strides = [1, 1]} : vector<8x384xf32> to vector<8x128xf32>
    %22 = vector.extract_strided_slice %19 {offsets = [0, 256], sizes = [8, 128], strides = [1, 1]} : vector<8x384xf32> to vector<8x128xf32>
    %23 = vector.extract_strided_slice %13 {offsets = [0, 384], sizes = [8, 128], strides = [1, 1]} : vector<8x512xf32> to vector<8x128xf32>
    %24 = math.tanh %23 : vector<8x128xf32>
    %25 = arith.mulf %21, %9 : vector<8x128xf32>
    %26 = arith.mulf %20, %24 : vector<8x128xf32>
    %27 = arith.addf %25, %26 : vector<8x128xf32>
    %28 = math.tanh %27 : vector<8x128xf32>
    %29 = arith.mulf %22, %28 : vector<8x128xf32>
    %30 = vector.extract_strided_slice %6 {offsets = [8, 0], sizes = [8, 512], strides = [1, 1]} : vector<72x512xf32> to vector<8x512xf32>
    %31 = arith.truncf %29 : vector<8x128xf32> to vector<8x128xbf16>
    %cst_11 = arith.constant dense<0.000000e+00> : vector<8x512xf32>
    %32 = tpu.matmul %31, %7, %cst_11 {dimension_numbers = #tpu.dot_dimension_numbers<[1], [0], [0], [1], [0, 0, 1, 1], [], []>} : vector<8x128xbf16>, vector<128x512xbf16>, vector<8x512xf32> -> vector<8x512xf32>
    %33 = arith.addf %30, %32 : vector<8x512xf32>
    %34 = vector.extract_strided_slice %33 {offsets = [0, 0], sizes = [8, 384], strides = [1, 1]} : vector<8x512xf32> to vector<8x384xf32>
    %35 = arith.negf %34 : vector<8x384xf32>
    %36 = math.exp %35 : vector<8x384xf32>
    %cst_12 = arith.constant 1.000000e+00 : f32
    %37 = vector.broadcast %cst_12 : f32 to vector<8x384xf32>
    %38 = arith.addf %37, %36 : vector<8x384xf32>
    %39 = arith.divf %37, %38 : vector<8x384xf32>
    %40 = vector.extract_strided_slice %39 {offsets = [0, 0], sizes = [8, 128], strides = [1, 1]} : vector<8x384xf32> to vector<8x128xf32>
    %41 = vector.extract_strided_slice %39 {offsets = [0, 128], sizes = [8, 128], strides = [1, 1]} : vector<8x384xf32> to vector<8x128xf32>
    %42 = vector.extract_strided_slice %39 {offsets = [0, 256], sizes = [8, 128], strides = [1, 1]} : vector<8x384xf32> to vector<8x128xf32>
    %43 = vector.extract_strided_slice %33 {offsets = [0, 384], sizes = [8, 128], strides = [1, 1]} : vector<8x512xf32> to vector<8x128xf32>
    %44 = math.tanh %43 : vector<8x128xf32>
    %45 = arith.mulf %41, %27 : vector<8x128xf32>
    %46 = arith.mulf %40, %44 : vector<8x128xf32>
    %47 = arith.addf %45, %46 : vector<8x128xf32>
    %48 = math.tanh %47 : vector<8x128xf32>
    %49 = arith.mulf %42, %48 : vector<8x128xf32>
    %50 = vector.extract_strided_slice %6 {offsets = [16, 0], sizes = [8, 512], strides = [1, 1]} : vector<72x512xf32> to vector<8x512xf32>
    %51 = arith.truncf %49 : vector<8x128xf32> to vector<8x128xbf16>
    %cst_13 = arith.constant dense<0.000000e+00> : vector<8x512xf32>
    %52 = tpu.matmul %51, %7, %cst_13 {dimension_numbers = #tpu.dot_dimension_numbers<[1], [0], [0], [1], [0, 0, 1, 1], [], []>} : vector<8x128xbf16>, vector<128x512xbf16>, vector<8x512xf32> -> vector<8x512xf32>
    %53 = arith.addf %50, %52 : vector<8x512xf32>
    %54 = vector.extract_strided_slice %53 {offsets = [0, 0], sizes = [8, 384], strides = [1, 1]} : vector<8x512xf32> to vector<8x384xf32>
    %55 = arith.negf %54 : vector<8x384xf32>
    %56 = math.exp %55 : vector<8x384xf32>
    %cst_14 = arith.constant 1.000000e+00 : f32
    %57 = vector.broadcast %cst_14 : f32 to vector<8x384xf32>
    %58 = arith.addf %57, %56 : vector<8x384xf32>
    %59 = arith.divf %57, %58 : vector<8x384xf32>
    %60 = vector.extract_strided_slice %59 {offsets = [0, 0], sizes = [8, 128], strides = [1, 1]} : vector<8x384xf32> to vector<8x128xf32>
    %61 = vector.extract_strided_slice %59 {offsets = [0, 128], sizes = [8, 128], strides = [1, 1]} : vector<8x384xf32> to vector<8x128xf32>
    %62 = vector.extract_strided_slice %59 {offsets = [0, 256], sizes = [8, 128], strides = [1, 1]} : vector<8x384xf32> to vector<8x128xf32>
    %63 = vector.extract_strided_slice %53 {offsets = [0, 384], sizes = [8, 128], strides = [1, 1]} : vector<8x512xf32> to vector<8x128xf32>
    %64 = math.tanh %63 : vector<8x128xf32>
    %65 = arith.mulf %61, %47 : vector<8x128xf32>
    %66 = arith.mulf %60, %64 : vector<8x128xf32>
    %67 = arith.addf %65, %66 : vector<8x128xf32>
    %68 = math.tanh %67 : vector<8x128xf32>
    %69 = arith.mulf %62, %68 : vector<8x128xf32>
    %70 = vector.extract_strided_slice %6 {offsets = [24, 0], sizes = [8, 512], strides = [1, 1]} : vector<72x512xf32> to vector<8x512xf32>
    %71 = arith.truncf %69 : vector<8x128xf32> to vector<8x128xbf16>
    %cst_15 = arith.constant dense<0.000000e+00> : vector<8x512xf32>
    %72 = tpu.matmul %71, %7, %cst_15 {dimension_numbers = #tpu.dot_dimension_numbers<[1], [0], [0], [1], [0, 0, 1, 1], [], []>} : vector<8x128xbf16>, vector<128x512xbf16>, vector<8x512xf32> -> vector<8x512xf32>
    %73 = arith.addf %70, %72 : vector<8x512xf32>
    %74 = vector.extract_strided_slice %73 {offsets = [0, 0], sizes = [8, 384], strides = [1, 1]} : vector<8x512xf32> to vector<8x384xf32>
    %75 = arith.negf %74 : vector<8x384xf32>
    %76 = math.exp %75 : vector<8x384xf32>
    %cst_16 = arith.constant 1.000000e+00 : f32
    %77 = vector.broadcast %cst_16 : f32 to vector<8x384xf32>
    %78 = arith.addf %77, %76 : vector<8x384xf32>
    %79 = arith.divf %77, %78 : vector<8x384xf32>
    %80 = vector.extract_strided_slice %79 {offsets = [0, 0], sizes = [8, 128], strides = [1, 1]} : vector<8x384xf32> to vector<8x128xf32>
    %81 = vector.extract_strided_slice %79 {offsets = [0, 128], sizes = [8, 128], strides = [1, 1]} : vector<8x384xf32> to vector<8x128xf32>
    %82 = vector.extract_strided_slice %79 {offsets = [0, 256], sizes = [8, 128], strides = [1, 1]} : vector<8x384xf32> to vector<8x128xf32>
    %83 = vector.extract_strided_slice %73 {offsets = [0, 384], sizes = [8, 128], strides = [1, 1]} : vector<8x512xf32> to vector<8x128xf32>
    %84 = math.tanh %83 : vector<8x128xf32>
    %85 = arith.mulf %81, %67 : vector<8x128xf32>
    %86 = arith.mulf %80, %84 : vector<8x128xf32>
    %87 = arith.addf %85, %86 : vector<8x128xf32>
    %88 = math.tanh %87 : vector<8x128xf32>
    %89 = arith.mulf %82, %88 : vector<8x128xf32>
    %90 = vector.extract_strided_slice %6 {offsets = [32, 0], sizes = [8, 512], strides = [1, 1]} : vector<72x512xf32> to vector<8x512xf32>
    %91 = arith.truncf %89 : vector<8x128xf32> to vector<8x128xbf16>
    %cst_17 = arith.constant dense<0.000000e+00> : vector<8x512xf32>
    %92 = tpu.matmul %91, %7, %cst_17 {dimension_numbers = #tpu.dot_dimension_numbers<[1], [0], [0], [1], [0, 0, 1, 1], [], []>} : vector<8x128xbf16>, vector<128x512xbf16>, vector<8x512xf32> -> vector<8x512xf32>
    %93 = arith.addf %90, %92 : vector<8x512xf32>
    %94 = vector.extract_strided_slice %93 {offsets = [0, 0], sizes = [8, 384], strides = [1, 1]} : vector<8x512xf32> to vector<8x384xf32>
    %95 = arith.negf %94 : vector<8x384xf32>
    %96 = math.exp %95 : vector<8x384xf32>
    %cst_18 = arith.constant 1.000000e+00 : f32
    %97 = vector.broadcast %cst_18 : f32 to vector<8x384xf32>
    %98 = arith.addf %97, %96 : vector<8x384xf32>
    %99 = arith.divf %97, %98 : vector<8x384xf32>
    %100 = vector.extract_strided_slice %99 {offsets = [0, 0], sizes = [8, 128], strides = [1, 1]} : vector<8x384xf32> to vector<8x128xf32>
    %101 = vector.extract_strided_slice %99 {offsets = [0, 128], sizes = [8, 128], strides = [1, 1]} : vector<8x384xf32> to vector<8x128xf32>
    %102 = vector.extract_strided_slice %99 {offsets = [0, 256], sizes = [8, 128], strides = [1, 1]} : vector<8x384xf32> to vector<8x128xf32>
    %103 = vector.extract_strided_slice %93 {offsets = [0, 384], sizes = [8, 128], strides = [1, 1]} : vector<8x512xf32> to vector<8x128xf32>
    %104 = math.tanh %103 : vector<8x128xf32>
    %105 = arith.mulf %101, %87 : vector<8x128xf32>
    %106 = arith.mulf %100, %104 : vector<8x128xf32>
    %107 = arith.addf %105, %106 : vector<8x128xf32>
    %108 = math.tanh %107 : vector<8x128xf32>
    %109 = arith.mulf %102, %108 : vector<8x128xf32>
    %110 = vector.extract_strided_slice %6 {offsets = [40, 0], sizes = [8, 512], strides = [1, 1]} : vector<72x512xf32> to vector<8x512xf32>
    %111 = arith.truncf %109 : vector<8x128xf32> to vector<8x128xbf16>
    %cst_19 = arith.constant dense<0.000000e+00> : vector<8x512xf32>
    %112 = tpu.matmul %111, %7, %cst_19 {dimension_numbers = #tpu.dot_dimension_numbers<[1], [0], [0], [1], [0, 0, 1, 1], [], []>} : vector<8x128xbf16>, vector<128x512xbf16>, vector<8x512xf32> -> vector<8x512xf32>
    %113 = arith.addf %110, %112 : vector<8x512xf32>
    %114 = vector.extract_strided_slice %113 {offsets = [0, 0], sizes = [8, 384], strides = [1, 1]} : vector<8x512xf32> to vector<8x384xf32>
    %115 = arith.negf %114 : vector<8x384xf32>
    %116 = math.exp %115 : vector<8x384xf32>
    %cst_20 = arith.constant 1.000000e+00 : f32
    %117 = vector.broadcast %cst_20 : f32 to vector<8x384xf32>
    %118 = arith.addf %117, %116 : vector<8x384xf32>
    %119 = arith.divf %117, %118 : vector<8x384xf32>
    %120 = vector.extract_strided_slice %119 {offsets = [0, 0], sizes = [8, 128], strides = [1, 1]} : vector<8x384xf32> to vector<8x128xf32>
    %121 = vector.extract_strided_slice %119 {offsets = [0, 128], sizes = [8, 128], strides = [1, 1]} : vector<8x384xf32> to vector<8x128xf32>
    %122 = vector.extract_strided_slice %119 {offsets = [0, 256], sizes = [8, 128], strides = [1, 1]} : vector<8x384xf32> to vector<8x128xf32>
    %123 = vector.extract_strided_slice %113 {offsets = [0, 384], sizes = [8, 128], strides = [1, 1]} : vector<8x512xf32> to vector<8x128xf32>
    %124 = math.tanh %123 : vector<8x128xf32>
    %125 = arith.mulf %121, %107 : vector<8x128xf32>
    %126 = arith.mulf %120, %124 : vector<8x128xf32>
    %127 = arith.addf %125, %126 : vector<8x128xf32>
    %128 = math.tanh %127 : vector<8x128xf32>
    %129 = arith.mulf %122, %128 : vector<8x128xf32>
    %130 = vector.extract_strided_slice %6 {offsets = [48, 0], sizes = [8, 512], strides = [1, 1]} : vector<72x512xf32> to vector<8x512xf32>
    %131 = arith.truncf %129 : vector<8x128xf32> to vector<8x128xbf16>
    %cst_21 = arith.constant dense<0.000000e+00> : vector<8x512xf32>
    %132 = tpu.matmul %131, %7, %cst_21 {dimension_numbers = #tpu.dot_dimension_numbers<[1], [0], [0], [1], [0, 0, 1, 1], [], []>} : vector<8x128xbf16>, vector<128x512xbf16>, vector<8x512xf32> -> vector<8x512xf32>
    %133 = arith.addf %130, %132 : vector<8x512xf32>
    %134 = vector.extract_strided_slice %133 {offsets = [0, 0], sizes = [8, 384], strides = [1, 1]} : vector<8x512xf32> to vector<8x384xf32>
    %135 = arith.negf %134 : vector<8x384xf32>
    %136 = math.exp %135 : vector<8x384xf32>
    %cst_22 = arith.constant 1.000000e+00 : f32
    %137 = vector.broadcast %cst_22 : f32 to vector<8x384xf32>
    %138 = arith.addf %137, %136 : vector<8x384xf32>
    %139 = arith.divf %137, %138 : vector<8x384xf32>
    %140 = vector.extract_strided_slice %139 {offsets = [0, 0], sizes = [8, 128], strides = [1, 1]} : vector<8x384xf32> to vector<8x128xf32>
    %141 = vector.extract_strided_slice %139 {offsets = [0, 128], sizes = [8, 128], strides = [1, 1]} : vector<8x384xf32> to vector<8x128xf32>
    %142 = vector.extract_strided_slice %139 {offsets = [0, 256], sizes = [8, 128], strides = [1, 1]} : vector<8x384xf32> to vector<8x128xf32>
    %143 = vector.extract_strided_slice %133 {offsets = [0, 384], sizes = [8, 128], strides = [1, 1]} : vector<8x512xf32> to vector<8x128xf32>
    %144 = math.tanh %143 : vector<8x128xf32>
    %145 = arith.mulf %141, %127 : vector<8x128xf32>
    %146 = arith.mulf %140, %144 : vector<8x128xf32>
    %147 = arith.addf %145, %146 : vector<8x128xf32>
    %148 = math.tanh %147 : vector<8x128xf32>
    %149 = arith.mulf %142, %148 : vector<8x128xf32>
    %150 = vector.extract_strided_slice %6 {offsets = [56, 0], sizes = [8, 512], strides = [1, 1]} : vector<72x512xf32> to vector<8x512xf32>
    %151 = arith.truncf %149 : vector<8x128xf32> to vector<8x128xbf16>
    %cst_23 = arith.constant dense<0.000000e+00> : vector<8x512xf32>
    %152 = tpu.matmul %151, %7, %cst_23 {dimension_numbers = #tpu.dot_dimension_numbers<[1], [0], [0], [1], [0, 0, 1, 1], [], []>} : vector<8x128xbf16>, vector<128x512xbf16>, vector<8x512xf32> -> vector<8x512xf32>
    %153 = arith.addf %150, %152 : vector<8x512xf32>
    %154 = vector.extract_strided_slice %153 {offsets = [0, 0], sizes = [8, 384], strides = [1, 1]} : vector<8x512xf32> to vector<8x384xf32>
    %155 = arith.negf %154 : vector<8x384xf32>
    %156 = math.exp %155 : vector<8x384xf32>
    %cst_24 = arith.constant 1.000000e+00 : f32
    %157 = vector.broadcast %cst_24 : f32 to vector<8x384xf32>
    %158 = arith.addf %157, %156 : vector<8x384xf32>
    %159 = arith.divf %157, %158 : vector<8x384xf32>
    %160 = vector.extract_strided_slice %159 {offsets = [0, 0], sizes = [8, 128], strides = [1, 1]} : vector<8x384xf32> to vector<8x128xf32>
    %161 = vector.extract_strided_slice %159 {offsets = [0, 128], sizes = [8, 128], strides = [1, 1]} : vector<8x384xf32> to vector<8x128xf32>
    %162 = vector.extract_strided_slice %159 {offsets = [0, 256], sizes = [8, 128], strides = [1, 1]} : vector<8x384xf32> to vector<8x128xf32>
    %163 = vector.extract_strided_slice %153 {offsets = [0, 384], sizes = [8, 128], strides = [1, 1]} : vector<8x512xf32> to vector<8x128xf32>
    %164 = math.tanh %163 : vector<8x128xf32>
    %165 = arith.mulf %161, %147 : vector<8x128xf32>
    %166 = arith.mulf %160, %164 : vector<8x128xf32>
    %167 = arith.addf %165, %166 : vector<8x128xf32>
    %168 = math.tanh %167 : vector<8x128xf32>
    %169 = arith.mulf %162, %168 : vector<8x128xf32>
    %170 = vector.extract_strided_slice %6 {offsets = [64, 0], sizes = [8, 512], strides = [1, 1]} : vector<72x512xf32> to vector<8x512xf32>
    %171 = arith.truncf %169 : vector<8x128xf32> to vector<8x128xbf16>
    %cst_25 = arith.constant dense<0.000000e+00> : vector<8x512xf32>
    %172 = tpu.matmul %171, %7, %cst_25 {dimension_numbers = #tpu.dot_dimension_numbers<[1], [0], [0], [1], [0, 0, 1, 1], [], []>} : vector<8x128xbf16>, vector<128x512xbf16>, vector<8x512xf32> -> vector<8x512xf32>
    %173 = arith.addf %170, %172 : vector<8x512xf32>
    %174 = vector.extract_strided_slice %173 {offsets = [0, 0], sizes = [8, 384], strides = [1, 1]} : vector<8x512xf32> to vector<8x384xf32>
    %175 = arith.negf %174 : vector<8x384xf32>
    %176 = math.exp %175 : vector<8x384xf32>
    %cst_26 = arith.constant 1.000000e+00 : f32
    %177 = vector.broadcast %cst_26 : f32 to vector<8x384xf32>
    %178 = arith.addf %177, %176 : vector<8x384xf32>
    %179 = arith.divf %177, %178 : vector<8x384xf32>
    %180 = vector.extract_strided_slice %179 {offsets = [0, 0], sizes = [8, 128], strides = [1, 1]} : vector<8x384xf32> to vector<8x128xf32>
    %181 = vector.extract_strided_slice %179 {offsets = [0, 128], sizes = [8, 128], strides = [1, 1]} : vector<8x384xf32> to vector<8x128xf32>
    %182 = vector.extract_strided_slice %179 {offsets = [0, 256], sizes = [8, 128], strides = [1, 1]} : vector<8x384xf32> to vector<8x128xf32>
    %183 = vector.extract_strided_slice %173 {offsets = [0, 384], sizes = [8, 128], strides = [1, 1]} : vector<8x512xf32> to vector<8x128xf32>
    %184 = math.tanh %183 : vector<8x128xf32>
    %185 = arith.mulf %181, %167 : vector<8x128xf32>
    %186 = arith.mulf %180, %184 : vector<8x128xf32>
    %187 = arith.addf %185, %186 : vector<8x128xf32>
    %188 = math.tanh %187 : vector<8x128xf32>
    %189 = arith.mulf %182, %188 : vector<8x128xf32>
    %190 = tpu.concatenate %29, %49, %69, %89, %109, %129, %149, %169, %189 in 0 : vector<8x128xf32>, vector<8x128xf32>, vector<8x128xf32>, vector<8x128xf32>, vector<8x128xf32>, vector<8x128xf32>, vector<8x128xf32>, vector<8x128xf32>, vector<8x128xf32> -> vector<72x128xf32>
    %191 = arith.truncf %190 : vector<72x128xf32> to vector<72x128xbf16>
    %c0_27 = arith.constant 0 : index
    %c0_28 = arith.constant 0 : index
    %192 = vector.load %arg4[%c0_27, %c0_28] : memref<128x512xbf16, #tpu.memory_space<vmem>>, vector<128x512xbf16>
    %cst_29 = arith.constant dense<0.000000e+00> : vector<72x512xf32>
    %193 = tpu.matmul %191, %192, %cst_29 {dimension_numbers = #tpu.dot_dimension_numbers<[1], [0], [0], [1], [0, 0, 1, 1], [], []>} : vector<72x128xbf16>, vector<128x512xbf16>, vector<72x512xf32> -> vector<72x512xf32>
    %c0_30 = arith.constant 0 : index
    %c0_31 = arith.constant 0 : index
    %194 = vector.load %arg6[%c0_30, %c0_31] : memref<1x512xf32, #tpu.memory_space<vmem>>, vector<1x512xf32>
    %195 = vector.broadcast %194 : vector<1x512xf32> to vector<72x512xf32>
    %196 = arith.addf %193, %195 : vector<72x512xf32>
    %c0_32 = arith.constant 0 : index
    %c0_33 = arith.constant 0 : index
    %197 = vector.load %arg5[%c0_32, %c0_33] : memref<128x512xbf16, #tpu.memory_space<vmem>>, vector<128x512xbf16>
    %cst_34 = arith.constant 0.000000e+00 : f32
    %198 = vector.broadcast %cst_34 : f32 to vector<8x128xf32>
    %cst_35 = arith.constant 0.000000e+00 : f32
    %199 = vector.broadcast %cst_35 : f32 to vector<8x128xf32>
    %200 = vector.extract_strided_slice %196 {offsets = [0, 0], sizes = [8, 512], strides = [1, 1]} : vector<72x512xf32> to vector<8x512xf32>
    %201 = arith.truncf %198 : vector<8x128xf32> to vector<8x128xbf16>
    %cst_36 = arith.constant dense<0.000000e+00> : vector<8x512xf32>
    %202 = tpu.matmul %201, %197, %cst_36 {dimension_numbers = #tpu.dot_dimension_numbers<[1], [0], [0], [1], [0, 0, 1, 1], [], []>} : vector<8x128xbf16>, vector<128x512xbf16>, vector<8x512xf32> -> vector<8x512xf32>
    %203 = arith.addf %200, %202 : vector<8x512xf32>
    %204 = vector.extract_strided_slice %203 {offsets = [0, 0], sizes = [8, 384], strides = [1, 1]} : vector<8x512xf32> to vector<8x384xf32>
    %205 = arith.negf %204 : vector<8x384xf32>
    %206 = math.exp %205 : vector<8x384xf32>
    %cst_37 = arith.constant 1.000000e+00 : f32
    %207 = vector.broadcast %cst_37 : f32 to vector<8x384xf32>
    %208 = arith.addf %207, %206 : vector<8x384xf32>
    %209 = arith.divf %207, %208 : vector<8x384xf32>
    %210 = vector.extract_strided_slice %209 {offsets = [0, 0], sizes = [8, 128], strides = [1, 1]} : vector<8x384xf32> to vector<8x128xf32>
    %211 = vector.extract_strided_slice %209 {offsets = [0, 128], sizes = [8, 128], strides = [1, 1]} : vector<8x384xf32> to vector<8x128xf32>
    %212 = vector.extract_strided_slice %209 {offsets = [0, 256], sizes = [8, 128], strides = [1, 1]} : vector<8x384xf32> to vector<8x128xf32>
    %213 = vector.extract_strided_slice %203 {offsets = [0, 384], sizes = [8, 128], strides = [1, 1]} : vector<8x512xf32> to vector<8x128xf32>
    %214 = math.tanh %213 : vector<8x128xf32>
    %215 = arith.mulf %211, %199 : vector<8x128xf32>
    %216 = arith.mulf %210, %214 : vector<8x128xf32>
    %217 = arith.addf %215, %216 : vector<8x128xf32>
    %218 = math.tanh %217 : vector<8x128xf32>
    %219 = arith.mulf %212, %218 : vector<8x128xf32>
    %220 = vector.extract_strided_slice %196 {offsets = [8, 0], sizes = [8, 512], strides = [1, 1]} : vector<72x512xf32> to vector<8x512xf32>
    %221 = arith.truncf %219 : vector<8x128xf32> to vector<8x128xbf16>
    %cst_38 = arith.constant dense<0.000000e+00> : vector<8x512xf32>
    %222 = tpu.matmul %221, %197, %cst_38 {dimension_numbers = #tpu.dot_dimension_numbers<[1], [0], [0], [1], [0, 0, 1, 1], [], []>} : vector<8x128xbf16>, vector<128x512xbf16>, vector<8x512xf32> -> vector<8x512xf32>
    %223 = arith.addf %220, %222 : vector<8x512xf32>
    %224 = vector.extract_strided_slice %223 {offsets = [0, 0], sizes = [8, 384], strides = [1, 1]} : vector<8x512xf32> to vector<8x384xf32>
    %225 = arith.negf %224 : vector<8x384xf32>
    %226 = math.exp %225 : vector<8x384xf32>
    %cst_39 = arith.constant 1.000000e+00 : f32
    %227 = vector.broadcast %cst_39 : f32 to vector<8x384xf32>
    %228 = arith.addf %227, %226 : vector<8x384xf32>
    %229 = arith.divf %227, %228 : vector<8x384xf32>
    %230 = vector.extract_strided_slice %229 {offsets = [0, 0], sizes = [8, 128], strides = [1, 1]} : vector<8x384xf32> to vector<8x128xf32>
    %231 = vector.extract_strided_slice %229 {offsets = [0, 128], sizes = [8, 128], strides = [1, 1]} : vector<8x384xf32> to vector<8x128xf32>
    %232 = vector.extract_strided_slice %229 {offsets = [0, 256], sizes = [8, 128], strides = [1, 1]} : vector<8x384xf32> to vector<8x128xf32>
    %233 = vector.extract_strided_slice %223 {offsets = [0, 384], sizes = [8, 128], strides = [1, 1]} : vector<8x512xf32> to vector<8x128xf32>
    %234 = math.tanh %233 : vector<8x128xf32>
    %235 = arith.mulf %231, %217 : vector<8x128xf32>
    %236 = arith.mulf %230, %234 : vector<8x128xf32>
    %237 = arith.addf %235, %236 : vector<8x128xf32>
    %238 = math.tanh %237 : vector<8x128xf32>
    %239 = arith.mulf %232, %238 : vector<8x128xf32>
    %240 = vector.extract_strided_slice %196 {offsets = [16, 0], sizes = [8, 512], strides = [1, 1]} : vector<72x512xf32> to vector<8x512xf32>
    %241 = arith.truncf %239 : vector<8x128xf32> to vector<8x128xbf16>
    %cst_40 = arith.constant dense<0.000000e+00> : vector<8x512xf32>
    %242 = tpu.matmul %241, %197, %cst_40 {dimension_numbers = #tpu.dot_dimension_numbers<[1], [0], [0], [1], [0, 0, 1, 1], [], []>} : vector<8x128xbf16>, vector<128x512xbf16>, vector<8x512xf32> -> vector<8x512xf32>
    %243 = arith.addf %240, %242 : vector<8x512xf32>
    %244 = vector.extract_strided_slice %243 {offsets = [0, 0], sizes = [8, 384], strides = [1, 1]} : vector<8x512xf32> to vector<8x384xf32>
    %245 = arith.negf %244 : vector<8x384xf32>
    %246 = math.exp %245 : vector<8x384xf32>
    %cst_41 = arith.constant 1.000000e+00 : f32
    %247 = vector.broadcast %cst_41 : f32 to vector<8x384xf32>
    %248 = arith.addf %247, %246 : vector<8x384xf32>
    %249 = arith.divf %247, %248 : vector<8x384xf32>
    %250 = vector.extract_strided_slice %249 {offsets = [0, 0], sizes = [8, 128], strides = [1, 1]} : vector<8x384xf32> to vector<8x128xf32>
    %251 = vector.extract_strided_slice %249 {offsets = [0, 128], sizes = [8, 128], strides = [1, 1]} : vector<8x384xf32> to vector<8x128xf32>
    %252 = vector.extract_strided_slice %249 {offsets = [0, 256], sizes = [8, 128], strides = [1, 1]} : vector<8x384xf32> to vector<8x128xf32>
    %253 = vector.extract_strided_slice %243 {offsets = [0, 384], sizes = [8, 128], strides = [1, 1]} : vector<8x512xf32> to vector<8x128xf32>
    %254 = math.tanh %253 : vector<8x128xf32>
    %255 = arith.mulf %251, %237 : vector<8x128xf32>
    %256 = arith.mulf %250, %254 : vector<8x128xf32>
    %257 = arith.addf %255, %256 : vector<8x128xf32>
    %258 = math.tanh %257 : vector<8x128xf32>
    %259 = arith.mulf %252, %258 : vector<8x128xf32>
    %260 = vector.extract_strided_slice %196 {offsets = [24, 0], sizes = [8, 512], strides = [1, 1]} : vector<72x512xf32> to vector<8x512xf32>
    %261 = arith.truncf %259 : vector<8x128xf32> to vector<8x128xbf16>
    %cst_42 = arith.constant dense<0.000000e+00> : vector<8x512xf32>
    %262 = tpu.matmul %261, %197, %cst_42 {dimension_numbers = #tpu.dot_dimension_numbers<[1], [0], [0], [1], [0, 0, 1, 1], [], []>} : vector<8x128xbf16>, vector<128x512xbf16>, vector<8x512xf32> -> vector<8x512xf32>
    %263 = arith.addf %260, %262 : vector<8x512xf32>
    %264 = vector.extract_strided_slice %263 {offsets = [0, 0], sizes = [8, 384], strides = [1, 1]} : vector<8x512xf32> to vector<8x384xf32>
    %265 = arith.negf %264 : vector<8x384xf32>
    %266 = math.exp %265 : vector<8x384xf32>
    %cst_43 = arith.constant 1.000000e+00 : f32
    %267 = vector.broadcast %cst_43 : f32 to vector<8x384xf32>
    %268 = arith.addf %267, %266 : vector<8x384xf32>
    %269 = arith.divf %267, %268 : vector<8x384xf32>
    %270 = vector.extract_strided_slice %269 {offsets = [0, 0], sizes = [8, 128], strides = [1, 1]} : vector<8x384xf32> to vector<8x128xf32>
    %271 = vector.extract_strided_slice %269 {offsets = [0, 128], sizes = [8, 128], strides = [1, 1]} : vector<8x384xf32> to vector<8x128xf32>
    %272 = vector.extract_strided_slice %269 {offsets = [0, 256], sizes = [8, 128], strides = [1, 1]} : vector<8x384xf32> to vector<8x128xf32>
    %273 = vector.extract_strided_slice %263 {offsets = [0, 384], sizes = [8, 128], strides = [1, 1]} : vector<8x512xf32> to vector<8x128xf32>
    %274 = math.tanh %273 : vector<8x128xf32>
    %275 = arith.mulf %271, %257 : vector<8x128xf32>
    %276 = arith.mulf %270, %274 : vector<8x128xf32>
    %277 = arith.addf %275, %276 : vector<8x128xf32>
    %278 = math.tanh %277 : vector<8x128xf32>
    %279 = arith.mulf %272, %278 : vector<8x128xf32>
    %280 = vector.extract_strided_slice %196 {offsets = [32, 0], sizes = [8, 512], strides = [1, 1]} : vector<72x512xf32> to vector<8x512xf32>
    %281 = arith.truncf %279 : vector<8x128xf32> to vector<8x128xbf16>
    %cst_44 = arith.constant dense<0.000000e+00> : vector<8x512xf32>
    %282 = tpu.matmul %281, %197, %cst_44 {dimension_numbers = #tpu.dot_dimension_numbers<[1], [0], [0], [1], [0, 0, 1, 1], [], []>} : vector<8x128xbf16>, vector<128x512xbf16>, vector<8x512xf32> -> vector<8x512xf32>
    %283 = arith.addf %280, %282 : vector<8x512xf32>
    %284 = vector.extract_strided_slice %283 {offsets = [0, 0], sizes = [8, 384], strides = [1, 1]} : vector<8x512xf32> to vector<8x384xf32>
    %285 = arith.negf %284 : vector<8x384xf32>
    %286 = math.exp %285 : vector<8x384xf32>
    %cst_45 = arith.constant 1.000000e+00 : f32
    %287 = vector.broadcast %cst_45 : f32 to vector<8x384xf32>
    %288 = arith.addf %287, %286 : vector<8x384xf32>
    %289 = arith.divf %287, %288 : vector<8x384xf32>
    %290 = vector.extract_strided_slice %289 {offsets = [0, 0], sizes = [8, 128], strides = [1, 1]} : vector<8x384xf32> to vector<8x128xf32>
    %291 = vector.extract_strided_slice %289 {offsets = [0, 128], sizes = [8, 128], strides = [1, 1]} : vector<8x384xf32> to vector<8x128xf32>
    %292 = vector.extract_strided_slice %289 {offsets = [0, 256], sizes = [8, 128], strides = [1, 1]} : vector<8x384xf32> to vector<8x128xf32>
    %293 = vector.extract_strided_slice %283 {offsets = [0, 384], sizes = [8, 128], strides = [1, 1]} : vector<8x512xf32> to vector<8x128xf32>
    %294 = math.tanh %293 : vector<8x128xf32>
    %295 = arith.mulf %291, %277 : vector<8x128xf32>
    %296 = arith.mulf %290, %294 : vector<8x128xf32>
    %297 = arith.addf %295, %296 : vector<8x128xf32>
    %298 = math.tanh %297 : vector<8x128xf32>
    %299 = arith.mulf %292, %298 : vector<8x128xf32>
    %300 = vector.extract_strided_slice %196 {offsets = [40, 0], sizes = [8, 512], strides = [1, 1]} : vector<72x512xf32> to vector<8x512xf32>
    %301 = arith.truncf %299 : vector<8x128xf32> to vector<8x128xbf16>
    %cst_46 = arith.constant dense<0.000000e+00> : vector<8x512xf32>
    %302 = tpu.matmul %301, %197, %cst_46 {dimension_numbers = #tpu.dot_dimension_numbers<[1], [0], [0], [1], [0, 0, 1, 1], [], []>} : vector<8x128xbf16>, vector<128x512xbf16>, vector<8x512xf32> -> vector<8x512xf32>
    %303 = arith.addf %300, %302 : vector<8x512xf32>
    %304 = vector.extract_strided_slice %303 {offsets = [0, 0], sizes = [8, 384], strides = [1, 1]} : vector<8x512xf32> to vector<8x384xf32>
    %305 = arith.negf %304 : vector<8x384xf32>
    %306 = math.exp %305 : vector<8x384xf32>
    %cst_47 = arith.constant 1.000000e+00 : f32
    %307 = vector.broadcast %cst_47 : f32 to vector<8x384xf32>
    %308 = arith.addf %307, %306 : vector<8x384xf32>
    %309 = arith.divf %307, %308 : vector<8x384xf32>
    %310 = vector.extract_strided_slice %309 {offsets = [0, 0], sizes = [8, 128], strides = [1, 1]} : vector<8x384xf32> to vector<8x128xf32>
    %311 = vector.extract_strided_slice %309 {offsets = [0, 128], sizes = [8, 128], strides = [1, 1]} : vector<8x384xf32> to vector<8x128xf32>
    %312 = vector.extract_strided_slice %309 {offsets = [0, 256], sizes = [8, 128], strides = [1, 1]} : vector<8x384xf32> to vector<8x128xf32>
    %313 = vector.extract_strided_slice %303 {offsets = [0, 384], sizes = [8, 128], strides = [1, 1]} : vector<8x512xf32> to vector<8x128xf32>
    %314 = math.tanh %313 : vector<8x128xf32>
    %315 = arith.mulf %311, %297 : vector<8x128xf32>
    %316 = arith.mulf %310, %314 : vector<8x128xf32>
    %317 = arith.addf %315, %316 : vector<8x128xf32>
    %318 = math.tanh %317 : vector<8x128xf32>
    %319 = arith.mulf %312, %318 : vector<8x128xf32>
    %320 = vector.extract_strided_slice %196 {offsets = [48, 0], sizes = [8, 512], strides = [1, 1]} : vector<72x512xf32> to vector<8x512xf32>
    %321 = arith.truncf %319 : vector<8x128xf32> to vector<8x128xbf16>
    %cst_48 = arith.constant dense<0.000000e+00> : vector<8x512xf32>
    %322 = tpu.matmul %321, %197, %cst_48 {dimension_numbers = #tpu.dot_dimension_numbers<[1], [0], [0], [1], [0, 0, 1, 1], [], []>} : vector<8x128xbf16>, vector<128x512xbf16>, vector<8x512xf32> -> vector<8x512xf32>
    %323 = arith.addf %320, %322 : vector<8x512xf32>
    %324 = vector.extract_strided_slice %323 {offsets = [0, 0], sizes = [8, 384], strides = [1, 1]} : vector<8x512xf32> to vector<8x384xf32>
    %325 = arith.negf %324 : vector<8x384xf32>
    %326 = math.exp %325 : vector<8x384xf32>
    %cst_49 = arith.constant 1.000000e+00 : f32
    %327 = vector.broadcast %cst_49 : f32 to vector<8x384xf32>
    %328 = arith.addf %327, %326 : vector<8x384xf32>
    %329 = arith.divf %327, %328 : vector<8x384xf32>
    %330 = vector.extract_strided_slice %329 {offsets = [0, 0], sizes = [8, 128], strides = [1, 1]} : vector<8x384xf32> to vector<8x128xf32>
    %331 = vector.extract_strided_slice %329 {offsets = [0, 128], sizes = [8, 128], strides = [1, 1]} : vector<8x384xf32> to vector<8x128xf32>
    %332 = vector.extract_strided_slice %329 {offsets = [0, 256], sizes = [8, 128], strides = [1, 1]} : vector<8x384xf32> to vector<8x128xf32>
    %333 = vector.extract_strided_slice %323 {offsets = [0, 384], sizes = [8, 128], strides = [1, 1]} : vector<8x512xf32> to vector<8x128xf32>
    %334 = math.tanh %333 : vector<8x128xf32>
    %335 = arith.mulf %331, %317 : vector<8x128xf32>
    %336 = arith.mulf %330, %334 : vector<8x128xf32>
    %337 = arith.addf %335, %336 : vector<8x128xf32>
    %338 = math.tanh %337 : vector<8x128xf32>
    %339 = arith.mulf %332, %338 : vector<8x128xf32>
    %340 = vector.extract_strided_slice %196 {offsets = [56, 0], sizes = [8, 512], strides = [1, 1]} : vector<72x512xf32> to vector<8x512xf32>
    %341 = arith.truncf %339 : vector<8x128xf32> to vector<8x128xbf16>
    %cst_50 = arith.constant dense<0.000000e+00> : vector<8x512xf32>
    %342 = tpu.matmul %341, %197, %cst_50 {dimension_numbers = #tpu.dot_dimension_numbers<[1], [0], [0], [1], [0, 0, 1, 1], [], []>} : vector<8x128xbf16>, vector<128x512xbf16>, vector<8x512xf32> -> vector<8x512xf32>
    %343 = arith.addf %340, %342 : vector<8x512xf32>
    %344 = vector.extract_strided_slice %343 {offsets = [0, 0], sizes = [8, 384], strides = [1, 1]} : vector<8x512xf32> to vector<8x384xf32>
    %345 = arith.negf %344 : vector<8x384xf32>
    %346 = math.exp %345 : vector<8x384xf32>
    %cst_51 = arith.constant 1.000000e+00 : f32
    %347 = vector.broadcast %cst_51 : f32 to vector<8x384xf32>
    %348 = arith.addf %347, %346 : vector<8x384xf32>
    %349 = arith.divf %347, %348 : vector<8x384xf32>
    %350 = vector.extract_strided_slice %349 {offsets = [0, 0], sizes = [8, 128], strides = [1, 1]} : vector<8x384xf32> to vector<8x128xf32>
    %351 = vector.extract_strided_slice %349 {offsets = [0, 128], sizes = [8, 128], strides = [1, 1]} : vector<8x384xf32> to vector<8x128xf32>
    %352 = vector.extract_strided_slice %349 {offsets = [0, 256], sizes = [8, 128], strides = [1, 1]} : vector<8x384xf32> to vector<8x128xf32>
    %353 = vector.extract_strided_slice %343 {offsets = [0, 384], sizes = [8, 128], strides = [1, 1]} : vector<8x512xf32> to vector<8x128xf32>
    %354 = math.tanh %353 : vector<8x128xf32>
    %355 = arith.mulf %351, %337 : vector<8x128xf32>
    %356 = arith.mulf %350, %354 : vector<8x128xf32>
    %357 = arith.addf %355, %356 : vector<8x128xf32>
    %358 = math.tanh %357 : vector<8x128xf32>
    %359 = arith.mulf %352, %358 : vector<8x128xf32>
    %360 = vector.extract_strided_slice %196 {offsets = [64, 0], sizes = [8, 512], strides = [1, 1]} : vector<72x512xf32> to vector<8x512xf32>
    %361 = arith.truncf %359 : vector<8x128xf32> to vector<8x128xbf16>
    %cst_52 = arith.constant dense<0.000000e+00> : vector<8x512xf32>
    %362 = tpu.matmul %361, %197, %cst_52 {dimension_numbers = #tpu.dot_dimension_numbers<[1], [0], [0], [1], [0, 0, 1, 1], [], []>} : vector<8x128xbf16>, vector<128x512xbf16>, vector<8x512xf32> -> vector<8x512xf32>
    %363 = arith.addf %360, %362 : vector<8x512xf32>
    %364 = vector.extract_strided_slice %363 {offsets = [0, 0], sizes = [8, 384], strides = [1, 1]} : vector<8x512xf32> to vector<8x384xf32>
    %365 = arith.negf %364 : vector<8x384xf32>
    %366 = math.exp %365 : vector<8x384xf32>
    %cst_53 = arith.constant 1.000000e+00 : f32
    %367 = vector.broadcast %cst_53 : f32 to vector<8x384xf32>
    %368 = arith.addf %367, %366 : vector<8x384xf32>
    %369 = arith.divf %367, %368 : vector<8x384xf32>
    %370 = vector.extract_strided_slice %369 {offsets = [0, 0], sizes = [8, 128], strides = [1, 1]} : vector<8x384xf32> to vector<8x128xf32>
    %371 = vector.extract_strided_slice %369 {offsets = [0, 128], sizes = [8, 128], strides = [1, 1]} : vector<8x384xf32> to vector<8x128xf32>
    %372 = vector.extract_strided_slice %369 {offsets = [0, 256], sizes = [8, 128], strides = [1, 1]} : vector<8x384xf32> to vector<8x128xf32>
    %373 = vector.extract_strided_slice %363 {offsets = [0, 384], sizes = [8, 128], strides = [1, 1]} : vector<8x512xf32> to vector<8x128xf32>
    %374 = math.tanh %373 : vector<8x128xf32>
    %375 = arith.mulf %371, %357 : vector<8x128xf32>
    %376 = arith.mulf %370, %374 : vector<8x128xf32>
    %377 = arith.addf %375, %376 : vector<8x128xf32>
    %378 = math.tanh %377 : vector<8x128xf32>
    %379 = arith.mulf %372, %378 : vector<8x128xf32>
    %380 = tpu.concatenate %219, %239, %259, %279, %299, %319, %339, %359, %379 in 0 : vector<8x128xf32>, vector<8x128xf32>, vector<8x128xf32>, vector<8x128xf32>, vector<8x128xf32>, vector<8x128xf32>, vector<8x128xf32>, vector<8x128xf32>, vector<8x128xf32> -> vector<72x128xf32>
    %381 = arith.truncf %380 : vector<72x128xf32> to vector<72x128xbf16>
    %c0_54 = arith.constant 0 : index
    %c0_55 = arith.constant 0 : index
    %382 = vector.load %arg7[%c0_54, %c0_55] : memref<128x128xbf16, #tpu.memory_space<vmem>>, vector<128x128xbf16>
    %cst_56 = arith.constant dense<0.000000e+00> : vector<72x128xf32>
    %383 = tpu.matmul %381, %382, %cst_56 {dimension_numbers = #tpu.dot_dimension_numbers<[1], [0], [0], [1], [0, 0, 1, 1], [], []>} : vector<72x128xbf16>, vector<128x128xbf16>, vector<72x128xf32> -> vector<72x128xf32>
    %c0_57 = arith.constant 0 : index
    %c0_58 = arith.constant 0 : index
    %384 = vector.load %arg8[%c0_57, %c0_58] : memref<1x128xf32, #tpu.memory_space<vmem>>, vector<1x128xf32>
    %385 = vector.broadcast %384 : vector<1x128xf32> to vector<72x128xf32>
    %386 = arith.addf %383, %385 : vector<72x128xf32>
    %c0_59 = arith.constant 0 : index
    %c0_60 = arith.constant 0 : index
    %387 = vector.load %arg9[%c0_59, %c0_60] : memref<72x128xf32, #tpu.memory_space<vmem>>, vector<72x128xf32>
    tpu.vector_store %arg9[%c0_59, %c0_60], %386 {strides = array<i32>} : memref<72x128xf32, #tpu.memory_space<vmem>>, vector<72x128xf32>,
    return
  }
}

</mosaic_0001>

<bundles_post_ra>
// kernel: tpu_custom_call.1
= control target key start
LH: loop header
LB: loop body
LE: loop exit
PB: predicated region body
PF: predicated region fallthrough
CT: control target
= control target key end

     0   :  { %14 = vsyncpa [#allocation3], 0  ;;  %s5647_s0 = inlined_call_operand.vmem [shape: f32[72,32], index: 0, kind: input, shape index: {}]   ;;  %s5648_s1 = inlined_call_operand.vmem [shape: bf16[32,512], index: 1, kind: input, shape index: {}]   ;;  %s5649_s2 = inlined_call_operand.hbm [shape: bf16[128,512], index: 2, kind: input, shape index: {}]   ;;  %s5650_s3 = inlined_call_operand.vmem [shape: f32[1,512], index: 3, kind: input, shape index: {}]   ;;  %s5651_s4 = inlined_call_operand.hbm [shape: bf16[128,512], index: 4, kind: input, shape index: {}]   ;;  %s5652_s5 = inlined_call_operand.hbm [shape: bf16[128,512], index: 5, kind: input, shape index: {}]   ;;  %s5653_s6 = inlined_call_operand.vmem [shape: f32[1,512], index: 6, kind: input, shape index: {}]   ;;  %s5654_s7 = inlined_call_operand.hbm [shape: bf16[128,128], index: 7, kind: input, shape index: {}]   ;;  %s5655_s8 = inlined_call_operand.vmem [shape: f32[1,128], index: 8, kind: input, shape index: {}]   ;;  %s5656_s9 = inlined_call_operand.hbm [shape: f32[72,128], index: 9, kind: output, shape index: {}]  }
   0x1   :  { %15 = vsyncpa [#allocation6], 0 }
   0x2   :  { %16 = vsyncpa [#allocation9], 0 }
   0x3   :  { %17 = vsyncpa [#allocation4], 0  ;;  %s4152_s30 = smov [#allocation5]   ;;  %s4153_s11 = smov [#allocation2]  }
   0x4   :  { %s41_s10 = sshll.u32 %s4152_s30, 4  ;;  %s27_s12 = sshll.u32 %s4153_s11, 4  ;;  %s42_s10 = int_to_ptr.vmem [resolvable:$true] %s41_s10  ;;  %s28_s12 = int_to_ptr.vmem [resolvable:$true] %s27_s12 }
   0x5   :  { %s4052_s13 = scalar_lea.vmem %s42_s10, 4096  ;;  %p4057_p1 = scmp.lt.s32.totalorder %s42_s10, %s42_s10 }
   0x6   :  { %p4053_p0 = scmp.ne.s32.totalorder %s42_s10, %s4052_s13  ;;  %p4058_p2 = scmp.lt.s32.totalorder %s4052_s13, %s4052_s13 }
   0x8   :  { %p4059_p3 = por %p4058_p2, %p4057_p1 }
   0xa   :  { %p4060_p4 = pnand %p4059_p3, %p4053_p0 }
   0xc   :  { %4063 = shalt.err (!%p4060_p4)
}
   0xd   :  { %s4154_s14 = smov 256   ;;  %s4155_s15 = smov 16  }
   0xe   :  { %47 = dma.hbm_to_vmem [thread:$0]  %s5651_s4, 4096, %s42_s10, [#allocation6], %s4154_s14, %s4154_s14, %s4155_s15  }
   0xf   :  { %s4072_s18 = scalar_lea.vmem %s28_s12, 4096  ;;  %p4077_p6 = scmp.lt.s32.totalorder %s28_s12, %s28_s12 }
  0x10   :  { %p4073_p5 = scmp.ne.s32.totalorder %s28_s12, %s4072_s18  ;;  %p4078_p7 = scmp.lt.s32.totalorder %s4072_s18, %s4072_s18 }
  0x12   :  { %p4079_p8 = por %p4078_p7, %p4077_p6 }
  0x14   :  { %p4080_p9 = pnand %p4079_p8, %p4073_p5 }
  0x16   :  { %4083 = shalt.err (!%p4080_p9)
}
  0x17   :  { %33 = dma.hbm_to_vmem [thread:$0]  %s5649_s2, 4096, %s28_s12, [#allocation3], %s4154_s14, %s4154_s14, %s4155_s15  }
  0x18   :  { %s4156_s21 = smov [#allocation7]   ;;  %s4157_s23 = smov [#allocation8]  }
  0x19   :  { %s53_s22 = sshll.u32 %s4156_s21, 4  ;;  %s67_s24 = sshll.u32 %s4157_s23, 4  ;;  %s54_s22 = int_to_ptr.vmem [resolvable:$true] %s53_s22  ;;  %s68_s24 = int_to_ptr.vmem [resolvable:$true] %s67_s24 }
  0x1a   :  { %s4092_s25 = scalar_lea.vmem %s54_s22, 4096  ;;  %p4097_p11 = scmp.lt.s32.totalorder %s54_s22, %s54_s22 }
  0x1b   :  { %p4093_p10 = scmp.ne.s32.totalorder %s54_s22, %s4092_s25  ;;  %p4098_p12 = scmp.lt.s32.totalorder %s4092_s25, %s4092_s25 }
  0x1d   :  { %p4099_p13 = por %p4098_p12, %p4097_p11 }
  0x1f   :  { %p4100_p0 = pnand %p4099_p13, %p4093_p10 }
  0x21   :  { %4103 = shalt.err (!%p4100_p0)
}
  0x22   :  { %59 = dma.hbm_to_vmem [thread:$0]  %s5652_s5, 4096, %s54_s22, [#allocation6], %s4154_s14, %s4154_s14, %s4155_s15  }
  0x23   :  { %s4112_s27 = scalar_lea.vmem %s68_s24, 1024  ;;  %p4117_p2 = scmp.lt.s32.totalorder %s68_s24, %s68_s24 }
  0x24   :  { %p4113_p1 = scmp.ne.s32.totalorder %s68_s24, %s4112_s27  ;;  %p4118_p3 = scmp.lt.s32.totalorder %s4112_s27, %s4112_s27 }
  0x26   :  { %p4119_p4 = por %p4118_p3, %p4117_p2 }
  0x28   :  { %p4120_p5 = pnand %p4119_p4, %p4113_p1 }
  0x2a   :  { %4123 = shalt.err (!%p4120_p5)
}
  0x2b   :  { %s4158_s2 = smov 64   ;;  %s4159_s28 = smov 4  }
  0x2c   :  { %73 = dma.hbm_to_vmem [thread:$0]  %s5654_s7, 1024, %s68_s24, [#allocation9], %s4158_s2, %s4158_s2, %s4159_s28  }
  0x2d   :  { %4144 = dma.done.wait [#allocation3], 4096  }
  0x2e   :  { %4145 = vsyncadd [#allocation3], 4294963200 }
  0x2f   :  { %4146 = dma.done.wait [#allocation6], 8192  }
  0x30   :  { %4147 = vsyncadd [#allocation6], 4294959104 }
  0x31   :  { %4148 = dma.done.wait [#allocation9], 1024  }
  0x32   :  { %4149 = vsyncadd [#allocation9], 4294966272  ;;  %v5660_v0 = vmov 0   ;;  %v3528_v1 = vld [vmem:[%s5648_s1 + $0x2c] ss:$16 sps:$4 sm:$0xff]   ;;  %v89_v5 = vld [vmem:[%s5647_s0] sm:$0xff]  ;;  %v113_v55 = vlaneseq }
  0x33   :  { %302 = vmatprep.mubr.bf16.mxu1 %v5660_v0  ;;  %221 = vmatprep.mubr.bf16.mxu0 %v5660_v0  ;;  %v3530_v2 = vld [vmem:[%s5648_s1 + $0x28] ss:$16 sps:$4 sm:$0xff]   ;;  %v3531_v3 = vld [vmem:[%s5648_s1 + $0xc] ss:$16 sps:$4 sm:$0xff]   ;;  %v4248_v7 = vld [vmem:[#allocation2 + $0xe4] ss:$16 sps:$4 sm:$0xff]  }
  0x34   :  { %282 = vmatprep.subr.bf16.mxu1 %v3528_v1  ;;  %v3533_v4 = vld [vmem:[%s5648_s1 + $0x8] ss:$16 sps:$4 sm:$0xff]   ;;  %vm173_vm0 = vcmask 261120   ;;  %v4250_v9 = vld [vmem:[#allocation2 + $0xe0] ss:$16 sps:$4 sm:$0xff]   ;;  %v4435_v56 = vshrl.u32 %v113_v55, 7 }
  0x35   :  { %283 = vmatpush1.bf16.msra.mxu1 %v3530_v2  ;;  %v90_v6 = vld [vmem:[%s5647_s0 + $0x8] sm:$0xff]  ;;  %v4253_v10 = vld [vmem:[#allocation2 + $0xc4] ss:$16 sps:$4 sm:$0xff]   ;;  %v4257_v11 = vld [vmem:[#allocation2 + $0xc0] ss:$16 sps:$4 sm:$0xff]   ;;  %vm4162_vm1 = vmmov 0  }
  0x36   :  { %284 = vmatprep.subr.bf16.mxu1 %v3531_v3  ;;  %v98_v8 = vpack.c.bf16 %v90_v6, %v89_v5  ;;  %v91_v12 = vld [vmem:[%s5647_s0 + $0x10] sm:$0xff]  ;;  %v92_v13 = vld [vmem:[%s5647_s0 + $0x18] sm:$0xff]  ;;  %v93_v22 = vld [vmem:[%s5647_s0 + $0x20] sm:$0xff]  ;;  %5665 = vst [vmem:[#allocation15_spill] sm:$0xff] %v4435_v56  ;;  %v5658_v57 = vsub.s32 2, %v4435_v56  ;;  %v5657_v63 = vsub.s32 3, %v4435_v56 }
  0x37   :  { %v4267_v14 = vld [vmem:[#allocation2 + $0xa4] ss:$16 sps:$4 sm:$0xff]   ;;  %v99_v15 = vpack.c.bf16 %v92_v13, %v91_v12  ;;  %v4273_v17 = vld [vmem:[#allocation2 + $0xa0] ss:$16 sps:$4 sm:$0xff]   ;;  %v94_v23 = vld [vmem:[%s5647_s0 + $0x28] sm:$0xff] }
  0x38   :  { %v3552_v16 = vld [vmem:[%s5648_s1 + $0x24] ss:$16 sps:$4 sm:$0xff]   ;;  %v3556_v18 = vld [vmem:[%s5648_s1 + $0x20] ss:$16 sps:$4 sm:$0xff]   ;;  %v100_v26 = vpack.c.bf16 %v94_v23, %v93_v22  ;;  %v96_v30 = vld [vmem:[%s5647_s0 + $0x38] sm:$0xff] }
  0x39   :  { %285 = vmatpush1.bf16.msra.mxu1 %v3533_v4  ;;  %v4279_v19 = vld [vmem:[#allocation2 + $0x84] ss:$16 sps:$4 sm:$0xff]   ;;  %201 = vmatprep.subr.bf16.mxu0 %v3552_v16  ;;  %v3560_v21 = vld [vmem:[%s5648_s1] ss:$16 sps:$4 sm:$0xff]   ;;  %v4343_v38 = vld [vmem:[#allocation2 + $0xec] ss:$16 sps:$4 sm:$0xff]  }
  0x3a   :  { %543 = vmatprep.subr.bf16.mxu1 %v4248_v7  ;;  %202 = vmatpush1.bf16.msra.mxu0 %v3556_v18  ;;  %v3558_v20 = vld [vmem:[%s5648_s1 + $0x4] ss:$16 sps:$4 sm:$0xff]   ;;  %v4296_v24 = vld [vmem:[#allocation2 + $0x80] ss:$16 sps:$4 sm:$0xff]   ;;  %v4359_v40 = vld [vmem:[#allocation2 + $0xe8] ss:$16 sps:$4 sm:$0xff]  }
  0x3b   :  { %v4299_v25 = vld [vmem:[#allocation2 + $0x64] ss:$16 sps:$4 sm:$0xff]   ;;  %203 = vmatprep.subr.bf16.mxu0 %v3558_v20  ;;  %v4303_v27 = vld [vmem:[#allocation2 + $0x60] ss:$16 sps:$4 sm:$0xff]   ;;  %v4362_v41 = vld [vmem:[#allocation2 + $0xcc] ss:$16 sps:$4 sm:$0xff]  }
  0x3c   :  { %3301 = vmatmul.mubr.msk.bf16.vlgmr.msra.gmra.mxu1 %vm173_vm0, %v98_v8  ;;  %v4306_v28 = vld [vmem:[#allocation2 + $0x44] ss:$16 sps:$4 sm:$0xff]   ;;  %v4321_v31 = vld [vmem:[#allocation2 + $0x40] ss:$16 sps:$4 sm:$0xff]   ;;  %v4366_v42 = vld [vmem:[#allocation2 + $0xc8] ss:$16 sps:$4 sm:$0xff]  }
  0x3d   :  { %544 = vmatpush1.bf16.msra.mxu1 %v4250_v9  ;;  %312 = vmatprep.mubr.bf16.mxu1 %v5660_v0  ;;  %v95_v29 = vld [vmem:[%s5647_s0 + $0x30] sm:$0xff]  ;;  %v97_v36 = vld [vmem:[%s5647_s0 + $0x40] sm:$0xff]  ;;  %v4371_v43 = vld [vmem:[#allocation2 + $0xac] ss:$16 sps:$4 sm:$0xff]  }
  0x3e   :  { %545 = vmatprep.subr.bf16.mxu1 %v4253_v10  ;;  %204 = vmatpush1.bf16.msra.mxu0 %v3560_v21  ;;  %v4324_v32 = vld [vmem:[#allocation2 + $0x24] ss:$16 sps:$4 sm:$0xff]   ;;  %v4326_v33 = vld [vmem:[#allocation2 + $0x20] ss:$16 sps:$4 sm:$0xff]   ;;  %v101_v34 = vpack.c.bf16 %v96_v30, %v95_v29  ;;  %v102_v39 = vpack.c.bf16 %v97_v36, %v97_v36  ;;  %v4377_v44 = vld [vmem:[#allocation2 + $0xa8] ss:$16 sps:$4 sm:$0xff]  }
  0x3f   :  { %654 = vmatprep.subr.bf16.mxu0 %v4248_v7  ;;  %v4329_v35 = vld [vmem:[#allocation2 + $0x4] ss:$16 sps:$4 sm:$0xff]   ;;  %v4338_v37 = vld [vmem:[#allocation2] ss:$16 sps:$4 sm:$0xff]   ;;  %v4383_v45 = vld [vmem:[#allocation2 + $0x8c] ss:$16 sps:$4 sm:$0xff]  }
  0x40   :  { %v4388_v46 = vld [vmem:[#allocation2 + $0x88] ss:$16 sps:$4 sm:$0xff]   ;;  %v4391_v47 = vld [vmem:[#allocation2 + $0x6c] ss:$16 sps:$4 sm:$0xff]   ;;  %v111_v58 = vld [vmem:[%s5650_s3] sm:$0xf] }
  0x41   :  { %546 = vmatpush1.bf16.msra.mxu1 %v4257_v11  ;;  %3296 = vmatmul.mubr.msk.bf16.vlgmr.msra.gmra.mxu0 %vm173_vm0, %v98_v8  ;;  %v4394_v48 = vld [vmem:[#allocation2 + $0x68] ss:$16 sps:$4 sm:$0xff]   ;;  %v4397_v49 = vld [vmem:[#allocation2 + $0x4c] ss:$16 sps:$4 sm:$0xff]   ;;  %v4447_v61 = vrot.slane %v111_v58, %v5658_v57  ;;  %v4457_v4 = vrot.slane %v111_v58, %v5657_v63  ;;  %v5664_v36 = vsub.s32 1, %v4435_v56 }
  0x42   :  { %547 = vmatprep.subr.bf16.mxu1 %v4267_v14  ;;  %655 = vmatpush1.bf16.msra.mxu0 %v4250_v9  ;;  %v4400_v50 = vld [vmem:[#allocation2 + $0x48] ss:$16 sps:$4 sm:$0xff]   ;;  %v4403_v51 = vld [vmem:[#allocation2 + $0x2c] ss:$16 sps:$4 sm:$0xff]  }
  0x43   :  { %231 = vmatprep.mubr.bf16.mxu0 %v5660_v0  ;;  %656 = vmatprep.subr.bf16.mxu0 %v4253_v10  ;;  %v4406_v52 = vld [vmem:[#allocation2 + $0x28] ss:$16 sps:$4 sm:$0xff]   ;;  %v4409_v53 = vld [vmem:[#allocation2 + $0xc] ss:$16 sps:$4 sm:$0xff]  }
  0x44   :  { %3302 = vmatmul.mubr.msk.bf16.gmra.mxu1 %vm173_vm0, %v99_v15  ;;  %v4412_v54 = vld [vmem:[#allocation2 + $0x8] ss:$16 sps:$4 sm:$0xff]  }
  0x45   :  { %548 = vmatpush1.bf16.msra.mxu1 %v4273_v17  ;;  %322 = vmatprep.mubr.bf16.mxu1 %v5660_v0 }
  0x46   :  { %549 = vmatprep.subr.bf16.mxu1 %v4279_v19  ;;  %657 = vmatpush1.bf16.msra.mxu0 %v4257_v11 }
  0x47   :  { %658 = vmatprep.subr.bf16.mxu0 %v4267_v14 }
  0x49   :  { %550 = vmatpush1.bf16.msra.mxu1 %v4296_v24  ;;  %3297 = vmatmul.mubr.msk.bf16.gmra.mxu0 %vm173_vm0, %v99_v15  ;;  %v5659_v15 = vsub.s32 0, %v4435_v56 }
  0x4a   :  { %551 = vmatprep.subr.bf16.mxu1 %v4299_v25  ;;  %241 = vmatprep.mubr.bf16.mxu0 %v5660_v0 }
  0x4b   :  { %659 = vmatpush1.bf16.msra.mxu0 %v4273_v17 }
  0x4c   :  { %3303 = vmatmul.mubr.msk.bf16.gmra.mxu1 %vm173_vm0, %v100_v26  ;;  %660 = vmatprep.subr.bf16.mxu0 %v4279_v19 }
  0x4d   :  { %552 = vmatpush1.bf16.msra.mxu1 %v4303_v27  ;;  %332 = vmatprep.mubr.bf16.mxu1 %v5660_v0 }
  0x4e   :  { %553 = vmatprep.subr.bf16.mxu1 %v4306_v28 }
  0x4f   :  { %661 = vmatpush1.bf16.msra.mxu0 %v4296_v24 }
  0x50   :  { %662 = vmatprep.subr.bf16.mxu0 %v4299_v25 }
  0x51   :  { %554 = vmatpush1.bf16.msra.mxu1 %v4321_v31  ;;  %3298 = vmatmul.mubr.msk.bf16.gmra.mxu0 %vm173_vm0, %v100_v26  ;;  %v116_v26 = vrot.slane %v111_v58, %v5659_v15 }
  0x52   :  { %555 = vmatprep.subr.bf16.mxu1 %v4324_v32  ;;  %251 = vmatprep.mubr.bf16.mxu0 %v5660_v0 }
  0x53   :  { %663 = vmatpush1.bf16.msra.mxu0 %v4303_v27 }
  0x54   :  { %3304 = vmatmul.mubr.msk.bf16.gmra.mxu1 %vm173_vm0, %v101_v34  ;;  %664 = vmatprep.subr.bf16.mxu0 %v4306_v28 }
  0x55   :  { %342 = vmatprep.mubr.bf16.mxu1 %v5660_v0  ;;  %556 = vmatpush1.bf16.msra.mxu1 %v4326_v33 }
  0x56   :  { %557 = vmatprep.subr.bf16.mxu1 %v4329_v35 }
  0x57   :  { %665 = vmatpush1.bf16.msra.mxu0 %v4321_v31 }
  0x58   :  { %666 = vmatprep.subr.bf16.mxu0 %v4324_v32 }
  0x59   :  { %558 = vmatpush1.bf16.msra.mxu1 %v4338_v37  ;;  %3299 = vmatmul.mubr.msk.bf16.gmra.mxu0 %vm173_vm0, %v101_v34 }
  0x5a   :  { %584 = vmatprep.subr.bf16.mxu1 %v4343_v38  ;;  %261 = vmatprep.mubr.bf16.mxu0 %v5660_v0 }
  0x5b   :  { %667 = vmatpush1.bf16.msra.mxu0 %v4326_v33 }
  0x5c   :  { %3305 = vmatmul.mubr.msk.bf16.gmra.mxu1 %vm173_vm0, %v102_v39  ;;  %668 = vmatprep.subr.bf16.mxu0 %v4329_v35 }
  0x5d   :  { %575 = vmatprep.mubr.bf16.mxu1 %v5660_v0 }
  0x5f   :  { %669 = vmatpush1.bf16.msra.mxu0 %v4338_v37 }
  0x60   :  { %765 = vmatprep.subr.bf16.mxu0 %v4248_v7 }
  0x61   :  { %3300 = vmatmul.mubr.msk.bf16.gmra.mxu0 %vm173_vm0, %v102_v39 }
  0x62   :  { %686 = vmatprep.mubr.bf16.mxu0 %v5660_v0 }
  0x64   :  { %576 = vmatmul.mubr.bf16.vlgmr.msra.gmra.mxu1 %v5660_v0 }
  0x65   :  { %585 = vmatpush1.bf16.msra.mxu1 %v4359_v40  ;;  %616 = vmatprep.mubr.bf16.mxu1 %v5660_v0 }
  0x66   :  { %586 = vmatprep.subr.bf16.mxu1 %v4362_v41 }
  0x69   :  { %587 = vmatpush1.bf16.msra.mxu1 %v4366_v42 }
  0x6a   :  { %588 = vmatprep.subr.bf16.mxu1 %v4371_v43 }
  0x6d   :  { %589 = vmatpush1.bf16.msra.mxu1 %v4377_v44 }
  0x6e   :  { %590 = vmatprep.subr.bf16.mxu1 %v4383_v45 }
  0x71   :  { %591 = vmatpush1.bf16.msra.mxu1 %v4388_v46 }
  0x72   :  { %592 = vmatprep.subr.bf16.mxu1 %v4391_v47 }
  0x75   :  { %593 = vmatpush1.bf16.msra.mxu1 %v4394_v48 }
  0x76   :  { %594 = vmatprep.subr.bf16.mxu1 %v4397_v49 }
  0x79   :  { %595 = vmatpush1.bf16.msra.mxu1 %v4400_v50 }
  0x7a   :  { %596 = vmatprep.subr.bf16.mxu1 %v4403_v51 }
  0x7d   :  { %597 = vmatpush1.bf16.msra.mxu1 %v4406_v52 }
  0x7e   :  { %598 = vmatprep.subr.bf16.mxu1 %v4409_v53 }
  0x81   :  { %599 = vmatpush1.bf16.msra.mxu1 %v4412_v54 }
  0x82   :  { %695 = vmatprep.subr.bf16.mxu1 %v4343_v38 }
  0x84   :  { %617 = vmatmul.mubr.bf16.vlgmr.msra.gmra.mxu1 %v5660_v0 }
  0x85   :  { %696 = vmatpush1.bf16.msra.mxu1 %v4359_v40  ;;  %727 = vmatprep.mubr.bf16.mxu1 %v5660_v0 }
  0x86   :  { %697 = vmatprep.subr.bf16.mxu1 %v4362_v41 }
  0x89   :  { %698 = vmatpush1.bf16.msra.mxu1 %v4366_v42 }
  0x8a   :  { %699 = vmatprep.subr.bf16.mxu1 %v4371_v43 }
  0x8d   :  { %700 = vmatpush1.bf16.msra.mxu1 %v4377_v44 }
  0x8e   :  { %701 = vmatprep.subr.bf16.mxu1 %v4383_v45 }
  0x91   :  { %702 = vmatpush1.bf16.msra.mxu1 %v4388_v46 }
  0x92   :  { %703 = vmatprep.subr.bf16.mxu1 %v4391_v47 }
  0x95   :  { %704 = vmatpush1.bf16.msra.mxu1 %v4394_v48 }
  0x96   :  { %705 = vmatprep.subr.bf16.mxu1 %v4397_v49 }
  0x99   :  { %706 = vmatpush1.bf16.msra.mxu1 %v4400_v50 }
  0x9a   :  { %707 = vmatprep.subr.bf16.mxu1 %v4403_v51 }
  0x9d   :  { %708 = vmatpush1.bf16.msra.mxu1 %v4406_v52 }
  0x9e   :  { %709 = vmatprep.subr.bf16.mxu1 %v4409_v53 }
  0xa1   :  { %710 = vmatpush1.bf16.msra.mxu1 %v4412_v54 }
  0xa2   :  { %806 = vmatprep.subr.bf16.mxu1 %v4343_v38 }
  0xfc   :  { %v4441_v59 = vpop.f32.mrf.mxu1 }
  0xfe   :  { %v4443_v60 = vpop.f32.mrf.mxu1 }
 0x100   :  { %v308_v62 = vpop.f32.mrf.mxu1 }
 0x101   :  { %v4451_v1 = vadd.f32 %v308_v62, %v4447_v61  ;;  %v223_v18 = vpop.f32.mrf.mxu0 }
 0x102   :  { %v4453_v2 = vpop.f32.mrf.mxu1 }
 0x103   :  { %v225_v22 = vpop.f32.mrf.mxu0 }
 0x104   :  { %v314_v3 = vpop.f32.mrf.mxu1 }
 0x105   :  { %v4460_v5 = vadd.f32 %v314_v3, %v4447_v61  ;;  %v227_v30 = vpop.f32.mrf.mxu0 }
 0x106   :  { %v316_v6 = vpop.f32.mrf.mxu1  ;;  %v4481_v39 = vadd.f32 %v227_v30, %v116_v26 }
 0x107   :  { %v4463_v8 = vadd.f32 %v316_v6, %v4457_v4  ;;  %v4483_v62 = vpop.f32.mrf.mxu0 }
 0x108   :  { %v318_v12 = vpop.f32.mrf.mxu1 }
 0x109   :  { %5666 = vst [vmem:[#allocation16_spill] sm:$0xff] %v4463_v8  ;;  %v4466_v13 = vadd.f32 %v318_v12, %v4447_v61  ;;  %v233_v12 = vpop.f32.mrf.mxu0 }
 0x10a   :  { %v320_v16 = vpop.f32.mrf.mxu1 }
 0x10b   :  { %5667 = vst [vmem:[#allocation17_spill] sm:$0xff] %v4466_v13  ;;  %v4470_v20 = vadd.f32 %v320_v16, %v4457_v4  ;;  %v235_v30 = vpop.f32.mrf.mxu0 }
 0x10c   :  { %v324_v21 = vpop.f32.mrf.mxu1 }
 0x10d   :  { %5668 = vst [vmem:[#allocation18_spill] sm:$0xff] %v4470_v20  ;;  %v4473_v23 = vadd.f32 %v324_v21, %v4447_v61  ;;  %v4493_v21 = vrot.slane %v111_v58, %v5664_v36  ;;  %v237_v0 = vpop.f32.mrf.mxu0 }
 0x10e   :  { %v326_v29 = vpop.f32.mrf.mxu1 }
 0x10f   :  { %5669 = vst [vmem:[#allocation19_spill] sm:$0xff] %v4473_v23  ;;  %v4478_v34 = vadd.f32 %v326_v29, %v4457_v4  ;;  %v4495_v29 = vadd.f32 %v233_v12, %v116_v26  ;;  %v4501_v15 = vadd.f32 %v235_v30, %v4493_v21  ;;  %v4508_v58 = vpop.f32.mrf.mxu0 }
 0x110   :  { %v328_v55 = vpop.f32.mrf.mxu1  ;;  %5676 = vst [vmem:[#allocation26_spill] sm:$0xff] %v4508_v58 }
 0x111   :  { %5670 = vst [vmem:[#allocation20_spill] sm:$0xff] %v4478_v34  ;;  %v4486_v3 = vadd.f32 %v328_v55, %v4447_v61 }
 0x112   :  { %v330_v6 = vpop.f32.mrf.mxu1 }
 0x113   :  { %5671 = vst [vmem:[#allocation21_spill] sm:$0xff] %v4486_v3  ;;  %v4489_v16 = vadd.f32 %v330_v6, %v4457_v4  ;;  %v4506_v6 = vadd.f32 %v237_v0, %v116_v26 }
 0x114   :  { %v334_v63 = vpop.f32.mrf.mxu1 }
 0x115   :  { %5672 = vst [vmem:[#allocation22_spill] sm:$0xff] %v4489_v16  ;;  %v4498_v57 = vadd.f32 %v334_v63, %v4447_v61  ;;  %5675 = vst [vmem:[#allocation25_spill] sm:$0xff] %v4506_v6  ;;  %v243_v16 = vpop.f32.mrf.mxu0  ;;  %v224_v6 = vadd.f32 %v223_v18, %v116_v26 }
 0x116   :  { %v336_v55 = vpop.f32.mrf.mxu1  ;;  %v4516_v30 = vadd.f32 %v243_v16, %v116_v26 }
 0x117   :  { %5673 = vst [vmem:[#allocation23_spill] sm:$0xff] %v4498_v57  ;;  %v4504_v3 = vadd.f32 %v336_v55, %v4457_v4  ;;  %v245_v34 = vpop.f32.mrf.mxu0 }
 0x118   :  { %v338_v56 = vpop.f32.mrf.mxu1  ;;  %5679 = vst [vmem:[#allocation29_spill] sm:$0xff] %v4516_v30  ;;  %v4522_v0 = vadd.f32 %v245_v34, %v4493_v21 }
 0x119   :  { %5674 = vst [vmem:[#allocation24_spill] sm:$0xff] %v4504_v3  ;;  %v4511_v12 = vadd.f32 %v338_v56, %v4447_v61  ;;  %v247_v23 = vpop.f32.mrf.mxu0 }
 0x11a   :  { %v340_v36 = vpop.f32.mrf.mxu1  ;;  %5681 = vst [vmem:[#allocation31_spill] sm:$0xff] %v4522_v0 }
 0x11b   :  { %5677 = vst [vmem:[#allocation27_spill] sm:$0xff] %v4511_v12  ;;  %v4514_v63 = vadd.f32 %v340_v36, %v4457_v4  ;;  %v4527_v12 = vadd.f32 %v247_v23, %v116_v26  ;;  %v4529_v36 = vpop.f32.mrf.mxu0  ;;  %v226_v23 = vadd.f32 %v225_v22, %v4493_v21 }
 0x11c   :  { %v344_v57 = vpop.f32.mrf.mxu1  ;;  %5684 = vst [vmem:[#allocation34_spill] sm:$0xff] %v4529_v36 }
 0x11d   :  { %5678 = vst [vmem:[#allocation28_spill] sm:$0xff] %v4514_v63  ;;  %v4519_v55 = vadd.f32 %v344_v57, %v4447_v61  ;;  %5683 = vst [vmem:[#allocation33_spill] sm:$0xff] %v4527_v12  ;;  %v253_v63 = vpop.f32.mrf.mxu0 }
 0x11e   :  { %v346_v3 = vpop.f32.mrf.mxu1  ;;  %v4531_v30 = vadd.f32 %v253_v63, %v116_v26 }
 0x11f   :  { %5680 = vst [vmem:[#allocation30_spill] sm:$0xff] %v4519_v55  ;;  %v4525_v56 = vadd.f32 %v346_v3, %v4457_v4  ;;  %v255_v57 = vpop.f32.mrf.mxu0 }
 0x120   :  { %v348_v20 = vpop.f32.mrf.mxu1  ;;  %5685 = vst [vmem:[#allocation35_spill] sm:$0xff] %v4531_v30  ;;  %v4534_v55 = vadd.f32 %v255_v57, %v4493_v21 }
 0x121   :  { %5682 = vst [vmem:[#allocation32_spill] sm:$0xff] %v4525_v56  ;;  %v257_v0 = vpop.f32.mrf.mxu0 }
 0x122   :  { %v349_v16 = vpop.f32.mrf.mxu1  ;;  %5686 = vst [vmem:[#allocation36_spill] sm:$0xff] %v4534_v55  ;;  %v4536_v58 = vadd.f32 %v257_v0, %v116_v26 }
 0x123   :  { %v4539_v20 = vpop.f32.mrf.mxu0 }
 0x124   :  { %v577_v13 = vpop.f32.mrf.mxu1  ;;  %5687 = vst [vmem:[#allocation37_spill] sm:$0xff] %v4536_v58 }
 0x125   :  { %v263_v16 = vpop.f32.mrf.mxu0  ;;  %v625_v12 = vadd.f32 %v577_v13, %v224_v6  ;;  %v307_v6 = vadd.f32 %v4443_v60, %v4457_v4 }
 0x126   :  { %v579_v34 = vpop.f32.mrf.mxu1  ;;  %v4541_v63 = vadd.f32 %v263_v16, %v116_v26 }
 0x127   :  { %v626_v30 = vadd.f32 %v579_v34, %v226_v23  ;;  %v265_v36 = vpop.f32.mrf.mxu0  ;;  %v3338_v8 = vmul.f32 -1.442695, %v625_v12 }
 0x128   :  { %v581_v3 = vpop.f32.mrf.mxu1  ;;  %v4544_v57 = vadd.f32 %v265_v36, %v4493_v21 }
 0x129   :  { %v267_v55 = vpop.f32.mrf.mxu0  ;;  %v3339_v18 = vmul.f32 -1.442695, %v626_v30  ;;  %3692 = vpow2.f32 %v3338_v8 }
 0x12a   :  { %v582_v56 = vpop.f32.mrf.mxu1 }
 0x12b   :  { %v268_v0 = vpop.f32.mrf.mxu0  ;;  %3694 = vpow2.f32 %v3339_v18  ;;  %v305_v56 = vadd.f32 %v4441_v59, %v4447_v61 }
 0x136   :  { %v3693_v22 = vpop.eup %3692 }
 0x137   :  { %v638_v58 = vadd.f32 1.0, %v3693_v22 }
 0x138   :  { %v3695_v3 = vpop.eup %3694 }
 0x139   :  { %v639_v13 = vadd.f32 1.0, %v3695_v3  ;;  %3696 = vrcp.f32 %v638_v58 }
 0x13b   :  { %3698 = vrcp.f32 %v639_v13 }
 0x144   :  { %v618_v26 = vpop.f32.mrf.mxu1 }
 0x145   :  { %v627_v34 = vadd.f32 %v618_v26, %v305_v56  ;;  %v5688_v26 = vmov 0  }
 0x146   :  { %v620_v36 = vpop.f32.mrf.mxu1  ;;  %v3697_v23 = vpop.eup %3696 }
 0x147   :  { %v3340_v55 = vmul.f32 -1.442695, %v627_v34  ;;  %v628_v12 = vadd.f32 %v620_v36, %v307_v6  ;;  %v230_v36 = vadd.f32 %v4483_v62, %v4493_v21 }
 0x148   :  { %v622_v30 = vpop.f32.mrf.mxu1  ;;  %v3699_v16 = vpop.eup %3698 }
 0x149   :  { %3700 = vpow2.f32 %v3340_v55  ;;  %v648_v0 = vmul.f32 0.0, %v3699_v16 }
 0x14a   :  { %3702 = vtanh.f32 %v628_v12  ;;  %v623_v8 = vpop.f32.mrf.mxu1 }
 0x156   :  { %v3701_v18 = vpop.eup %3700 }
 0x157   :  { %v3703_v59 = vpop.eup %3702  ;;  %v640_v61 = vadd.f32 1.0, %v3701_v18 }
 0x158   :  { %v649_v22 = vmul.f32 %v3703_v59, %v3697_v23 }
 0x159   :  { %3704 = vrcp.f32 %v640_v61 }
 0x15a   :  { %v4550_v3 = vadd.f32 %v649_v22, %v648_v0 }
 0x15c   :  { %3706 = vtanh.f32 %v4550_v3 }
 0x166   :  { %v3705_v60 = vpop.eup %3704 }
 0x169   :  { %v3707_v58 = vpop.eup %3706 }
 0x16a   :  { %v4553_v56 = vmul.f32 %v3707_v58, %v3705_v60  ;;  %v311_v60 = vadd.f32 %v4453_v2, %v4457_v4 }
 0x16c   :  { %v653_v13 = vpack.c.bf16 %v4553_v56, %v4553_v56 }
 0x16e   :  { %687 = vmatmul.mubr.bf16.vlgmr.msra.gmra.mxu0 %v653_v13  ;;  %728 = vmatmul.mubr.bf16.vlgmr.msra.gmra.mxu1 %v653_v13 }
 0x16f   :  { %766 = vmatpush1.bf16.msra.mxu0 %v4250_v9  ;;  %807 = vmatpush1.bf16.msra.mxu1 %v4359_v40 }
 0x170   :  { %767 = vmatprep.subr.bf16.mxu0 %v4253_v10  ;;  %808 = vmatprep.subr.bf16.mxu1 %v4362_v41 }
 0x171   :  { %797 = vmatprep.mubr.bf16.mxu0 %v5688_v26  ;;  %838 = vmatprep.mubr.bf16.mxu1 %v5688_v26 }
 0x173   :  { %768 = vmatpush1.bf16.msra.mxu0 %v4257_v11  ;;  %809 = vmatpush1.bf16.msra.mxu1 %v4366_v42 }
 0x174   :  { %769 = vmatprep.subr.bf16.mxu0 %v4267_v14  ;;  %810 = vmatprep.subr.bf16.mxu1 %v4371_v43 }
 0x177   :  { %770 = vmatpush1.bf16.msra.mxu0 %v4273_v17  ;;  %811 = vmatpush1.bf16.msra.mxu1 %v4377_v44 }
 0x178   :  { %771 = vmatprep.subr.bf16.mxu0 %v4279_v19  ;;  %812 = vmatprep.subr.bf16.mxu1 %v4383_v45 }
 0x17b   :  { %772 = vmatpush1.bf16.msra.mxu0 %v4296_v24  ;;  %813 = vmatpush1.bf16.msra.mxu1 %v4388_v46 }
 0x17c   :  { %773 = vmatprep.subr.bf16.mxu0 %v4299_v25  ;;  %814 = vmatprep.subr.bf16.mxu1 %v4391_v47 }
 0x17f   :  { %774 = vmatpush1.bf16.msra.mxu0 %v4303_v27  ;;  %815 = vmatpush1.bf16.msra.mxu1 %v4394_v48 }
 0x180   :  { %775 = vmatprep.subr.bf16.mxu0 %v4306_v28  ;;  %816 = vmatprep.subr.bf16.mxu1 %v4397_v49 }
 0x183   :  { %776 = vmatpush1.bf16.msra.mxu0 %v4321_v31  ;;  %817 = vmatpush1.bf16.msra.mxu1 %v4400_v50 }
 0x184   :  { %777 = vmatprep.subr.bf16.mxu0 %v4324_v32  ;;  %818 = vmatprep.subr.bf16.mxu1 %v4403_v51 }
 0x187   :  { %778 = vmatpush1.bf16.msra.mxu0 %v4326_v33  ;;  %819 = vmatpush1.bf16.msra.mxu1 %v4406_v52 }
 0x188   :  { %779 = vmatprep.subr.bf16.mxu0 %v4329_v35  ;;  %820 = vmatprep.subr.bf16.mxu1 %v4409_v53 }
 0x18b   :  { %780 = vmatpush1.bf16.msra.mxu0 %v4338_v37  ;;  %821 = vmatpush1.bf16.msra.mxu1 %v4412_v54 }
 0x18c   :  { %876 = vmatprep.subr.bf16.mxu0 %v4248_v7  ;;  %917 = vmatprep.subr.bf16.mxu1 %v4343_v38 }
 0x22e   :  { %v688_v6 = vpop.f32.mrf.mxu0  ;;  %v729_v34 = vpop.f32.mrf.mxu1 }
 0x22f   :  { %v736_v55 = vadd.f32 %v688_v6, %v4481_v39  ;;  %v738_v22 = vadd.f32 %v729_v34, %v4451_v1 }
 0x230   :  { %v690_v12 = vpop.f32.mrf.mxu0  ;;  %v731_v30 = vpop.f32.mrf.mxu1 }
 0x231   :  { %v3341_v8 = vmul.f32 -1.442695, %v736_v55  ;;  %v737_v23 = vadd.f32 %v690_v12, %v230_v36  ;;  %v3343_v58 = vmul.f32 -1.442695, %v738_v22  ;;  %v739_v62 = vadd.f32 %v731_v30, %v311_v60 }
 0x232   :  { %v692_v16 = vpop.f32.mrf.mxu0  ;;  %v733_v18 = vpop.f32.mrf.mxu1 }
 0x233   :  { %3708 = vpow2.f32 %v3341_v8  ;;  %v3342_v59 = vmul.f32 -1.442695, %v737_v23 }
 0x234   :  { %v693_v61 = vpop.f32.mrf.mxu0  ;;  %v734_v0 = vpop.f32.mrf.mxu1 }
 0x235   :  { %3710 = vpow2.f32 %v3342_v59 }
 0x236   :  { %3712 = vpow2.f32 %v3343_v58 }
 0x237   :  { %3714 = vtanh.f32 %v739_v62 }
 0x240   :  { %v3709_v13 = vpop.eup %3708 }
 0x241   :  { %v749_v39 = vadd.f32 1.0, %v3709_v13 }
 0x242   :  { %v3711_v6 = vpop.eup %3710 }
 0x243   :  { %3716 = vrcp.f32 %v749_v39  ;;  %v750_v36 = vadd.f32 1.0, %v3711_v6  ;;  %v3713_v55 = vpop.eup %3712  ;;  %v5689_v6 = vld [vmem:[#allocation16_spill] sm:$0xff] }
 0x244   :  { %v3715_v12 = vpop.eup %3714  ;;  %v751_v18 = vadd.f32 1.0, %v3713_v55 }
 0x245   :  { %3718 = vrcp.f32 %v750_v36 }
 0x246   :  { %3720 = vrcp.f32 %v751_v18 }
 0x250   :  { %v3717_v8 = vpop.eup %3716 }
 0x251   :  { %v760_v23 = vmul.f32 %v3717_v8, %v3715_v12 }
 0x252   :  { %v3719_v16 = vpop.eup %3718 }
 0x253   :  { %v759_v1 = vmul.f32 %v3719_v16, %v4550_v3  ;;  %v3721_v2 = vpop.eup %3720 }
 0x255   :  { %v4598_v34 = vadd.f32 %v760_v23, %v759_v1 }
 0x257   :  { %3722 = vtanh.f32 %v4598_v34 }
 0x264   :  { %v3723_v4 = vpop.eup %3722 }
 0x265   :  { %v4601_v30 = vmul.f32 %v3723_v4, %v3721_v2 }
 0x267   :  { %v764_v59 = vpack.c.bf16 %v4601_v30, %v4601_v30 }
 0x269   :  { %798 = vmatmul.mubr.bf16.vlgmr.msra.gmra.mxu0 %v764_v59  ;;  %839 = vmatmul.mubr.bf16.vlgmr.msra.gmra.mxu1 %v764_v59 }
 0x26a   :  { %877 = vmatpush1.bf16.msra.mxu0 %v4250_v9  ;;  %918 = vmatpush1.bf16.msra.mxu1 %v4359_v40 }
 0x26b   :  { %878 = vmatprep.subr.bf16.mxu0 %v4253_v10  ;;  %919 = vmatprep.subr.bf16.mxu1 %v4362_v41 }
 0x26c   :  { %908 = vmatprep.mubr.bf16.mxu0 %v5688_v26  ;;  %949 = vmatprep.mubr.bf16.mxu1 %v5688_v26 }
 0x26e   :  { %879 = vmatpush1.bf16.msra.mxu0 %v4257_v11  ;;  %920 = vmatpush1.bf16.msra.mxu1 %v4366_v42 }
 0x26f   :  { %880 = vmatprep.subr.bf16.mxu0 %v4267_v14  ;;  %921 = vmatprep.subr.bf16.mxu1 %v4371_v43 }
 0x272   :  { %881 = vmatpush1.bf16.msra.mxu0 %v4273_v17  ;;  %922 = vmatpush1.bf16.msra.mxu1 %v4377_v44 }
 0x273   :  { %882 = vmatprep.subr.bf16.mxu0 %v4279_v19  ;;  %923 = vmatprep.subr.bf16.mxu1 %v4383_v45 }
 0x276   :  { %883 = vmatpush1.bf16.msra.mxu0 %v4296_v24  ;;  %924 = vmatpush1.bf16.msra.mxu1 %v4388_v46 }
 0x277   :  { %884 = vmatprep.subr.bf16.mxu0 %v4299_v25  ;;  %925 = vmatprep.subr.bf16.mxu1 %v4391_v47 }
 0x27a   :  { %885 = vmatpush1.bf16.msra.mxu0 %v4303_v27  ;;  %926 = vmatpush1.bf16.msra.mxu1 %v4394_v48 }
 0x27b   :  { %886 = vmatprep.subr.bf16.mxu0 %v4306_v28  ;;  %927 = vmatprep.subr.bf16.mxu1 %v4397_v49 }
 0x27e   :  { %887 = vmatpush1.bf16.msra.mxu0 %v4321_v31  ;;  %928 = vmatpush1.bf16.msra.mxu1 %v4400_v50 }
 0x27f   :  { %888 = vmatprep.subr.bf16.mxu0 %v4324_v32  ;;  %929 = vmatprep.subr.bf16.mxu1 %v4403_v51 }
 0x282   :  { %889 = vmatpush1.bf16.msra.mxu0 %v4326_v33  ;;  %930 = vmatpush1.bf16.msra.mxu1 %v4406_v52 }
 0x283   :  { %890 = vmatprep.subr.bf16.mxu0 %v4329_v35  ;;  %931 = vmatprep.subr.bf16.mxu1 %v4409_v53 }
 0x286   :  { %891 = vmatpush1.bf16.msra.mxu0 %v4338_v37  ;;  %932 = vmatpush1.bf16.msra.mxu1 %v4412_v54 }
 0x287   :  { %987 = vmatprep.subr.bf16.mxu0 %v4248_v7  ;;  %1028 = vmatprep.subr.bf16.mxu1 %v4343_v38 }
 0x329   :  { %v799_v9 = vpop.f32.mrf.mxu0  ;;  %v840_v10 = vpop.f32.mrf.mxu1 }
 0x32a   :  { %v847_v11 = vadd.f32 %v799_v9, %v4495_v29  ;;  %v849_v7 = vadd.f32 %v840_v10, %v4460_v5 }
 0x32b   :  { %v801_v14 = vpop.f32.mrf.mxu0  ;;  %v842_v3 = vpop.f32.mrf.mxu1 }
 0x32c   :  { %v3344_v61 = vmul.f32 -1.442695, %v847_v11  ;;  %v848_v0 = vadd.f32 %v801_v14, %v4501_v15  ;;  %v3346_v39 = vmul.f32 -1.442695, %v849_v7  ;;  %v850_v36 = vadd.f32 %v842_v3, %v5689_v6  ;;  %v4651_v14 = vld [vmem:[#allocation2 + $0xe0] ss:$16 sps:$4 sm:$0xff]  }
 0x32d   :  { %v803_v22 = vpop.f32.mrf.mxu0  ;;  %v844_v60 = vpop.f32.mrf.mxu1  ;;  %v4661_v3 = vld [vmem:[#allocation2 + $0xc0] ss:$16 sps:$4 sm:$0xff]  }
 0x32e   :  { %3724 = vpow2.f32 %v3344_v61  ;;  %v3345_v58 = vmul.f32 -1.442695, %v848_v0  ;;  %v4665_v61 = vld [vmem:[#allocation2 + $0xa4] ss:$16 sps:$4 sm:$0xff]  }
 0x32f   :  { %v804_v62 = vpop.f32.mrf.mxu0  ;;  %v845_v13 = vpop.f32.mrf.mxu1 }
 0x330   :  { %3726 = vpow2.f32 %v3345_v58  ;;  %v5692_v13 = vld [vmem:[#allocation17_spill] sm:$0xff] }
 0x331   :  { %3728 = vpow2.f32 %v3346_v39  ;;  %v5693_v39 = vld [vmem:[#allocation18_spill] sm:$0xff] }
 0x332   :  { %3730 = vtanh.f32 %v850_v36 }
 0x33b   :  { %v3725_v55 = vpop.eup %3724 }
 0x33c   :  { %v860_v12 = vadd.f32 1.0, %v3725_v55 }
 0x33d   :  { %v3727_v29 = vpop.eup %3726 }
 0x33e   :  { %3732 = vrcp.f32 %v860_v12  ;;  %v861_v8 = vadd.f32 1.0, %v3727_v29  ;;  %v3729_v15 = vpop.eup %3728 }
 0x33f   :  { %v3731_v23 = vpop.eup %3730  ;;  %v862_v2 = vadd.f32 1.0, %v3729_v15 }
 0x340   :  { %3734 = vrcp.f32 %v861_v8 }
 0x341   :  { %3736 = vrcp.f32 %v862_v2 }
 0x34b   :  { %v3733_v16 = vpop.eup %3732 }
 0x34c   :  { %v871_v18 = vmul.f32 %v3733_v16, %v3731_v23 }
 0x34d   :  { %v3735_v1 = vpop.eup %3734 }
 0x34e   :  { %v870_v4 = vmul.f32 %v3735_v1, %v4598_v34  ;;  %v3737_v59 = vpop.eup %3736  ;;  %v4655_v34 = vld [vmem:[#allocation2 + $0xc4] ss:$16 sps:$4 sm:$0xff]  }
 0x350   :  { %v4644_v5 = vadd.f32 %v871_v18, %v870_v4 }
 0x352   :  { %3738 = vtanh.f32 %v4644_v5 }
 0x35f   :  { %v3739_v9 = vpop.eup %3738 }
 0x360   :  { %v4647_v10 = vmul.f32 %v3739_v9, %v3737_v59 }
 0x362   :  { %v875_v11 = vpack.c.bf16 %v4647_v10, %v4647_v10 }
 0x364   :  { %909 = vmatmul.mubr.bf16.vlgmr.msra.gmra.mxu0 %v875_v11  ;;  %950 = vmatmul.mubr.bf16.vlgmr.msra.gmra.mxu1 %v875_v11 }
 0x365   :  { %988 = vmatpush1.bf16.msra.mxu0 %v4651_v14  ;;  %1029 = vmatpush1.bf16.msra.mxu1 %v4359_v40 }
 0x366   :  { %989 = vmatprep.subr.bf16.mxu0 %v4655_v34  ;;  %1030 = vmatprep.subr.bf16.mxu1 %v4362_v41 }
 0x367   :  { %1019 = vmatprep.mubr.bf16.mxu0 %v5688_v26  ;;  %1060 = vmatprep.mubr.bf16.mxu1 %v5688_v26 }
 0x369   :  { %990 = vmatpush1.bf16.msra.mxu0 %v4661_v3  ;;  %1031 = vmatpush1.bf16.msra.mxu1 %v4366_v42 }
 0x36a   :  { %991 = vmatprep.subr.bf16.mxu0 %v4665_v61  ;;  %1032 = vmatprep.subr.bf16.mxu1 %v4371_v43 }
 0x36d   :  { %992 = vmatpush1.bf16.msra.mxu0 %v4273_v17  ;;  %1033 = vmatpush1.bf16.msra.mxu1 %v4377_v44  ;;  %v4691_v17 = vld [vmem:[#allocation2 + $0xe4] ss:$16 sps:$4 sm:$0xff]  }
 0x36e   :  { %993 = vmatprep.subr.bf16.mxu0 %v4279_v19  ;;  %1034 = vmatprep.subr.bf16.mxu1 %v4383_v45 }
 0x371   :  { %994 = vmatpush1.bf16.msra.mxu0 %v4296_v24  ;;  %1035 = vmatpush1.bf16.msra.mxu1 %v4388_v46 }
 0x372   :  { %995 = vmatprep.subr.bf16.mxu0 %v4299_v25  ;;  %1036 = vmatprep.subr.bf16.mxu1 %v4391_v47  ;;  %v5690_v25 = vld [vmem:[#allocation26_spill] sm:$0xff] }
 0x375   :  { %996 = vmatpush1.bf16.msra.mxu0 %v4303_v27  ;;  %1037 = vmatpush1.bf16.msra.mxu1 %v4394_v48  ;;  %v240_v27 = vadd.f32 %v5690_v25, %v4493_v21  ;;  %v4738_v25 = vld [vmem:[#allocation2 + $0x44] ss:$16 sps:$4 sm:$0xff]  }
 0x376   :  { %997 = vmatprep.subr.bf16.mxu0 %v4306_v28  ;;  %1038 = vmatprep.subr.bf16.mxu1 %v4397_v49  ;;  %v5691_v28 = vld [vmem:[#allocation25_spill] sm:$0xff] }
 0x379   :  { %998 = vmatpush1.bf16.msra.mxu0 %v4321_v31  ;;  %1039 = vmatpush1.bf16.msra.mxu1 %v4400_v50 }
 0x37a   :  { %999 = vmatprep.subr.bf16.mxu0 %v4324_v32  ;;  %1040 = vmatprep.subr.bf16.mxu1 %v4403_v51 }
 0x37d   :  { %1000 = vmatpush1.bf16.msra.mxu0 %v4326_v33  ;;  %1041 = vmatpush1.bf16.msra.mxu1 %v4406_v52 }
 0x37e   :  { %1001 = vmatprep.subr.bf16.mxu0 %v4329_v35  ;;  %1042 = vmatprep.subr.bf16.mxu1 %v4409_v53 }
 0x381   :  { %1002 = vmatpush1.bf16.msra.mxu0 %v4338_v37  ;;  %1043 = vmatpush1.bf16.msra.mxu1 %v4412_v54 }
 0x382   :  { %1098 = vmatprep.subr.bf16.mxu0 %v4691_v17  ;;  %1139 = vmatprep.subr.bf16.mxu1 %v4343_v38 }
 0x424   :  { %v910_v19 = vpop.f32.mrf.mxu0  ;;  %v951_v24 = vpop.f32.mrf.mxu1 }
 0x425   :  { %v958_v31 = vadd.f32 %v910_v19, %v5691_v28  ;;  %v960_v38 = vadd.f32 %v951_v24, %v5692_v13  ;;  %v4734_v24 = vld [vmem:[#allocation2 + $0x60] ss:$16 sps:$4 sm:$0xff]   ;;  %v4746_v28 = vld [vmem:[#allocation2 + $0x24] ss:$16 sps:$4 sm:$0xff]  }
 0x426   :  { %v912_v32 = vpop.f32.mrf.mxu0  ;;  %v953_v33 = vpop.f32.mrf.mxu1 }
 0x427   :  { %v3347_v35 = vmul.f32 -1.442695, %v958_v31  ;;  %v959_v0 = vadd.f32 %v912_v32, %v240_v27  ;;  %v3349_v7 = vmul.f32 -1.442695, %v960_v38  ;;  %v961_v6 = vadd.f32 %v953_v33, %v5693_v39  ;;  %v4742_v27 = vld [vmem:[#allocation2 + $0x40] ss:$16 sps:$4 sm:$0xff]  }
 0x428   :  { %v914_v37 = vpop.f32.mrf.mxu0  ;;  %v955_v22 = vpop.f32.mrf.mxu1  ;;  %v4750_v31 = vld [vmem:[#allocation2 + $0x20] ss:$16 sps:$4 sm:$0xff]   ;;  %v4754_v32 = vld [vmem:[#allocation2 + $0x4] ss:$16 sps:$4 sm:$0xff]   ;;  %v5695_v38 = vld [vmem:[#allocation31_spill] sm:$0xff] }
 0x429   :  { %3740 = vpow2.f32 %v3347_v35  ;;  %v3348_v60 = vmul.f32 -1.442695, %v959_v0  ;;  %v4758_v33 = vld [vmem:[#allocation2] ss:$16 sps:$4 sm:$0xff]   ;;  %v4763_v35 = vld [vmem:[#allocation2 + $0xec] ss:$16 sps:$4 sm:$0xff]  }
 0x42a   :  { %v915_v58 = vpop.f32.mrf.mxu0  ;;  %v956_v62 = vpop.f32.mrf.mxu1  ;;  %v5694_v22 = vld [vmem:[#allocation29_spill] sm:$0xff] }
 0x42b   :  { %3742 = vpow2.f32 %v3348_v60 }
 0x42c   :  { %3744 = vpow2.f32 %v3349_v7 }
 0x42d   :  { %3746 = vtanh.f32 %v961_v6 }
 0x436   :  { %v3741_v36 = vpop.eup %3740 }
 0x437   :  { %v971_v55 = vadd.f32 1.0, %v3741_v36 }
 0x438   :  { %v3743_v12 = vpop.eup %3742 }
 0x439   :  { %3748 = vrcp.f32 %v971_v55  ;;  %v972_v29 = vadd.f32 1.0, %v3743_v12  ;;  %v3745_v8 = vpop.eup %3744 }
 0x43a   :  { %v3747_v15 = vpop.eup %3746  ;;  %v973_v1 = vadd.f32 1.0, %v3745_v8 }
 0x43b   :  { %3750 = vrcp.f32 %v972_v29  ;;  %v5696_v29 = vld [vmem:[#allocation19_spill] sm:$0xff] }
 0x43c   :  { %3752 = vrcp.f32 %v973_v1 }
 0x446   :  { %v3749_v23 = vpop.eup %3748 }
 0x447   :  { %v982_v16 = vmul.f32 %v3749_v23, %v3747_v15  ;;  %v5697_v23 = vld [vmem:[#allocation20_spill] sm:$0xff] }
 0x448   :  { %v3751_v18 = vpop.eup %3750 }
 0x449   :  { %v981_v2 = vmul.f32 %v3751_v18, %v4644_v5  ;;  %v3753_v59 = vpop.eup %3752  ;;  %v4718_v5 = vld [vmem:[#allocation2 + $0xa0] ss:$16 sps:$4 sm:$0xff]  }
 0x44b   :  { %v4701_v4 = vadd.f32 %v982_v16, %v981_v2 }
 0x44d   :  { %3754 = vtanh.f32 %v4701_v4 }
 0x45a   :  { %v3755_v9 = vpop.eup %3754 }
 0x45b   :  { %v4704_v11 = vmul.f32 %v3755_v9, %v3753_v59 }
 0x45d   :  { %v986_v19 = vpack.c.bf16 %v4704_v11, %v4704_v11 }
 0x45f   :  { %1020 = vmatmul.mubr.bf16.vlgmr.msra.gmra.mxu0 %v986_v19  ;;  %1061 = vmatmul.mubr.bf16.vlgmr.msra.gmra.mxu1 %v986_v19 }
 0x460   :  { %1099 = vmatpush1.bf16.msra.mxu0 %v4651_v14  ;;  %1140 = vmatpush1.bf16.msra.mxu1 %v4359_v40  ;;  %v4722_v40 = vld [vmem:[#allocation2 + $0x84] ss:$16 sps:$4 sm:$0xff]  }
 0x461   :  { %1100 = vmatprep.subr.bf16.mxu0 %v4655_v34  ;;  %1141 = vmatprep.subr.bf16.mxu1 %v4362_v41  ;;  %v4726_v41 = vld [vmem:[#allocation2 + $0x80] ss:$16 sps:$4 sm:$0xff]  }
 0x462   :  { %1130 = vmatprep.mubr.bf16.mxu0 %v5688_v26  ;;  %1171 = vmatprep.mubr.bf16.mxu1 %v5688_v26 }
 0x464   :  { %1101 = vmatpush1.bf16.msra.mxu0 %v4661_v3  ;;  %1142 = vmatpush1.bf16.msra.mxu1 %v4366_v42  ;;  %v4730_v42 = vld [vmem:[#allocation2 + $0x64] ss:$16 sps:$4 sm:$0xff]  }
 0x465   :  { %1102 = vmatprep.subr.bf16.mxu0 %v4665_v61  ;;  %1143 = vmatprep.subr.bf16.mxu1 %v4371_v43 }
 0x468   :  { %1103 = vmatpush1.bf16.msra.mxu0 %v4718_v5  ;;  %1144 = vmatpush1.bf16.msra.mxu1 %v4377_v44 }
 0x469   :  { %1104 = vmatprep.subr.bf16.mxu0 %v4722_v40  ;;  %1145 = vmatprep.subr.bf16.mxu1 %v4383_v45 }
 0x46c   :  { %1105 = vmatpush1.bf16.msra.mxu0 %v4726_v41  ;;  %1146 = vmatpush1.bf16.msra.mxu1 %v4388_v46 }
 0x46d   :  { %1106 = vmatprep.subr.bf16.mxu0 %v4730_v42  ;;  %1147 = vmatprep.subr.bf16.mxu1 %v4391_v47 }
 0x470   :  { %1107 = vmatpush1.bf16.msra.mxu0 %v4734_v24  ;;  %1148 = vmatpush1.bf16.msra.mxu1 %v4394_v48 }
 0x471   :  { %1108 = vmatprep.subr.bf16.mxu0 %v4738_v25  ;;  %1149 = vmatprep.subr.bf16.mxu1 %v4397_v49 }
 0x474   :  { %1109 = vmatpush1.bf16.msra.mxu0 %v4742_v27  ;;  %1150 = vmatpush1.bf16.msra.mxu1 %v4400_v50 }
 0x475   :  { %1110 = vmatprep.subr.bf16.mxu0 %v4746_v28  ;;  %1151 = vmatprep.subr.bf16.mxu1 %v4403_v51 }
 0x478   :  { %1111 = vmatpush1.bf16.msra.mxu0 %v4750_v31  ;;  %1152 = vmatpush1.bf16.msra.mxu1 %v4406_v52 }
 0x479   :  { %1112 = vmatprep.subr.bf16.mxu0 %v4754_v32  ;;  %1153 = vmatprep.subr.bf16.mxu1 %v4409_v53 }
 0x47c   :  { %1113 = vmatpush1.bf16.msra.mxu0 %v4758_v33  ;;  %1154 = vmatpush1.bf16.msra.mxu1 %v4412_v54 }
 0x47d   :  { %1209 = vmatprep.subr.bf16.mxu0 %v4691_v17  ;;  %1250 = vmatprep.subr.bf16.mxu1 %v4763_v35 }
 0x51f   :  { %v1021_v0 = vpop.f32.mrf.mxu0  ;;  %v1062_v37 = vpop.f32.mrf.mxu1 }
 0x520   :  { %v1069_v60 = vadd.f32 %v1021_v0, %v5694_v22  ;;  %v1071_v8 = vadd.f32 %v1062_v37, %v5696_v29 }
 0x521   :  { %v1023_v58 = vpop.f32.mrf.mxu0  ;;  %v1064_v62 = vpop.f32.mrf.mxu1 }
 0x522   :  { %v3350_v13 = vmul.f32 -1.442695, %v1069_v60  ;;  %v1070_v7 = vadd.f32 %v1023_v58, %v5695_v38  ;;  %v3352_v15 = vmul.f32 -1.442695, %v1071_v8  ;;  %v1072_v16 = vadd.f32 %v1064_v62, %v5697_v23  ;;  %v5700_v8 = vld [vmem:[#allocation21_spill] sm:$0xff] }
 0x523   :  { %v1025_v39 = vpop.f32.mrf.mxu0  ;;  %v1066_v6 = vpop.f32.mrf.mxu1 }
 0x524   :  { %3756 = vpow2.f32 %v3350_v13  ;;  %v3351_v36 = vmul.f32 -1.442695, %v1070_v7  ;;  %v4779_v6 = vld [vmem:[#allocation2 + $0xe8] ss:$16 sps:$4 sm:$0xff]  }
 0x525   :  { %v1026_v55 = vpop.f32.mrf.mxu0  ;;  %v1067_v12 = vpop.f32.mrf.mxu1 }
 0x526   :  { %3758 = vpow2.f32 %v3351_v36  ;;  %v4789_v36 = vld [vmem:[#allocation2 + $0xc8] ss:$16 sps:$4 sm:$0xff]  }
 0x527   :  { %3760 = vpow2.f32 %v3352_v15 }
 0x528   :  { %3762 = vtanh.f32 %v1072_v16  ;;  %v5701_v16 = vld [vmem:[#allocation22_spill] sm:$0xff] }
 0x531   :  { %v3757_v18 = vpop.eup %3756 }
 0x532   :  { %v1082_v1 = vadd.f32 1.0, %v3757_v18 }
 0x533   :  { %v3759_v2 = vpop.eup %3758 }
 0x534   :  { %3764 = vrcp.f32 %v1082_v1  ;;  %v1083_v59 = vadd.f32 1.0, %v3759_v2  ;;  %v3761_v9 = vpop.eup %3760 }
 0x535   :  { %v3763_v19 = vpop.eup %3762  ;;  %v1084_v58 = vadd.f32 1.0, %v3761_v9 }
 0x536   :  { %3766 = vrcp.f32 %v1083_v59 }
 0x537   :  { %3768 = vrcp.f32 %v1084_v58 }
 0x541   :  { %v3765_v0 = vpop.eup %3764 }
 0x542   :  { %v1093_v22 = vmul.f32 %v3765_v0, %v3763_v19 }
 0x543   :  { %v3767_v60 = vpop.eup %3766 }
 0x544   :  { %v1092_v13 = vmul.f32 %v3767_v60, %v4701_v4  ;;  %v3769_v62 = vpop.eup %3768  ;;  %v4783_v4 = vld [vmem:[#allocation2 + $0xcc] ss:$16 sps:$4 sm:$0xff]  }
 0x546   :  { %v4771_v37 = vadd.f32 %v1093_v22, %v1092_v13 }
 0x548   :  { %3770 = vtanh.f32 %v4771_v37 }
 0x555   :  { %v3771_v38 = vpop.eup %3770 }
 0x556   :  { %v4774_v7 = vmul.f32 %v3771_v38, %v3769_v62 }
 0x558   :  { %v1097_v39 = vpack.c.bf16 %v4774_v7, %v4774_v7 }
 0x55a   :  { %1131 = vmatmul.mubr.bf16.vlgmr.msra.gmra.mxu0 %v1097_v39  ;;  %1172 = vmatmul.mubr.bf16.vlgmr.msra.gmra.mxu1 %v1097_v39 }
 0x55b   :  { %1210 = vmatpush1.bf16.msra.mxu0 %v4651_v14  ;;  %1251 = vmatpush1.bf16.msra.mxu1 %v4779_v6 }
 0x55c   :  { %1211 = vmatprep.subr.bf16.mxu0 %v4655_v34  ;;  %1252 = vmatprep.subr.bf16.mxu1 %v4783_v4 }
 0x55d   :  { %1241 = vmatprep.mubr.bf16.mxu0 %v5688_v26  ;;  %1282 = vmatprep.mubr.bf16.mxu1 %v5688_v26 }
 0x55f   :  { %1212 = vmatpush1.bf16.msra.mxu0 %v4661_v3  ;;  %1253 = vmatpush1.bf16.msra.mxu1 %v4789_v36 }
 0x560   :  { %1213 = vmatprep.subr.bf16.mxu0 %v4665_v61  ;;  %1254 = vmatprep.subr.bf16.mxu1 %v4371_v43 }
 0x563   :  { %1214 = vmatpush1.bf16.msra.mxu0 %v4718_v5  ;;  %1255 = vmatpush1.bf16.msra.mxu1 %v4377_v44 }
 0x564   :  { %1215 = vmatprep.subr.bf16.mxu0 %v4722_v40  ;;  %1256 = vmatprep.subr.bf16.mxu1 %v4383_v45  ;;  %v5698_v45 = vld [vmem:[#allocation34_spill] sm:$0xff] }
 0x567   :  { %1216 = vmatpush1.bf16.msra.mxu0 %v4726_v41  ;;  %1257 = vmatpush1.bf16.msra.mxu1 %v4388_v46  ;;  %v250_v46 = vadd.f32 %v5698_v45, %v4493_v21 }
 0x568   :  { %1217 = vmatprep.subr.bf16.mxu0 %v4730_v42  ;;  %1258 = vmatprep.subr.bf16.mxu1 %v4391_v47  ;;  %v5699_v47 = vld [vmem:[#allocation33_spill] sm:$0xff] }
 0x56b   :  { %1218 = vmatpush1.bf16.msra.mxu0 %v4734_v24  ;;  %1259 = vmatpush1.bf16.msra.mxu1 %v4394_v48 }
 0x56c   :  { %1219 = vmatprep.subr.bf16.mxu0 %v4738_v25  ;;  %1260 = vmatprep.subr.bf16.mxu1 %v4397_v49 }
 0x56f   :  { %1220 = vmatpush1.bf16.msra.mxu0 %v4742_v27  ;;  %1261 = vmatpush1.bf16.msra.mxu1 %v4400_v50 }
 0x570   :  { %1221 = vmatprep.subr.bf16.mxu0 %v4746_v28  ;;  %1262 = vmatprep.subr.bf16.mxu1 %v4403_v51 }
 0x573   :  { %1222 = vmatpush1.bf16.msra.mxu0 %v4750_v31  ;;  %1263 = vmatpush1.bf16.msra.mxu1 %v4406_v52 }
 0x574   :  { %1223 = vmatprep.subr.bf16.mxu0 %v4754_v32  ;;  %1264 = vmatprep.subr.bf16.mxu1 %v4409_v53 }
 0x577   :  { %1224 = vmatpush1.bf16.msra.mxu0 %v4758_v33  ;;  %1265 = vmatpush1.bf16.msra.mxu1 %v4412_v54 }
 0x578   :  { %1320 = vmatprep.subr.bf16.mxu0 %v4691_v17  ;;  %1361 = vmatprep.subr.bf16.mxu1 %v4763_v35 }
 0x61a   :  { %v1132_v43 = vpop.f32.mrf.mxu0  ;;  %v1173_v44 = vpop.f32.mrf.mxu1 }
 0x61b   :  { %v1180_v48 = vadd.f32 %v1132_v43, %v5699_v47  ;;  %v1182_v15 = vadd.f32 %v1173_v44, %v5700_v8  ;;  %v4848_v47 = vld [vmem:[#allocation2 + $0x8c] ss:$16 sps:$4 sm:$0xff]  }
 0x61c   :  { %v1134_v49 = vpop.f32.mrf.mxu0  ;;  %v1175_v50 = vpop.f32.mrf.mxu1 }
 0x61d   :  { %v3353_v51 = vmul.f32 -1.442695, %v1180_v48  ;;  %v1181_v52 = vadd.f32 %v1134_v49, %v250_v46  ;;  %v3355_v23 = vmul.f32 -1.442695, %v1182_v15  ;;  %v1183_v18 = vadd.f32 %v1175_v50, %v5701_v16  ;;  %v4844_v46 = vld [vmem:[#allocation2 + $0xa8] ss:$16 sps:$4 sm:$0xff]  }
 0x61e   :  { %v1136_v53 = vpop.f32.mrf.mxu0  ;;  %v1177_v55 = vpop.f32.mrf.mxu1  ;;  %v4852_v48 = vld [vmem:[#allocation2 + $0x88] ss:$16 sps:$4 sm:$0xff]   ;;  %v4856_v49 = vld [vmem:[#allocation2 + $0x6c] ss:$16 sps:$4 sm:$0xff]  }
 0x61f   :  { %3772 = vpow2.f32 %v3353_v51  ;;  %v3354_v12 = vmul.f32 -1.442695, %v1181_v52  ;;  %v4860_v50 = vld [vmem:[#allocation2 + $0x68] ss:$16 sps:$4 sm:$0xff]   ;;  %v4864_v51 = vld [vmem:[#allocation2 + $0x4c] ss:$16 sps:$4 sm:$0xff]  }
 0x620   :  { %v1137_v54 = vpop.f32.mrf.mxu0  ;;  %v1178_v29 = vpop.f32.mrf.mxu1  ;;  %v4868_v52 = vld [vmem:[#allocation2 + $0x48] ss:$16 sps:$4 sm:$0xff]   ;;  %v4872_v53 = vld [vmem:[#allocation2 + $0x2c] ss:$16 sps:$4 sm:$0xff]  }
 0x621   :  { %3774 = vpow2.f32 %v3354_v12  ;;  %v4876_v55 = vld [vmem:[#allocation2 + $0x28] ss:$16 sps:$4 sm:$0xff]   ;;  %v4880_v12 = vld [vmem:[#allocation2 + $0xc] ss:$16 sps:$4 sm:$0xff]  }
 0x622   :  { %3776 = vpow2.f32 %v3355_v23  ;;  %v4884_v54 = vld [vmem:[#allocation2 + $0x8] ss:$16 sps:$4 sm:$0xff]  }
 0x623   :  { %3778 = vtanh.f32 %v1183_v18  ;;  %v5702_v15 = vld [vmem:[#allocation35_spill] sm:$0xff] }
 0x62c   :  { %v3773_v1 = vpop.eup %3772 }
 0x62d   :  { %v1193_v2 = vadd.f32 1.0, %v3773_v1 }
 0x62e   :  { %v3775_v59 = vpop.eup %3774 }
 0x62f   :  { %3780 = vrcp.f32 %v1193_v2  ;;  %v1194_v9 = vadd.f32 1.0, %v3775_v59  ;;  %v3777_v19 = vpop.eup %3776  ;;  %v5703_v2 = vld [vmem:[#allocation36_spill] sm:$0xff] }
 0x630   :  { %v3779_v0 = vpop.eup %3778  ;;  %v1195_v13 = vadd.f32 1.0, %v3777_v19 }
 0x631   :  { %3782 = vrcp.f32 %v1194_v9 }
 0x632   :  { %3784 = vrcp.f32 %v1195_v13 }
 0x63c   :  { %v3781_v22 = vpop.eup %3780 }
 0x63d   :  { %v1204_v60 = vmul.f32 %v3781_v22, %v3779_v0 }
 0x63e   :  { %v3783_v58 = vpop.eup %3782 }
 0x63f   :  { %v1203_v62 = vmul.f32 %v3783_v58, %v4771_v37  ;;  %v3785_v39 = vpop.eup %3784  ;;  %v4840_v37 = vld [vmem:[#allocation2 + $0xac] ss:$16 sps:$4 sm:$0xff]  }
 0x640   :  { %v5704_v58 = vld [vmem:[#allocation23_spill] sm:$0xff] }
 0x641   :  { %v4824_v38 = vadd.f32 %v1204_v60, %v1203_v62 }
 0x643   :  { %3786 = vtanh.f32 %v4824_v38 }
 0x650   :  { %v3787_v43 = vpop.eup %3786 }
 0x651   :  { %v4827_v44 = vmul.f32 %v3787_v43, %v3785_v39 }
 0x653   :  { %v1208_v45 = vpack.c.bf16 %v4827_v44, %v4827_v44 }
 0x655   :  { %1242 = vmatmul.mubr.bf16.vlgmr.msra.gmra.mxu0 %v1208_v45  ;;  %1283 = vmatmul.mubr.bf16.vlgmr.msra.gmra.mxu1 %v1208_v45 }
 0x656   :  { %1321 = vmatpush1.bf16.msra.mxu0 %v4651_v14  ;;  %1362 = vmatpush1.bf16.msra.mxu1 %v4779_v6 }
 0x657   :  { %1322 = vmatprep.subr.bf16.mxu0 %v4655_v34  ;;  %1363 = vmatprep.subr.bf16.mxu1 %v4783_v4 }
 0x658   :  { %1352 = vmatprep.mubr.bf16.mxu0 %v5688_v26  ;;  %1393 = vmatprep.mubr.bf16.mxu1 %v5688_v26 }
 0x65a   :  { %1323 = vmatpush1.bf16.msra.mxu0 %v4661_v3  ;;  %1364 = vmatpush1.bf16.msra.mxu1 %v4789_v36 }
 0x65b   :  { %1324 = vmatprep.subr.bf16.mxu0 %v4665_v61  ;;  %1365 = vmatprep.subr.bf16.mxu1 %v4840_v37 }
 0x65e   :  { %1325 = vmatpush1.bf16.msra.mxu0 %v4718_v5  ;;  %1366 = vmatpush1.bf16.msra.mxu1 %v4844_v46 }
 0x65f   :  { %1326 = vmatprep.subr.bf16.mxu0 %v4722_v40  ;;  %1367 = vmatprep.subr.bf16.mxu1 %v4848_v47 }
 0x662   :  { %1327 = vmatpush1.bf16.msra.mxu0 %v4726_v41  ;;  %1368 = vmatpush1.bf16.msra.mxu1 %v4852_v48 }
 0x663   :  { %1328 = vmatprep.subr.bf16.mxu0 %v4730_v42  ;;  %1369 = vmatprep.subr.bf16.mxu1 %v4856_v49 }
 0x666   :  { %1329 = vmatpush1.bf16.msra.mxu0 %v4734_v24  ;;  %1370 = vmatpush1.bf16.msra.mxu1 %v4860_v50 }
 0x667   :  { %1330 = vmatprep.subr.bf16.mxu0 %v4738_v25  ;;  %1371 = vmatprep.subr.bf16.mxu1 %v4864_v51 }
 0x66a   :  { %1331 = vmatpush1.bf16.msra.mxu0 %v4742_v27  ;;  %1372 = vmatpush1.bf16.msra.mxu1 %v4868_v52 }
 0x66b   :  { %1332 = vmatprep.subr.bf16.mxu0 %v4746_v28  ;;  %1373 = vmatprep.subr.bf16.mxu1 %v4872_v53 }
 0x66e   :  { %1333 = vmatpush1.bf16.msra.mxu0 %v4750_v31  ;;  %1374 = vmatpush1.bf16.msra.mxu1 %v4876_v55 }
 0x66f   :  { %1334 = vmatprep.subr.bf16.mxu0 %v4754_v32  ;;  %1375 = vmatprep.subr.bf16.mxu1 %v4880_v12 }
 0x672   :  { %1335 = vmatpush1.bf16.msra.mxu0 %v4758_v33  ;;  %1376 = vmatpush1.bf16.msra.mxu1 %v4884_v54 }
 0x673   :  { %1431 = vmatprep.subr.bf16.mxu0 %v4691_v17  ;;  %1472 = vmatprep.subr.bf16.mxu1 %v4763_v35  ;;  %v5705_v35 = vld [vmem:[#allocation24_spill] sm:$0xff] }
 0x715   :  { %v1243_v29 = vpop.f32.mrf.mxu0  ;;  %v1284_v8 = vpop.f32.mrf.mxu1 }
 0x716   :  { %v1291_v23 = vadd.f32 %v1243_v29, %v5702_v15  ;;  %v1293_v17 = vadd.f32 %v1284_v8, %v5704_v58 }
 0x717   :  { %v1245_v16 = vpop.f32.mrf.mxu0  ;;  %v1286_v18 = vpop.f32.mrf.mxu1 }
 0x718   :  { %v3356_v1 = vmul.f32 -1.442695, %v1291_v23  ;;  %v1292_v59 = vadd.f32 %v1245_v16, %v5703_v2  ;;  %v3358_v13 = vmul.f32 -1.442695, %v1293_v17  ;;  %v1294_v62 = vadd.f32 %v1286_v18, %v5705_v35  ;;  %v3591_v35 = vld [vmem:[#allocation5 + $0xe8] ss:$16 sps:$4 sm:$0xff]  }
 0x719   :  { %v1247_v9 = vpop.f32.mrf.mxu0  ;;  %v1288_v19 = vpop.f32.mrf.mxu1 }
 0x71a   :  { %3788 = vpow2.f32 %v3356_v1  ;;  %v3357_v0 = vmul.f32 -1.442695, %v1292_v59 }
 0x71b   :  { %v1248_v22 = vpop.f32.mrf.mxu0  ;;  %v1289_v60 = vpop.f32.mrf.mxu1 }
 0x71c   :  { %3790 = vpow2.f32 %v3357_v0 }
 0x71d   :  { %3792 = vpow2.f32 %v3358_v13  ;;  %v3588_v13 = vld [vmem:[#allocation5 + $0xe0] ss:$16 sps:$4 sm:$0xff]  }
 0x71e   :  { %3794 = vtanh.f32 %v1294_v62 }
 0x727   :  { %v3789_v39 = vpop.eup %3788 }
 0x728   :  { %v1304_v43 = vadd.f32 1.0, %v3789_v39  ;;  %v3596_v39 = vld [vmem:[#allocation5 + $0xc4] ss:$16 sps:$4 sm:$0xff]  }
 0x729   :  { %v3791_v45 = vpop.eup %3790 }
 0x72a   :  { %3796 = vrcp.f32 %v1304_v43  ;;  %v1305_v29 = vadd.f32 1.0, %v3791_v45  ;;  %v3793_v15 = vpop.eup %3792  ;;  %v3599_v43 = vld [vmem:[#allocation5 + $0xcc] ss:$16 sps:$4 sm:$0xff]   ;;  %v3594_v45 = vld [vmem:[#allocation5 + $0xc0] ss:$16 sps:$4 sm:$0xff]  }
 0x72b   :  { %v3795_v23 = vpop.eup %3794  ;;  %v1306_v59 = vadd.f32 1.0, %v3793_v15  ;;  %v3602_v15 = vld [vmem:[#allocation5 + $0xa4] ss:$16 sps:$4 sm:$0xff]  }
 0x72c   :  { %3798 = vrcp.f32 %v1305_v29  ;;  %v3597_v29 = vld [vmem:[#allocation5 + $0xc8] ss:$16 sps:$4 sm:$0xff]  }
 0x72d   :  { %3800 = vrcp.f32 %v1306_v59  ;;  %v3611_v59 = vld [vmem:[#allocation5 + $0x8c] ss:$16 sps:$4 sm:$0xff]  }
 0x737   :  { %v3797_v16 = vpop.eup %3796 }
 0x738   :  { %v1315_v1 = vmul.f32 %v3797_v16, %v3795_v23  ;;  %v3605_v23 = vld [vmem:[#allocation5 + $0xac] ss:$16 sps:$4 sm:$0xff]   ;;  %v3600_v16 = vld [vmem:[#allocation5 + $0xa0] ss:$16 sps:$4 sm:$0xff]  }
 0x739   :  { %v3799_v2 = vpop.eup %3798 }
 0x73a   :  { %v1314_v9 = vmul.f32 %v3799_v2, %v4824_v38  ;;  %v3801_v18 = vpop.eup %3800  ;;  %v3608_v2 = vld [vmem:[#allocation5 + $0x84] ss:$16 sps:$4 sm:$0xff]  }
 0x73c   :  { %v4894_v8 = vadd.f32 %v1315_v1, %v1314_v9  ;;  %v3603_v1 = vld [vmem:[#allocation5 + $0xa8] ss:$16 sps:$4 sm:$0xff]   ;;  %v3606_v9 = vld [vmem:[#allocation5 + $0x80] ss:$16 sps:$4 sm:$0xff]  }
 0x73e   :  { %3802 = vtanh.f32 %v4894_v8 }
 0x74b   :  { %v3803_v19 = vpop.eup %3802 }
 0x74c   :  { %v4897_v0 = vmul.f32 %v3803_v19, %v3801_v18  ;;  %v3614_v18 = vld [vmem:[#allocation5 + $0x64] ss:$16 sps:$4 sm:$0xff]   ;;  %v3617_v19 = vld [vmem:[#allocation5 + $0x6c] ss:$16 sps:$4 sm:$0xff]  }
 0x74e   :  { %v1319_v22 = vpack.c.bf16 %v4897_v0, %v4897_v0 }
 0x750   :  { %1353 = vmatmul.mubr.bf16.vlgmr.msra.gmra.mxu0 %v1319_v22  ;;  %1394 = vmatmul.mubr.bf16.vlgmr.msra.gmra.mxu1 %v1319_v22  ;;  %v3612_v22 = vld [vmem:[#allocation5 + $0x60] ss:$16 sps:$4 sm:$0xff]  }
 0x751   :  { %1432 = vmatpush1.bf16.msra.mxu0 %v4651_v14  ;;  %1473 = vmatpush1.bf16.msra.mxu1 %v4779_v6  ;;  %v3590_v14 = vld [vmem:[#allocation5 + $0xe4] ss:$16 sps:$4 sm:$0xff]  }
 0x752   :  { %1433 = vmatprep.subr.bf16.mxu0 %v4655_v34  ;;  %1474 = vmatprep.subr.bf16.mxu1 %v4783_v4  ;;  %v3593_v34 = vld [vmem:[#allocation5 + $0xec] ss:$16 sps:$4 sm:$0xff]  }
 0x753   :  { %1463 = vmatprep.mubr.bf16.mxu0 %v5688_v26  ;;  %1504 = vmatprep.mubr.bf16.mxu1 %v5688_v26  ;;  %v5707_v4 = vld [vmem:[#allocation27_spill] sm:$0xff] }
 0x755   :  { %1434 = vmatpush1.bf16.msra.mxu0 %v4661_v3  ;;  %1475 = vmatpush1.bf16.msra.mxu1 %v4789_v36 }
 0x756   :  { %1435 = vmatprep.subr.bf16.mxu0 %v4665_v61  ;;  %1476 = vmatprep.subr.bf16.mxu1 %v4840_v37  ;;  %v5708_v37 = vld [vmem:[#allocation28_spill] sm:$0xff] }
 0x759   :  { %1436 = vmatpush1.bf16.msra.mxu0 %v4718_v5  ;;  %1477 = vmatpush1.bf16.msra.mxu1 %v4844_v46  ;;  %v260_v5 = vadd.f32 %v4539_v20, %v4493_v21 }
 0x75a   :  { %1437 = vmatprep.subr.bf16.mxu0 %v4722_v40  ;;  %1478 = vmatprep.subr.bf16.mxu1 %v4848_v47  ;;  %v5706_v40 = vld [vmem:[#allocation37_spill] sm:$0xff] }
 0x75d   :  { %1438 = vmatpush1.bf16.msra.mxu0 %v4726_v41  ;;  %1479 = vmatpush1.bf16.msra.mxu1 %v4852_v48 }
 0x75e   :  { %1439 = vmatprep.subr.bf16.mxu0 %v4730_v42  ;;  %1480 = vmatprep.subr.bf16.mxu1 %v4856_v49 }
 0x761   :  { %1440 = vmatpush1.bf16.msra.mxu0 %v4734_v24  ;;  %1481 = vmatpush1.bf16.msra.mxu1 %v4860_v50 }
 0x762   :  { %1441 = vmatprep.subr.bf16.mxu0 %v4738_v25  ;;  %1482 = vmatprep.subr.bf16.mxu1 %v4864_v51 }
 0x765   :  { %1442 = vmatpush1.bf16.msra.mxu0 %v4742_v27  ;;  %1483 = vmatpush1.bf16.msra.mxu1 %v4868_v52 }
 0x766   :  { %1443 = vmatprep.subr.bf16.mxu0 %v4746_v28  ;;  %1484 = vmatprep.subr.bf16.mxu1 %v4872_v53 }
 0x769   :  { %1444 = vmatpush1.bf16.msra.mxu0 %v4750_v31  ;;  %1485 = vmatpush1.bf16.msra.mxu1 %v4876_v55 }
 0x76a   :  { %1445 = vmatprep.subr.bf16.mxu0 %v4754_v32  ;;  %1486 = vmatprep.subr.bf16.mxu1 %v4880_v12 }
 0x76d   :  { %1446 = vmatpush1.bf16.msra.mxu0 %v4758_v33  ;;  %1487 = vmatpush1.bf16.msra.mxu1 %v4884_v54 }
 0x76e   :  { %1760 = vmatprep.subr.bf16.mxu0 %v3590_v14  ;;  %1841 = vmatprep.subr.bf16.mxu1 %v3593_v34  ;;  %v3615_v14 = vld [vmem:[#allocation5 + $0x68] ss:$16 sps:$4 sm:$0xff]   ;;  %v3620_v34 = vld [vmem:[#allocation5 + $0x44] ss:$16 sps:$4 sm:$0xff]  }
 0x810   :  { %v1354_v3 = vpop.f32.mrf.mxu0  ;;  %v1395_v61 = vpop.f32.mrf.mxu1 }
 0x811   :  { %v1402_v41 = vadd.f32 %v1354_v3, %v5706_v40  ;;  %v1404_v36 = vadd.f32 %v1395_v61, %v5707_v4  ;;  %v3623_v3 = vld [vmem:[#allocation5 + $0x4c] ss:$16 sps:$4 sm:$0xff]   ;;  %v3618_v61 = vld [vmem:[#allocation5 + $0x40] ss:$16 sps:$4 sm:$0xff]   ;;  %v3626_v40 = vld [vmem:[#allocation5 + $0x24] ss:$16 sps:$4 sm:$0xff]  }
 0x812   :  { %v1356_v42 = vpop.f32.mrf.mxu0  ;;  %v1397_v24 = vpop.f32.mrf.mxu1  ;;  %v4980_v4 = vld [vmem:[#allocation7 + $0xc0] ss:$16 sps:$4 sm:$0xff]  }
 0x813   :  { %v3359_v25 = vmul.f32 -1.442695, %v1402_v41  ;;  %v1403_v27 = vadd.f32 %v1356_v42, %v260_v5  ;;  %v3361_v38 = vmul.f32 -1.442695, %v1404_v36  ;;  %v1405_v46 = vadd.f32 %v1397_v24, %v5708_v37  ;;  %v3621_v5 = vld [vmem:[#allocation5 + $0x48] ss:$16 sps:$4 sm:$0xff]  }
 0x814   :  { %v1358_v28 = vpop.f32.mrf.mxu0  ;;  %v1399_v31 = vpop.f32.mrf.mxu1  ;;  %v3629_v41 = vld [vmem:[#allocation5 + $0x2c] ss:$16 sps:$4 sm:$0xff]   ;;  %v3624_v42 = vld [vmem:[#allocation5 + $0x20] ss:$16 sps:$4 sm:$0xff]   ;;  %v3627_v24 = vld [vmem:[#allocation5 + $0x28] ss:$16 sps:$4 sm:$0xff]  }
 0x815   :  { %3804 = vpow2.f32 %v3359_v25  ;;  %v3360_v32 = vmul.f32 -1.442695, %v1403_v27  ;;  %v3632_v25 = vld [vmem:[#allocation5 + $0x4] ss:$16 sps:$4 sm:$0xff]   ;;  %v3635_v27 = vld [vmem:[#allocation5 + $0xc] ss:$16 sps:$4 sm:$0xff]  }
 0x816   :  { %v1359_v33 = vpop.f32.mrf.mxu0  ;;  %v1400_v6 = vpop.f32.mrf.mxu1  ;;  %v3630_v28 = vld [vmem:[#allocation5] ss:$16 sps:$4 sm:$0xff]   ;;  %v3633_v31 = vld [vmem:[#allocation5 + $0x8] ss:$16 sps:$4 sm:$0xff]   ;;  %v4982_v36 = vld [vmem:[#allocation7 + $0xa4] ss:$16 sps:$4 sm:$0xff]  }
 0x817   :  { %3806 = vpow2.f32 %v3360_v32  ;;  %v1541_v32 = vpack.c.bf16 %v4601_v30, %v4553_v56  ;;  %v1542_v33 = vpack.c.bf16 %v4704_v11, %v4647_v10  ;;  %v1543_v6 = vpack.c.bf16 %v4827_v44, %v4774_v7  ;;  %v4964_v30 = vld [vmem:[#allocation7 + $0xe4] ss:$16 sps:$4 sm:$0xff]   ;;  %v4966_v10 = vld [vmem:[#allocation7 + $0xec] ss:$16 sps:$4 sm:$0xff]   ;;  %v4968_v11 = vld [vmem:[#allocation7 + $0xe0] ss:$16 sps:$4 sm:$0xff]  }
 0x818   :  { %3808 = vpow2.f32 %v3361_v38  ;;  %v4970_v7 = vld [vmem:[#allocation7 + $0xe8] ss:$16 sps:$4 sm:$0xff]   ;;  %v4976_v44 = vld [vmem:[#allocation7 + $0xc4] ss:$16 sps:$4 sm:$0xff]   ;;  %v4989_v37 = vld [vmem:[#allocation7 + $0xa0] ss:$16 sps:$4 sm:$0xff]  }
 0x819   :  { %3810 = vtanh.f32 %v1405_v46  ;;  %v4986_v38 = vld [vmem:[#allocation7 + $0xc8] ss:$16 sps:$4 sm:$0xff]   ;;  %v4993_v46 = vld [vmem:[#allocation7 + $0x84] ss:$16 sps:$4 sm:$0xff]  }
 0x822   :  { %v3805_v47 = vpop.eup %3804 }
 0x823   :  { %v1415_v21 = vadd.f32 1.0, %v3805_v47  ;;  %v4995_v47 = vld [vmem:[#allocation7 + $0xac] ss:$16 sps:$4 sm:$0xff]  }
 0x824   :  { %v3807_v20 = vpop.eup %3806 }
 0x825   :  { %3812 = vrcp.f32 %v1415_v21  ;;  %v1416_v48 = vadd.f32 1.0, %v3807_v20  ;;  %v3809_v49 = vpop.eup %3808  ;;  %v4997_v21 = vld [vmem:[#allocation7 + $0xa8] ss:$16 sps:$4 sm:$0xff]   ;;  %v5001_v20 = vld [vmem:[#allocation7 + $0x80] ss:$16 sps:$4 sm:$0xff]  }
 0x826   :  { %v3811_v50 = vpop.eup %3810  ;;  %v1417_v55 = vadd.f32 1.0, %v3809_v49  ;;  %v5007_v49 = vld [vmem:[#allocation7 + $0x64] ss:$16 sps:$4 sm:$0xff]  }
 0x827   :  { %3814 = vrcp.f32 %v1416_v48  ;;  %v5005_v48 = vld [vmem:[#allocation7 + $0x8c] ss:$16 sps:$4 sm:$0xff]  }
 0x828   :  { %3816 = vrcp.f32 %v1417_v55  ;;  %v5021_v55 = vld [vmem:[#allocation7 + $0x68] ss:$16 sps:$4 sm:$0xff]  }
 0x832   :  { %v3813_v51 = vpop.eup %3812 }
 0x833   :  { %v1426_v52 = vmul.f32 %v3813_v51, %v3811_v50  ;;  %v5009_v50 = vld [vmem:[#allocation7 + $0x88] ss:$16 sps:$4 sm:$0xff]   ;;  %v5013_v51 = vld [vmem:[#allocation7 + $0x60] ss:$16 sps:$4 sm:$0xff]  }
 0x834   :  { %v3815_v53 = vpop.eup %3814 }
 0x835   :  { %v1425_v12 = vmul.f32 %v3815_v53, %v4894_v8  ;;  %v3817_v60 = vpop.eup %3816  ;;  %v3609_v8 = vld [vmem:[#allocation5 + $0x88] ss:$16 sps:$4 sm:$0xff]   ;;  %v5019_v53 = vld [vmem:[#allocation7 + $0x44] ss:$16 sps:$4 sm:$0xff]  }
 0x837   :  { %v4939_v54 = vadd.f32 %v1426_v52, %v1425_v12  ;;  %v5017_v52 = vld [vmem:[#allocation7 + $0x6c] ss:$16 sps:$4 sm:$0xff]   ;;  %v5025_v12 = vld [vmem:[#allocation7 + $0x40] ss:$16 sps:$4 sm:$0xff]  }
 0x839   :  { %3818 = vtanh.f32 %v4939_v54 }
 0x846   :  { %v3819_v58 = vpop.eup %3818 }
 0x847   :  { %v4942_v17 = vmul.f32 %v3819_v58, %v3817_v60  ;;  %v5029_v60 = vld [vmem:[#allocation7 + $0x4c] ss:$16 sps:$4 sm:$0xff]   ;;  %v5031_v58 = vld [vmem:[#allocation7 + $0x48] ss:$16 sps:$4 sm:$0xff]  }
 0x849   :  { %v1430_v62 = vpack.c.bf16 %v4942_v17, %v4942_v17  ;;  %v1544_v56 = vpack.c.bf16 %v4942_v17, %v4897_v0  ;;  %v4978_v0 = vld [vmem:[#allocation7 + $0xcc] ss:$16 sps:$4 sm:$0xff]   ;;  %v5035_v17 = vld [vmem:[#allocation7 + $0x24] ss:$16 sps:$4 sm:$0xff]  }
 0x84b   :  { %1464 = vmatmul.mubr.bf16.vlgmr.msra.gmra.mxu0 %v1430_v62  ;;  %1505 = vmatmul.mubr.bf16.vlgmr.msra.gmra.mxu1 %v1430_v62  ;;  %v5043_v62 = vld [vmem:[#allocation7 + $0x28] ss:$16 sps:$4 sm:$0xff]  }
 0x84c   :  { %1761 = vmatpush1.bf16.msra.mxu0 %v3588_v13  ;;  %1842 = vmatpush1.bf16.msra.mxu1 %v3591_v35  ;;  %v5037_v13 = vld [vmem:[#allocation7 + $0x20] ss:$16 sps:$4 sm:$0xff]   ;;  %v5040_v35 = vld [vmem:[#allocation7 + $0x2c] ss:$16 sps:$4 sm:$0xff]  }
 0x84d   :  { %1762 = vmatprep.subr.bf16.mxu0 %v3596_v39  ;;  %1843 = vmatprep.subr.bf16.mxu1 %v3599_v43  ;;  %v5047_v39 = vld [vmem:[#allocation7 + $0x4] ss:$16 sps:$4 sm:$0xff]   ;;  %v5049_v43 = vld [vmem:[#allocation7] ss:$16 sps:$4 sm:$0xff]  }
 0x84e   :  { %1792 = vmatprep.mubr.bf16.mxu0 %v5688_v26  ;;  %1873 = vmatprep.mubr.bf16.mxu1 %v5688_v26 }
 0x850   :  { %1763 = vmatpush1.bf16.msra.mxu0 %v3594_v45  ;;  %1844 = vmatpush1.bf16.msra.mxu1 %v3597_v29  ;;  %v5051_v45 = vld [vmem:[#allocation7 + $0xc] ss:$16 sps:$4 sm:$0xff]   ;;  %v5054_v29 = vld [vmem:[#allocation7 + $0x8] ss:$16 sps:$4 sm:$0xff]  }
 0x851   :  { %1764 = vmatprep.subr.bf16.mxu0 %v3602_v15  ;;  %1845 = vmatprep.subr.bf16.mxu1 %v3605_v23 }
 0x854   :  { %1765 = vmatpush1.bf16.msra.mxu0 %v3600_v16  ;;  %1846 = vmatpush1.bf16.msra.mxu1 %v3603_v1 }
 0x855   :  { %1766 = vmatprep.subr.bf16.mxu0 %v3608_v2  ;;  %1847 = vmatprep.subr.bf16.mxu1 %v3611_v59 }
 0x858   :  { %1767 = vmatpush1.bf16.msra.mxu0 %v3606_v9  ;;  %1848 = vmatpush1.bf16.msra.mxu1 %v3609_v8 }
 0x859   :  { %1768 = vmatprep.subr.bf16.mxu0 %v3614_v18  ;;  %1849 = vmatprep.subr.bf16.mxu1 %v3617_v19 }
 0x85c   :  { %1769 = vmatpush1.bf16.msra.mxu0 %v3612_v22  ;;  %1850 = vmatpush1.bf16.msra.mxu1 %v3615_v14 }
 0x85d   :  { %1770 = vmatprep.subr.bf16.mxu0 %v3620_v34  ;;  %1851 = vmatprep.subr.bf16.mxu1 %v3623_v3  ;;  %v5709_v34 = vld [vmem:[#allocation30_spill] sm:$0xff] }
 0x860   :  { %1771 = vmatpush1.bf16.msra.mxu0 %v3618_v61  ;;  %1852 = vmatpush1.bf16.msra.mxu1 %v3621_v5  ;;  %v5710_v5 = vld [vmem:[#allocation32_spill] sm:$0xff] }
 0x861   :  { %1772 = vmatprep.subr.bf16.mxu0 %v3626_v40  ;;  %1853 = vmatprep.subr.bf16.mxu1 %v3629_v41 }
 0x864   :  { %1773 = vmatpush1.bf16.msra.mxu0 %v3624_v42  ;;  %1854 = vmatpush1.bf16.msra.mxu1 %v3627_v24 }
 0x865   :  { %1774 = vmatprep.subr.bf16.mxu0 %v3632_v25  ;;  %1855 = vmatprep.subr.bf16.mxu1 %v3635_v27 }
 0x868   :  { %1775 = vmatpush1.bf16.msra.mxu0 %v3630_v28  ;;  %1856 = vmatpush1.bf16.msra.mxu1 %v3633_v31 }
 0x869   :  { %2114 = vmatprep.subr.bf16.mxu0 %v4964_v30  ;;  %2155 = vmatprep.subr.bf16.mxu1 %v4966_v10 }
 0x86b   :  { %1793 = vmatmul.mubr.bf16.vlgmr.msra.gmra.mxu0 %v1541_v32  ;;  %1874 = vmatmul.mubr.bf16.vlgmr.msra.gmra.mxu1 %v1541_v32 }
 0x86c   :  { %1802 = vmatprep.mubr.bf16.mxu0 %v5688_v26  ;;  %1883 = vmatprep.mubr.bf16.mxu1 %v5688_v26 }
 0x86d   :  { %2115 = vmatpush1.bf16.msra.mxu0 %v4968_v11  ;;  %2156 = vmatpush1.bf16.msra.mxu1 %v4970_v7 }
 0x86e   :  { %2116 = vmatprep.subr.bf16.mxu0 %v4976_v44  ;;  %2157 = vmatprep.subr.bf16.mxu1 %v4978_v0 }
 0x871   :  { %2117 = vmatpush1.bf16.msra.mxu0 %v4980_v4  ;;  %2158 = vmatpush1.bf16.msra.mxu1 %v4986_v38 }
 0x872   :  { %2118 = vmatprep.subr.bf16.mxu0 %v4982_v36  ;;  %2159 = vmatprep.subr.bf16.mxu1 %v4995_v47 }
 0x873   :  { %1803 = vmatmul.mubr.bf16.gmra.mxu0 %v1542_v33  ;;  %1884 = vmatmul.mubr.bf16.gmra.mxu1 %v1542_v33 }
 0x874   :  { %1812 = vmatprep.mubr.bf16.mxu0 %v5688_v26  ;;  %1893 = vmatprep.mubr.bf16.mxu1 %v5688_v26 }
 0x875   :  { %2119 = vmatpush1.bf16.msra.mxu0 %v4989_v37  ;;  %2160 = vmatpush1.bf16.msra.mxu1 %v4997_v21 }
 0x876   :  { %2120 = vmatprep.subr.bf16.mxu0 %v4993_v46  ;;  %2161 = vmatprep.subr.bf16.mxu1 %v5005_v48 }
 0x879   :  { %2121 = vmatpush1.bf16.msra.mxu0 %v5001_v20  ;;  %2162 = vmatpush1.bf16.msra.mxu1 %v5009_v50 }
 0x87a   :  { %2122 = vmatprep.subr.bf16.mxu0 %v5007_v49  ;;  %2163 = vmatprep.subr.bf16.mxu1 %v5017_v52 }
 0x87b   :  { %1813 = vmatmul.mubr.bf16.gmra.mxu0 %v1543_v6  ;;  %1894 = vmatmul.mubr.bf16.gmra.mxu1 %v1543_v6 }
 0x87c   :  { %1822 = vmatprep.mubr.bf16.mxu0 %v5688_v26  ;;  %1903 = vmatprep.mubr.bf16.mxu1 %v5688_v26 }
 0x87d   :  { %2123 = vmatpush1.bf16.msra.mxu0 %v5013_v51  ;;  %2164 = vmatpush1.bf16.msra.mxu1 %v5021_v55 }
 0x87e   :  { %2124 = vmatprep.subr.bf16.mxu0 %v5019_v53  ;;  %2165 = vmatprep.subr.bf16.mxu1 %v5029_v60 }
 0x881   :  { %2125 = vmatpush1.bf16.msra.mxu0 %v5025_v12  ;;  %2166 = vmatpush1.bf16.msra.mxu1 %v5031_v58 }
 0x882   :  { %2126 = vmatprep.subr.bf16.mxu0 %v5035_v17  ;;  %2167 = vmatprep.subr.bf16.mxu1 %v5040_v35 }
 0x883   :  { %1823 = vmatmul.mubr.bf16.gmra.mxu0 %v1544_v56  ;;  %1904 = vmatmul.mubr.bf16.gmra.mxu1 %v1544_v56 }
 0x884   :  { %1832 = vmatprep.mubr.bf16.mxu0 %v5688_v26  ;;  %1913 = vmatprep.mubr.bf16.mxu1 %v5688_v26 }
 0x885   :  { %2127 = vmatpush1.bf16.msra.mxu0 %v5037_v13  ;;  %2168 = vmatpush1.bf16.msra.mxu1 %v5043_v62 }
 0x886   :  { %2128 = vmatprep.subr.bf16.mxu0 %v5047_v39  ;;  %2169 = vmatprep.subr.bf16.mxu1 %v5051_v45 }
 0x889   :  { %2129 = vmatpush1.bf16.msra.mxu0 %v5049_v43  ;;  %2170 = vmatpush1.bf16.msra.mxu1 %v5054_v29 }
 0x88a   :  { %2225 = vmatprep.subr.bf16.mxu0 %v4964_v30  ;;  %2266 = vmatprep.subr.bf16.mxu1 %v4966_v10 }
 0x90b   :  { %v1465_v15 = vpop.f32.mrf.mxu0  ;;  %v1506_v23 = vpop.f32.mrf.mxu1 }
 0x90c   :  { %v1513_v16 = vadd.f32 %v1465_v15, %v4541_v63  ;;  %v1515_v3 = vadd.f32 %v1506_v23, %v5709_v34 }
 0x90d   :  { %v1467_v1 = vpop.f32.mrf.mxu0  ;;  %v1508_v2 = vpop.f32.mrf.mxu1 }
 0x90e   :  { %v3362_v59 = vmul.f32 -1.442695, %v1513_v16  ;;  %v1514_v9 = vadd.f32 %v1467_v1, %v4544_v57  ;;  %v3364_v61 = vmul.f32 -1.442695, %v1515_v3  ;;  %v1516_v40 = vadd.f32 %v1508_v2, %v5710_v5 }
 0x90f   :  { %v1469_v8 = vpop.f32.mrf.mxu0  ;;  %v1510_v18 = vpop.f32.mrf.mxu1 }
 0x910   :  { %3820 = vpow2.f32 %v3362_v59  ;;  %v3363_v19 = vmul.f32 -1.442695, %v1514_v9 }
 0x911   :  { %v1470_v22 = vpop.f32.mrf.mxu0  ;;  %v1511_v14 = vpop.f32.mrf.mxu1 }
 0x912   :  { %3822 = vpow2.f32 %v3363_v19 }
 0x913   :  { %3824 = vpow2.f32 %v3364_v61 }
 0x914   :  { %3826 = vtanh.f32 %v1516_v40 }
 0x91d   :  { %v3821_v41 = vpop.eup %3820 }
 0x91e   :  { %v1526_v42 = vadd.f32 1.0, %v3821_v41 }
 0x91f   :  { %v3823_v63 = vpop.eup %3822 }
 0x920   :  { %3828 = vrcp.f32 %v1526_v42  ;;  %v1527_v24 = vadd.f32 1.0, %v3823_v63  ;;  %v3825_v57 = vpop.eup %3824 }
 0x921   :  { %v3827_v25 = vpop.eup %3826  ;;  %v1528_v32 = vadd.f32 1.0, %v3825_v57 }
 0x922   :  { %3830 = vrcp.f32 %v1527_v24 }
 0x923   :  { %3832 = vrcp.f32 %v1528_v32 }
 0x92b   :  { %v1875_v1 = vpop.f32.mrf.mxu1 }
 0x92d   :  { %v3829_v27 = vpop.eup %3828  ;;  %v1877_v59 = vpop.f32.mrf.mxu1 }
 0x92e   :  { %v1537_v28 = vmul.f32 %v3829_v27, %v3827_v25 }
 0x92f   :  { %v3831_v31 = vpop.eup %3830  ;;  %v5107_v8 = vpop.f32.mrf.mxu1 }
 0x930   :  { %v1536_v33 = vmul.f32 %v3831_v31, %v4939_v54  ;;  %v3833_v56 = vpop.eup %3832  ;;  %v1794_v54 = vpop.f32.mrf.mxu0 }
 0x931   :  { %v5111_v19 = vpop.f32.mrf.mxu1 }
 0x932   :  { %v1538_v6 = vadd.f32 %v1537_v28, %v1536_v33  ;;  %v1796_v2 = vpop.f32.mrf.mxu0 }
 0x933   :  { %v5115_v14 = vpop.f32.mrf.mxu1 }
 0x934   :  { %3834 = vtanh.f32 %v1538_v6  ;;  %v5105_v9 = vpop.f32.mrf.mxu0 }
 0x935   :  { %v5119_v3 = vpop.f32.mrf.mxu1 }
 0x936   :  { %v5109_v18 = vpop.f32.mrf.mxu0  ;;  %5711 = vst [vmem:[#allocation16_spill] sm:$0xff] %v5119_v3 }
 0x937   :  { %v5123_v5 = vpop.f32.mrf.mxu1 }
 0x938   :  { %v5113_v22 = vpop.f32.mrf.mxu0  ;;  %5713 = vst [vmem:[#allocation25_spill] sm:$0xff] %v5123_v5 }
 0x939   :  { %v5127_v41 = vpop.f32.mrf.mxu1 }
 0x93a   :  { %v5117_v34 = vpop.f32.mrf.mxu0  ;;  %5715 = vst [vmem:[#allocation18_spill] sm:$0xff] %v5127_v41 }
 0x93b   :  { %v5131_v63 = vpop.f32.mrf.mxu1 }
 0x93c   :  { %v5121_v61 = vpop.f32.mrf.mxu0  ;;  %5717 = vst [vmem:[#allocation31_spill] sm:$0xff] %v5131_v63 }
 0x93d   :  { %5712 = vst [vmem:[#allocation26_spill] sm:$0xff] %v5121_v61  ;;  %v5135_v57 = vpop.f32.mrf.mxu1 }
 0x93e   :  { %v5125_v40 = vpop.f32.mrf.mxu0  ;;  %5719 = vst [vmem:[#allocation20_spill] sm:$0xff] %v5135_v57 }
 0x93f   :  { %5714 = vst [vmem:[#allocation17_spill] sm:$0xff] %v5125_v40  ;;  %v5139_v27 = vpop.f32.mrf.mxu1 }
 0x940   :  { %v5129_v42 = vpop.f32.mrf.mxu0  ;;  %5721 = vst [vmem:[#allocation33_spill] sm:$0xff] %v5139_v27 }
 0x941   :  { %v3835_v15 = vpop.eup %3834  ;;  %5716 = vst [vmem:[#allocation29_spill] sm:$0xff] %v5129_v42  ;;  %v5143_v31 = vpop.f32.mrf.mxu1 }
 0x942   :  { %v1540_v23 = vmul.f32 %v3835_v15, %v3833_v56  ;;  %v5133_v24 = vpop.f32.mrf.mxu0  ;;  %5723 = vst [vmem:[#allocation22_spill] sm:$0xff] %v5143_v31  ;;  %v1578_v31 = vld [vmem:[%s5653_s6] sm:$0xf] }
 0x943   :  { %5718 = vst [vmem:[#allocation19_spill] sm:$0xff] %v5133_v24  ;;  %v5147_v33 = vpop.f32.mrf.mxu1 }
 0x944   :  { %v1545_v16 = vpack.c.bf16 %v1540_v23, %v1540_v23  ;;  %v5137_v25 = vpop.f32.mrf.mxu0  ;;  %5725 = vst [vmem:[#allocation36_spill] sm:$0xff] %v5147_v33 }
 0x945   :  { %5720 = vst [vmem:[#allocation34_spill] sm:$0xff] %v5137_v25  ;;  %v5151_v56 = vpop.f32.mrf.mxu1 }
 0x946   :  { %1833 = vmatmul.mubr.bf16.gmra.mxu0 %v1545_v16  ;;  %1914 = vmatmul.mubr.bf16.gmra.mxu1 %v1545_v16  ;;  %v5141_v28 = vpop.f32.mrf.mxu0  ;;  %5727 = vst [vmem:[#allocation24_spill] sm:$0xff] %v5151_v56  ;;  %v5736_v56 = vld [vmem:[#allocation15_spill] sm:$0xff] }
 0x947   :  { %2146 = vmatprep.mubr.bf16.mxu0 %v5688_v26  ;;  %2187 = vmatprep.mubr.bf16.mxu1 %v5688_v26  ;;  %5722 = vst [vmem:[#allocation21_spill] sm:$0xff] %v5141_v28  ;;  %v5155_v23 = vpop.f32.mrf.mxu1 }
 0x948   :  { %v5145_v32 = vpop.f32.mrf.mxu0  ;;  %5729 = vst [vmem:[#allocation27_spill] sm:$0xff] %v5155_v23 }
 0x949   :  { %5724 = vst [vmem:[#allocation35_spill] sm:$0xff] %v5145_v32  ;;  %v5159_v25 = vpop.f32.mrf.mxu1 }
 0x94a   :  { %v5149_v6 = vpop.f32.mrf.mxu0  ;;  %5731 = vst [vmem:[#allocation30_spill] sm:$0xff] %v5159_v25  ;;  %v5738_v25 = vsub.s32 1, %v5736_v56 }
 0x94b   :  { %5726 = vst [vmem:[#allocation23_spill] sm:$0xff] %v5149_v6 }
 0x94c   :  { %v5153_v15 = vpop.f32.mrf.mxu0  ;;  %v5178_v57 = vrot.slane %v1578_v31, %v5738_v25  ;;  %v5739_v25 = vsub.s32 2, %v5736_v56 }
 0x94d   :  { %5728 = vst [vmem:[#allocation37_spill] sm:$0xff] %v5153_v15  ;;  %v5737_v15 = vsub.s32 0, %v5736_v56 }
 0x94e   :  { %2147 = vmatmul.mubr.bf16.vlgmr.msra.gmra.mxu0 %v5688_v26  ;;  %2188 = vmatmul.mubr.bf16.vlgmr.msra.gmra.mxu1 %v5688_v26  ;;  %v5157_v16 = vpop.f32.mrf.mxu0  ;;  %v5184_v3 = vrot.slane %v1578_v31, %v5739_v25 }
 0x94f   :  { %2226 = vmatpush1.bf16.msra.mxu0 %v4968_v11  ;;  %2267 = vmatpush1.bf16.msra.mxu1 %v4970_v7  ;;  %5730 = vst [vmem:[#allocation28_spill] sm:$0xff] %v5157_v16  ;;  %v5174_v28 = vrot.slane %v1578_v31, %v5737_v15 }
 0x950   :  { %2227 = vmatprep.subr.bf16.mxu0 %v4976_v44  ;;  %2268 = vmatprep.subr.bf16.mxu1 %v4978_v0 }
 0x951   :  { %2257 = vmatprep.mubr.bf16.mxu0 %v5688_v26  ;;  %2298 = vmatprep.mubr.bf16.mxu1 %v5688_v26 }
 0x953   :  { %2228 = vmatpush1.bf16.msra.mxu0 %v4980_v4  ;;  %2269 = vmatpush1.bf16.msra.mxu1 %v4986_v38 }
 0x954   :  { %2229 = vmatprep.subr.bf16.mxu0 %v4982_v36  ;;  %2270 = vmatprep.subr.bf16.mxu1 %v4995_v47 }
 0x957   :  { %2230 = vmatpush1.bf16.msra.mxu0 %v4989_v37  ;;  %2271 = vmatpush1.bf16.msra.mxu1 %v4997_v21 }
 0x958   :  { %2231 = vmatprep.subr.bf16.mxu0 %v4993_v46  ;;  %2272 = vmatprep.subr.bf16.mxu1 %v5005_v48 }
 0x95b   :  { %2232 = vmatpush1.bf16.msra.mxu0 %v5001_v20  ;;  %2273 = vmatpush1.bf16.msra.mxu1 %v5009_v50 }
 0x95c   :  { %2233 = vmatprep.subr.bf16.mxu0 %v5007_v49  ;;  %2274 = vmatprep.subr.bf16.mxu1 %v5017_v52 }
 0x95f   :  { %2234 = vmatpush1.bf16.msra.mxu0 %v5013_v51  ;;  %2275 = vmatpush1.bf16.msra.mxu1 %v5021_v55 }
 0x960   :  { %2235 = vmatprep.subr.bf16.mxu0 %v5019_v53  ;;  %2276 = vmatprep.subr.bf16.mxu1 %v5029_v60 }
 0x963   :  { %2236 = vmatpush1.bf16.msra.mxu0 %v5025_v12  ;;  %2277 = vmatpush1.bf16.msra.mxu1 %v5031_v58 }
 0x964   :  { %2237 = vmatprep.subr.bf16.mxu0 %v5035_v17  ;;  %2278 = vmatprep.subr.bf16.mxu1 %v5040_v35 }
 0x967   :  { %2238 = vmatpush1.bf16.msra.mxu0 %v5037_v13  ;;  %2279 = vmatpush1.bf16.msra.mxu1 %v5043_v62 }
 0x968   :  { %2239 = vmatprep.subr.bf16.mxu0 %v5047_v39  ;;  %2280 = vmatprep.subr.bf16.mxu1 %v5051_v45 }
 0x96b   :  { %2240 = vmatpush1.bf16.msra.mxu0 %v5049_v43  ;;  %2281 = vmatpush1.bf16.msra.mxu1 %v5054_v29 }
 0x96c   :  { %2336 = vmatprep.subr.bf16.mxu0 %v4964_v30  ;;  %2377 = vmatprep.subr.bf16.mxu1 %v4966_v10 }
 0xa06   :  { %v5164_v27 = vpop.f32.mrf.mxu0  ;;  %v5166_v32 = vpop.f32.mrf.mxu1 }
 0xa07   :  { %5732 = vst [vmem:[#allocation32_spill] sm:$0xff] %v5164_v27  ;;  %5733 = vst [vmem:[#allocation38_spill] sm:$0xff] %v5166_v32  ;;  %v1795_v27 = vadd.f32 %v1794_v54, %v5174_v28  ;;  %v1876_v54 = vadd.f32 %v1875_v1, %v5184_v3 }
 0xa08   :  { %v5168_v33 = vpop.f32.mrf.mxu0  ;;  %v5170_v6 = vpop.f32.mrf.mxu1 }
 0xa09   :  { %5734 = vst [vmem:[#allocation39_spill] sm:$0xff] %v5168_v33  ;;  %5735 = vst [vmem:[#allocation40_spill] sm:$0xff] %v5170_v6  ;;  %v1797_v33 = vadd.f32 %v1796_v2, %v5178_v57  ;;  %v5740_v2 = vsub.s32 3, %v5736_v56 }
 0xa0a   :  { %v1838_v23 = vpop.f32.mrf.mxu0  ;;  %v1919_v16 = vpop.f32.mrf.mxu1 }
 0xa0c   :  { %v1839_v63 = vpop.f32.mrf.mxu0  ;;  %v1920_v24 = vpop.f32.mrf.mxu1 }
 0xa0e   :  { %v2148_v42 = vpop.f32.mrf.mxu0  ;;  %v2189_v32 = vpop.f32.mrf.mxu1 }
 0xa0f   :  { %v2196_v41 = vadd.f32 %v2148_v42, %v1795_v27  ;;  %v5189_v42 = vrot.slane %v1578_v31, %v5740_v2  ;;  %v2198_v27 = vadd.f32 %v2189_v32, %v1876_v54 }
 0xa10   :  { %v2150_v6 = vpop.f32.mrf.mxu0  ;;  %v2191_v5 = vpop.f32.mrf.mxu1 }
 0xa11   :  { %v3429_v40 = vmul.f32 -1.442695, %v2196_v41  ;;  %v2197_v15 = vadd.f32 %v2150_v6, %v1797_v33  ;;  %v1878_v41 = vadd.f32 %v1877_v59, %v5189_v42 }
 0xa12   :  { %v2152_v61 = vpop.f32.mrf.mxu0  ;;  %v2193_v23 = vpop.f32.mrf.mxu1 }
 0xa13   :  { %3836 = vpow2.f32 %v3429_v40  ;;  %v3430_v16 = vmul.f32 -1.442695, %v2197_v15  ;;  %v3431_v61 = vmul.f32 -1.442695, %v2198_v27  ;;  %v2199_v40 = vadd.f32 %v2191_v5, %v1878_v41 }
 0xa14   :  { %v2153_v63 = vpop.f32.mrf.mxu0  ;;  %v2194_v24 = vpop.f32.mrf.mxu1  ;;  %v1799_v27 = vadd.f32 %v5105_v9, %v5174_v28  ;;  %v1880_v9 = vadd.f32 %v5107_v8, %v5184_v3 }
 0xa15   :  { %3838 = vpow2.f32 %v3430_v16 }
 0xa16   :  { %3840 = vpow2.f32 %v3431_v61 }
 0xa20   :  { %v3837_v33 = vpop.eup %3836 }
 0xa21   :  { %v2209_v6 = vadd.f32 1.0, %v3837_v33  ;;  %v1801_v33 = vadd.f32 %v5109_v18, %v5178_v57 }
 0xa22   :  { %v3839_v15 = vpop.eup %3838 }
 0xa23   :  { %3842 = vrcp.f32 %v2209_v6  ;;  %v2210_v23 = vadd.f32 1.0, %v3839_v15  ;;  %v3841_v16 = vpop.eup %3840 }
 0xa24   :  { %3844 = vtanh.f32 %v2199_v40  ;;  %v2211_v56 = vadd.f32 1.0, %v3841_v16 }
 0xa25   :  { %3846 = vrcp.f32 %v2210_v23 }
 0xa26   :  { %3848 = vrcp.f32 %v2211_v56 }
 0xa30   :  { %v3843_v25 = vpop.eup %3842 }
 0xa31   :  { %v3845_v1 = vpop.eup %3844 }
 0xa32   :  { %v3847_v63 = vpop.eup %3846  ;;  %v2220_v24 = vmul.f32 %v3845_v1, %v3843_v25 }
 0xa33   :  { %v2219_v31 = vmul.f32 0.0, %v3847_v63  ;;  %v3849_v59 = vpop.eup %3848 }
 0xa35   :  { %v5192_v32 = vadd.f32 %v2220_v24, %v2219_v31 }
 0xa37   :  { %3850 = vtanh.f32 %v5192_v32 }
 0xa44   :  { %v3851_v5 = vpop.eup %3850 }
 0xa45   :  { %v5195_v54 = vmul.f32 %v3851_v5, %v3849_v59  ;;  %v1882_v59 = vadd.f32 %v5111_v19, %v5189_v42 }
 0xa47   :  { %v2224_v2 = vpack.c.bf16 %v5195_v54, %v5195_v54 }
 0xa49   :  { %2258 = vmatmul.mubr.bf16.vlgmr.msra.gmra.mxu0 %v2224_v2  ;;  %2299 = vmatmul.mubr.bf16.vlgmr.msra.gmra.mxu1 %v2224_v2 }
 0xa4a   :  { %2337 = vmatpush1.bf16.msra.mxu0 %v4968_v11  ;;  %2378 = vmatpush1.bf16.msra.mxu1 %v4970_v7 }
 0xa4b   :  { %2338 = vmatprep.subr.bf16.mxu0 %v4976_v44  ;;  %2379 = vmatprep.subr.bf16.mxu1 %v4978_v0 }
 0xa4c   :  { %2368 = vmatprep.mubr.bf16.mxu0 %v5688_v26  ;;  %2409 = vmatprep.mubr.bf16.mxu1 %v5688_v26 }
 0xa4e   :  { %2339 = vmatpush1.bf16.msra.mxu0 %v4980_v4  ;;  %2380 = vmatpush1.bf16.msra.mxu1 %v4986_v38 }
 0xa4f   :  { %2340 = vmatprep.subr.bf16.mxu0 %v4982_v36  ;;  %2381 = vmatprep.subr.bf16.mxu1 %v4995_v47 }
 0xa52   :  { %2341 = vmatpush1.bf16.msra.mxu0 %v4989_v37  ;;  %2382 = vmatpush1.bf16.msra.mxu1 %v4997_v21 }
 0xa53   :  { %2342 = vmatprep.subr.bf16.mxu0 %v4993_v46  ;;  %2383 = vmatprep.subr.bf16.mxu1 %v5005_v48 }
 0xa56   :  { %2343 = vmatpush1.bf16.msra.mxu0 %v5001_v20  ;;  %2384 = vmatpush1.bf16.msra.mxu1 %v5009_v50 }
 0xa57   :  { %2344 = vmatprep.subr.bf16.mxu0 %v5007_v49  ;;  %2385 = vmatprep.subr.bf16.mxu1 %v5017_v52 }
 0xa5a   :  { %2345 = vmatpush1.bf16.msra.mxu0 %v5013_v51  ;;  %2386 = vmatpush1.bf16.msra.mxu1 %v5021_v55 }
 0xa5b   :  { %2346 = vmatprep.subr.bf16.mxu0 %v5019_v53  ;;  %2387 = vmatprep.subr.bf16.mxu1 %v5029_v60 }
 0xa5e   :  { %2347 = vmatpush1.bf16.msra.mxu0 %v5025_v12  ;;  %2388 = vmatpush1.bf16.msra.mxu1 %v5031_v58 }
 0xa5f   :  { %2348 = vmatprep.subr.bf16.mxu0 %v5035_v17  ;;  %2389 = vmatprep.subr.bf16.mxu1 %v5040_v35 }
 0xa62   :  { %2349 = vmatpush1.bf16.msra.mxu0 %v5037_v13  ;;  %2390 = vmatpush1.bf16.msra.mxu1 %v5043_v62 }
 0xa63   :  { %2350 = vmatprep.subr.bf16.mxu0 %v5047_v39  ;;  %2391 = vmatprep.subr.bf16.mxu1 %v5051_v45 }
 0xa66   :  { %2351 = vmatpush1.bf16.msra.mxu0 %v5049_v43  ;;  %2392 = vmatpush1.bf16.msra.mxu1 %v5054_v29 }
 0xa67   :  { %2447 = vmatprep.subr.bf16.mxu0 %v4964_v30  ;;  %2488 = vmatprep.subr.bf16.mxu1 %v4966_v10 }
 0xb09   :  { %v2259_v41 = vpop.f32.mrf.mxu0  ;;  %v2300_v61 = vpop.f32.mrf.mxu1 }
 0xb0a   :  { %v2307_v40 = vadd.f32 %v2259_v41, %v1799_v27  ;;  %v2309_v24 = vadd.f32 %v2300_v61, %v1880_v9 }
 0xb0b   :  { %v2261_v6 = vpop.f32.mrf.mxu0  ;;  %v2302_v15 = vpop.f32.mrf.mxu1 }
 0xb0c   :  { %v3432_v23 = vmul.f32 -1.442695, %v2307_v40  ;;  %v2308_v16 = vadd.f32 %v2261_v6, %v1801_v33  ;;  %v3434_v18 = vmul.f32 -1.442695, %v2309_v24  ;;  %v2310_v5 = vadd.f32 %v2302_v15, %v1882_v59 }
 0xb0d   :  { %v2263_v25 = vpop.f32.mrf.mxu0  ;;  %v2304_v1 = vpop.f32.mrf.mxu1  ;;  %v1807_v24 = vadd.f32 %v5117_v34, %v5178_v57 }
 0xb0e   :  { %3852 = vpow2.f32 %v3432_v23  ;;  %v3433_v63 = vmul.f32 -1.442695, %v2308_v16 }
 0xb0f   :  { %v2264_v56 = vpop.f32.mrf.mxu0  ;;  %v2305_v31 = vpop.f32.mrf.mxu1 }
 0xb10   :  { %3854 = vpow2.f32 %v3433_v63 }
 0xb11   :  { %3856 = vpow2.f32 %v3434_v18 }
 0xb12   :  { %3858 = vtanh.f32 %v2310_v5 }
 0xb1b   :  { %v3853_v2 = vpop.eup %3852 }
 0xb1c   :  { %v2320_v27 = vadd.f32 1.0, %v3853_v2 }
 0xb1d   :  { %v3855_v41 = vpop.eup %3854 }
 0xb1e   :  { %3860 = vrcp.f32 %v2320_v27  ;;  %v2321_v33 = vadd.f32 1.0, %v3855_v41  ;;  %v3857_v40 = vpop.eup %3856 }
 0xb1f   :  { %v3859_v6 = vpop.eup %3858  ;;  %v2322_v8 = vadd.f32 1.0, %v3857_v40 }
 0xb20   :  { %3862 = vrcp.f32 %v2321_v33 }
 0xb21   :  { %3864 = vrcp.f32 %v2322_v8 }
 0xb2b   :  { %v3861_v23 = vpop.eup %3860 }
 0xb2c   :  { %v2331_v16 = vmul.f32 %v3861_v23, %v3859_v6 }
 0xb2d   :  { %v3863_v25 = vpop.eup %3862 }
 0xb2e   :  { %v2330_v61 = vmul.f32 %v3863_v25, %v5192_v32  ;;  %v3865_v19 = vpop.eup %3864  ;;  %v1805_v32 = vadd.f32 %v5113_v22, %v5174_v28  ;;  %v1886_v22 = vadd.f32 %v5115_v14, %v5184_v3  ;;  %v5741_v25 = vld [vmem:[#allocation16_spill] sm:$0xff] }
 0xb2f   :  { %v1888_v8 = vadd.f32 %v5741_v25, %v5189_v42 }
 0xb30   :  { %v5242_v1 = vadd.f32 %v2331_v16, %v2330_v61 }
 0xb32   :  { %3866 = vtanh.f32 %v5242_v1 }
 0xb3f   :  { %v3867_v15 = vpop.eup %3866 }
 0xb40   :  { %v5245_v63 = vmul.f32 %v3867_v15, %v3865_v19 }
 0xb42   :  { %v2335_v56 = vpack.c.bf16 %v5245_v63, %v5245_v63 }
 0xb44   :  { %2369 = vmatmul.mubr.bf16.vlgmr.msra.gmra.mxu0 %v2335_v56  ;;  %2410 = vmatmul.mubr.bf16.vlgmr.msra.gmra.mxu1 %v2335_v56 }
 0xb45   :  { %2448 = vmatpush1.bf16.msra.mxu0 %v4968_v11  ;;  %2489 = vmatpush1.bf16.msra.mxu1 %v4970_v7 }
 0xb46   :  { %2449 = vmatprep.subr.bf16.mxu0 %v4976_v44  ;;  %2490 = vmatprep.subr.bf16.mxu1 %v4978_v0 }
 0xb47   :  { %2479 = vmatprep.mubr.bf16.mxu0 %v5688_v26  ;;  %2520 = vmatprep.mubr.bf16.mxu1 %v5688_v26 }
 0xb49   :  { %2450 = vmatpush1.bf16.msra.mxu0 %v4980_v4  ;;  %2491 = vmatpush1.bf16.msra.mxu1 %v4986_v38 }
 0xb4a   :  { %2451 = vmatprep.subr.bf16.mxu0 %v4982_v36  ;;  %2492 = vmatprep.subr.bf16.mxu1 %v4995_v47 }
 0xb4d   :  { %2452 = vmatpush1.bf16.msra.mxu0 %v4989_v37  ;;  %2493 = vmatpush1.bf16.msra.mxu1 %v4997_v21 }
 0xb4e   :  { %2453 = vmatprep.subr.bf16.mxu0 %v4993_v46  ;;  %2494 = vmatprep.subr.bf16.mxu1 %v5005_v48 }
 0xb51   :  { %2454 = vmatpush1.bf16.msra.mxu0 %v5001_v20  ;;  %2495 = vmatpush1.bf16.msra.mxu1 %v5009_v50 }
 0xb52   :  { %2455 = vmatprep.subr.bf16.mxu0 %v5007_v49  ;;  %2496 = vmatprep.subr.bf16.mxu1 %v5017_v52 }
 0xb55   :  { %2456 = vmatpush1.bf16.msra.mxu0 %v5013_v51  ;;  %2497 = vmatpush1.bf16.msra.mxu1 %v5021_v55 }
 0xb56   :  { %2457 = vmatprep.subr.bf16.mxu0 %v5019_v53  ;;  %2498 = vmatprep.subr.bf16.mxu1 %v5029_v60 }
 0xb59   :  { %2458 = vmatpush1.bf16.msra.mxu0 %v5025_v12  ;;  %2499 = vmatpush1.bf16.msra.mxu1 %v5031_v58 }
 0xb5a   :  { %2459 = vmatprep.subr.bf16.mxu0 %v5035_v17  ;;  %2500 = vmatprep.subr.bf16.mxu1 %v5040_v35 }
 0xb5d   :  { %2460 = vmatpush1.bf16.msra.mxu0 %v5037_v13  ;;  %2501 = vmatpush1.bf16.msra.mxu1 %v5043_v62 }
 0xb5e   :  { %2461 = vmatprep.subr.bf16.mxu0 %v5047_v39  ;;  %2502 = vmatprep.subr.bf16.mxu1 %v5051_v45 }
 0xb61   :  { %2462 = vmatpush1.bf16.msra.mxu0 %v5049_v43  ;;  %2503 = vmatpush1.bf16.msra.mxu1 %v5054_v29 }
 0xb62   :  { %2558 = vmatprep.subr.bf16.mxu0 %v4964_v30  ;;  %2599 = vmatprep.subr.bf16.mxu1 %v4966_v10 }
 0xc04   :  { %v2370_v31 = vpop.f32.mrf.mxu0  ;;  %v2411_v9 = vpop.f32.mrf.mxu1 }
 0xc05   :  { %v2418_v59 = vadd.f32 %v2370_v31, %v1805_v32  ;;  %v2420_v16 = vadd.f32 %v2411_v9, %v1886_v22 }
 0xc06   :  { %v2372_v18 = vpop.f32.mrf.mxu0  ;;  %v2413_v5 = vpop.f32.mrf.mxu1 }
 0xc07   :  { %v3435_v2 = vmul.f32 -1.442695, %v2418_v59  ;;  %v2419_v27 = vadd.f32 %v2372_v18, %v1807_v24  ;;  %v3437_v34 = vmul.f32 -1.442695, %v2420_v16  ;;  %v2421_v61 = vadd.f32 %v2413_v5, %v1888_v8  ;;  %v5743_v16 = vld [vmem:[#allocation17_spill] sm:$0xff] }
 0xc08   :  { %v2374_v41 = vpop.f32.mrf.mxu0  ;;  %v2415_v33 = vpop.f32.mrf.mxu1  ;;  %v1811_v25 = vadd.f32 %v5743_v16, %v5178_v57 }
 0xc09   :  { %3868 = vpow2.f32 %v3435_v2  ;;  %v3436_v40 = vmul.f32 -1.442695, %v2419_v27 }
 0xc0a   :  { %v2375_v6 = vpop.f32.mrf.mxu0  ;;  %v2416_v23 = vpop.f32.mrf.mxu1 }
 0xc0b   :  { %3870 = vpow2.f32 %v3436_v40 }
 0xc0c   :  { %3872 = vpow2.f32 %v3437_v34 }
 0xc0d   :  { %3874 = vtanh.f32 %v2421_v61 }
 0xc16   :  { %v3869_v19 = vpop.eup %3868 }
 0xc17   :  { %v2431_v15 = vadd.f32 1.0, %v3869_v19 }
 0xc18   :  { %v3871_v56 = vpop.eup %3870 }
 0xc19   :  { %3876 = vrcp.f32 %v2431_v15  ;;  %v2432_v32 = vadd.f32 1.0, %v3871_v56  ;;  %v3873_v31 = vpop.eup %3872 }
 0xc1a   :  { %v3875_v24 = vpop.eup %3874  ;;  %v2433_v14 = vadd.f32 1.0, %v3873_v31 }
 0xc1b   :  { %3878 = vrcp.f32 %v2432_v32 }
 0xc1c   :  { %3880 = vrcp.f32 %v2433_v14 }
 0xc26   :  { %v3877_v59 = vpop.eup %3876 }
 0xc27   :  { %v2442_v18 = vmul.f32 %v3877_v59, %v3875_v24 }
 0xc28   :  { %v3879_v2 = vpop.eup %3878 }
 0xc29   :  { %v2441_v9 = vmul.f32 %v3879_v2, %v5242_v1  ;;  %v3881_v5 = vpop.eup %3880  ;;  %v5742_v1 = vld [vmem:[#allocation26_spill] sm:$0xff] }
 0xc2a   :  { %v1809_v6 = vadd.f32 %v5742_v1, %v5174_v28 }
 0xc2b   :  { %v5292_v27 = vadd.f32 %v2442_v18, %v2441_v9  ;;  %v5744_v18 = vld [vmem:[#allocation25_spill] sm:$0xff]  ;;  %v5745_v9 = vld [vmem:[#allocation18_spill] sm:$0xff] }
 0xc2c   :  { %v1890_v2 = vadd.f32 %v5744_v18, %v5184_v3 }
 0xc2d   :  { %3882 = vtanh.f32 %v5292_v27 }
 0xc3a   :  { %v3883_v41 = vpop.eup %3882 }
 0xc3b   :  { %v5295_v33 = vmul.f32 %v3883_v41, %v3881_v5  ;;  %v1892_v5 = vadd.f32 %v5745_v9, %v5189_v42 }
 0xc3d   :  { %v2446_v40 = vpack.c.bf16 %v5295_v33, %v5295_v33 }
 0xc3f   :  { %2480 = vmatmul.mubr.bf16.vlgmr.msra.gmra.mxu0 %v2446_v40  ;;  %2521 = vmatmul.mubr.bf16.vlgmr.msra.gmra.mxu1 %v2446_v40 }
 0xc40   :  { %2559 = vmatpush1.bf16.msra.mxu0 %v4968_v11  ;;  %2600 = vmatpush1.bf16.msra.mxu1 %v4970_v7 }
 0xc41   :  { %2560 = vmatprep.subr.bf16.mxu0 %v4976_v44  ;;  %2601 = vmatprep.subr.bf16.mxu1 %v4978_v0 }
 0xc42   :  { %2590 = vmatprep.mubr.bf16.mxu0 %v5688_v26  ;;  %2631 = vmatprep.mubr.bf16.mxu1 %v5688_v26 }
 0xc44   :  { %2561 = vmatpush1.bf16.msra.mxu0 %v4980_v4  ;;  %2602 = vmatpush1.bf16.msra.mxu1 %v4986_v38 }
 0xc45   :  { %2562 = vmatprep.subr.bf16.mxu0 %v4982_v36  ;;  %2603 = vmatprep.subr.bf16.mxu1 %v4995_v47 }
 0xc48   :  { %2563 = vmatpush1.bf16.msra.mxu0 %v4989_v37  ;;  %2604 = vmatpush1.bf16.msra.mxu1 %v4997_v21 }
 0xc49   :  { %2564 = vmatprep.subr.bf16.mxu0 %v4993_v46  ;;  %2605 = vmatprep.subr.bf16.mxu1 %v5005_v48 }
 0xc4c   :  { %2565 = vmatpush1.bf16.msra.mxu0 %v5001_v20  ;;  %2606 = vmatpush1.bf16.msra.mxu1 %v5009_v50 }
 0xc4d   :  { %2566 = vmatprep.subr.bf16.mxu0 %v5007_v49  ;;  %2607 = vmatprep.subr.bf16.mxu1 %v5017_v52 }
 0xc50   :  { %2567 = vmatpush1.bf16.msra.mxu0 %v5013_v51  ;;  %2608 = vmatpush1.bf16.msra.mxu1 %v5021_v55 }
 0xc51   :  { %2568 = vmatprep.subr.bf16.mxu0 %v5019_v53  ;;  %2609 = vmatprep.subr.bf16.mxu1 %v5029_v60 }
 0xc54   :  { %2569 = vmatpush1.bf16.msra.mxu0 %v5025_v12  ;;  %2610 = vmatpush1.bf16.msra.mxu1 %v5031_v58 }
 0xc55   :  { %2570 = vmatprep.subr.bf16.mxu0 %v5035_v17  ;;  %2611 = vmatprep.subr.bf16.mxu1 %v5040_v35 }
 0xc58   :  { %2571 = vmatpush1.bf16.msra.mxu0 %v5037_v13  ;;  %2612 = vmatpush1.bf16.msra.mxu1 %v5043_v62 }
 0xc59   :  { %2572 = vmatprep.subr.bf16.mxu0 %v5047_v39  ;;  %2613 = vmatprep.subr.bf16.mxu1 %v5051_v45 }
 0xc5c   :  { %2573 = vmatpush1.bf16.msra.mxu0 %v5049_v43  ;;  %2614 = vmatpush1.bf16.msra.mxu1 %v5054_v29 }
 0xc5d   :  { %2669 = vmatprep.subr.bf16.mxu0 %v4964_v30  ;;  %2710 = vmatprep.subr.bf16.mxu1 %v4966_v10 }
 0xcff   :  { %v2481_v23 = vpop.f32.mrf.mxu0  ;;  %v2522_v22 = vpop.f32.mrf.mxu1 }
 0xd00   :  { %v2529_v8 = vadd.f32 %v2481_v23, %v1809_v6  ;;  %v2531_v14 = vadd.f32 %v2522_v22, %v1890_v2 }
 0xd01   :  { %v2483_v34 = vpop.f32.mrf.mxu0  ;;  %v2524_v61 = vpop.f32.mrf.mxu1 }
 0xd02   :  { %v3438_v19 = vmul.f32 -1.442695, %v2529_v8  ;;  %v2530_v15 = vadd.f32 %v2483_v34, %v1811_v25  ;;  %v3440_v41 = vmul.f32 -1.442695, %v2531_v14  ;;  %v2532_v40 = vadd.f32 %v2524_v61, %v1892_v5 }
 0xd03   :  { %v2485_v56 = vpop.f32.mrf.mxu0  ;;  %v2526_v32 = vpop.f32.mrf.mxu1 }
 0xd04   :  { %3884 = vpow2.f32 %v3438_v19  ;;  %v3439_v31 = vmul.f32 -1.442695, %v2530_v15 }
 0xd05   :  { %v2486_v24 = vpop.f32.mrf.mxu0  ;;  %v2527_v59 = vpop.f32.mrf.mxu1 }
 0xd06   :  { %3886 = vpow2.f32 %v3439_v31 }
 0xd07   :  { %3888 = vpow2.f32 %v3440_v41 }
 0xd08   :  { %3890 = vtanh.f32 %v2532_v40  ;;  %v5399_v40 = vld [vmem:[#allocation7 + $0xe0] ss:$16 sps:$4 sm:$0xff]  }
 0xd11   :  { %v3885_v1 = vpop.eup %3884 }
 0xd12   :  { %v2542_v6 = vadd.f32 1.0, %v3885_v1  ;;  %v5402_v1 = vld [vmem:[#allocation7 + $0xe8] ss:$16 sps:$4 sm:$0xff]  }
 0xd13   :  { %v3887_v23 = vpop.eup %3886 }
 0xd14   :  { %3892 = vrcp.f32 %v2542_v6  ;;  %v2543_v16 = vadd.f32 1.0, %v3887_v23  ;;  %v3889_v25 = vpop.eup %3888  ;;  %v5405_v6 = vld [vmem:[#allocation7 + $0xc4] ss:$16 sps:$4 sm:$0xff]   ;;  %v5408_v23 = vld [vmem:[#allocation7 + $0xcc] ss:$16 sps:$4 sm:$0xff]  }
 0xd15   :  { %v3891_v8 = vpop.eup %3890  ;;  %v2544_v56 = vadd.f32 1.0, %v3889_v25  ;;  %v5416_v25 = vld [vmem:[#allocation7 + $0xc8] ss:$16 sps:$4 sm:$0xff]  }
 0xd16   :  { %3894 = vrcp.f32 %v2543_v16  ;;  %v5413_v16 = vld [vmem:[#allocation7 + $0xc0] ss:$16 sps:$4 sm:$0xff]  }
 0xd17   :  { %3896 = vrcp.f32 %v2544_v56  ;;  %v5431_v56 = vld [vmem:[#allocation7 + $0x84] ss:$16 sps:$4 sm:$0xff]  }
 0xd21   :  { %v3893_v34 = vpop.eup %3892 }
 0xd22   :  { %v2553_v19 = vmul.f32 %v3893_v34, %v3891_v8  ;;  %v5419_v8 = vld [vmem:[#allocation7 + $0xa4] ss:$16 sps:$4 sm:$0xff]   ;;  %v5422_v34 = vld [vmem:[#allocation7 + $0xac] ss:$16 sps:$4 sm:$0xff]  }
 0xd23   :  { %v3895_v15 = vpop.eup %3894 }
 0xd24   :  { %v2552_v22 = vmul.f32 %v3895_v15, %v5292_v27  ;;  %v3897_v61 = vpop.eup %3896  ;;  %v5428_v15 = vld [vmem:[#allocation7 + $0xa8] ss:$16 sps:$4 sm:$0xff]  }
 0xd26   :  { %v5342_v32 = vadd.f32 %v2553_v19, %v2552_v22  ;;  %v5425_v19 = vld [vmem:[#allocation7 + $0xa0] ss:$16 sps:$4 sm:$0xff]   ;;  %v5434_v22 = vld [vmem:[#allocation7 + $0x8c] ss:$16 sps:$4 sm:$0xff]  }
 0xd28   :  { %3898 = vtanh.f32 %v5342_v32 }
 0xd35   :  { %v3899_v31 = vpop.eup %3898 }
 0xd36   :  { %v5345_v24 = vmul.f32 %v3899_v31, %v3897_v61  ;;  %v5440_v61 = vld [vmem:[#allocation7 + $0x88] ss:$16 sps:$4 sm:$0xff]   ;;  %v5443_v31 = vld [vmem:[#allocation7 + $0x64] ss:$16 sps:$4 sm:$0xff]  }
 0xd38   :  { %v2557_v59 = vpack.c.bf16 %v5345_v24, %v5345_v24 }
 0xd3a   :  { %2591 = vmatmul.mubr.bf16.vlgmr.msra.gmra.mxu0 %v2557_v59  ;;  %2632 = vmatmul.mubr.bf16.vlgmr.msra.gmra.mxu1 %v2557_v59  ;;  %v5446_v59 = vld [vmem:[#allocation7 + $0x6c] ss:$16 sps:$4 sm:$0xff]  }
 0xd3b   :  { %2670 = vmatpush1.bf16.msra.mxu0 %v4968_v11  ;;  %2711 = vmatpush1.bf16.msra.mxu1 %v4970_v7  ;;  %v5746_v11 = vld [vmem:[#allocation29_spill] sm:$0xff] }
 0xd3c   :  { %2671 = vmatprep.subr.bf16.mxu0 %v4976_v44  ;;  %2712 = vmatprep.subr.bf16.mxu1 %v4978_v0  ;;  %v1815_v7 = vadd.f32 %v5746_v11, %v5174_v28  ;;  %v5449_v11 = vld [vmem:[#allocation7 + $0x60] ss:$16 sps:$4 sm:$0xff]  }
 0xd3d   :  { %2701 = vmatprep.mubr.bf16.mxu0 %v5688_v26  ;;  %2742 = vmatprep.mubr.bf16.mxu1 %v5688_v26 }
 0xd3f   :  { %2672 = vmatpush1.bf16.msra.mxu0 %v4980_v4  ;;  %2713 = vmatpush1.bf16.msra.mxu1 %v4986_v38  ;;  %v5747_v4 = vld [vmem:[#allocation19_spill] sm:$0xff] }
 0xd40   :  { %2673 = vmatprep.subr.bf16.mxu0 %v4982_v36  ;;  %2714 = vmatprep.subr.bf16.mxu1 %v4995_v47  ;;  %v1817_v36 = vadd.f32 %v5747_v4, %v5178_v57  ;;  %v5461_v4 = vld [vmem:[#allocation7 + $0x40] ss:$16 sps:$4 sm:$0xff]  }
 0xd43   :  { %2674 = vmatpush1.bf16.msra.mxu0 %v4989_v37  ;;  %2715 = vmatpush1.bf16.msra.mxu1 %v4997_v21 }
 0xd44   :  { %2675 = vmatprep.subr.bf16.mxu0 %v4993_v46  ;;  %2716 = vmatprep.subr.bf16.mxu1 %v5005_v48 }
 0xd47   :  { %2676 = vmatpush1.bf16.msra.mxu0 %v5001_v20  ;;  %2717 = vmatpush1.bf16.msra.mxu1 %v5009_v50 }
 0xd48   :  { %2677 = vmatprep.subr.bf16.mxu0 %v5007_v49  ;;  %2718 = vmatprep.subr.bf16.mxu1 %v5017_v52 }
 0xd4b   :  { %2678 = vmatpush1.bf16.msra.mxu0 %v5013_v51  ;;  %2719 = vmatpush1.bf16.msra.mxu1 %v5021_v55 }
 0xd4c   :  { %2679 = vmatprep.subr.bf16.mxu0 %v5019_v53  ;;  %2720 = vmatprep.subr.bf16.mxu1 %v5029_v60  ;;  %v5749_v53 = vld [vmem:[#allocation20_spill] sm:$0xff] }
 0xd4d   :  { %v1898_v55 = vadd.f32 %v5749_v53, %v5189_v42 }
 0xd4f   :  { %2680 = vmatpush1.bf16.msra.mxu0 %v5025_v12  ;;  %2721 = vmatpush1.bf16.msra.mxu1 %v5031_v58 }
 0xd50   :  { %2681 = vmatprep.subr.bf16.mxu0 %v5035_v17  ;;  %2722 = vmatprep.subr.bf16.mxu1 %v5040_v35 }
 0xd53   :  { %2682 = vmatpush1.bf16.msra.mxu0 %v5037_v13  ;;  %2723 = vmatpush1.bf16.msra.mxu1 %v5043_v62 }
 0xd54   :  { %2683 = vmatprep.subr.bf16.mxu0 %v5047_v39  ;;  %2724 = vmatprep.subr.bf16.mxu1 %v5051_v45 }
 0xd57   :  { %2684 = vmatpush1.bf16.msra.mxu0 %v5049_v43  ;;  %2725 = vmatpush1.bf16.msra.mxu1 %v5054_v29 }
 0xd58   :  { %2780 = vmatprep.subr.bf16.mxu0 %v4964_v30  ;;  %2821 = vmatprep.subr.bf16.mxu1 %v4966_v10  ;;  %v5748_v10 = vld [vmem:[#allocation31_spill] sm:$0xff] }
 0xd59   :  { %v1896_v51 = vadd.f32 %v5748_v10, %v5184_v3  ;;  %v5750_v10 = vld [vmem:[#allocation34_spill] sm:$0xff] }
 0xdfa   :  { %v2592_v44 = vpop.f32.mrf.mxu0  ;;  %v2633_v0 = vpop.f32.mrf.mxu1 }
 0xdfb   :  { %v2640_v38 = vadd.f32 %v2592_v44, %v1815_v7  ;;  %v2642_v52 = vadd.f32 %v2633_v0, %v1896_v51  ;;  %v5452_v7 = vld [vmem:[#allocation7 + $0x68] ss:$16 sps:$4 sm:$0xff]   ;;  %v5455_v44 = vld [vmem:[#allocation7 + $0x44] ss:$16 sps:$4 sm:$0xff]   ;;  %v5458_v0 = vld [vmem:[#allocation7 + $0x4c] ss:$16 sps:$4 sm:$0xff]   ;;  %v1819_v51 = vadd.f32 %v5750_v10, %v5174_v28 }
 0xdfc   :  { %v2594_v37 = vpop.f32.mrf.mxu0  ;;  %v2635_v46 = vpop.f32.mrf.mxu1 }
 0xdfd   :  { %v3441_v47 = vmul.f32 -1.442695, %v2640_v38  ;;  %v2641_v21 = vadd.f32 %v2594_v37, %v1817_v36  ;;  %v3443_v12 = vmul.f32 -1.442695, %v2642_v52  ;;  %v2643_v60 = vadd.f32 %v2635_v46, %v1898_v55  ;;  %v5464_v36 = vld [vmem:[#allocation7 + $0x48] ss:$16 sps:$4 sm:$0xff]  }
 0xdfe   :  { %v2596_v20 = vpop.f32.mrf.mxu0  ;;  %v2637_v48 = vpop.f32.mrf.mxu1  ;;  %v5467_v38 = vld [vmem:[#allocation7 + $0x24] ss:$16 sps:$4 sm:$0xff]   ;;  %v5470_v37 = vld [vmem:[#allocation7 + $0x2c] ss:$16 sps:$4 sm:$0xff]   ;;  %v5473_v46 = vld [vmem:[#allocation7 + $0x20] ss:$16 sps:$4 sm:$0xff]  }
 0xdff   :  { %3900 = vpow2.f32 %v3441_v47  ;;  %v3442_v49 = vmul.f32 -1.442695, %v2641_v21  ;;  %v5476_v47 = vld [vmem:[#allocation7 + $0x28] ss:$16 sps:$4 sm:$0xff]   ;;  %v5479_v21 = vld [vmem:[#allocation7 + $0x4] ss:$16 sps:$4 sm:$0xff]  }
 0xe00   :  { %v2597_v30 = vpop.f32.mrf.mxu0  ;;  %v2638_v50 = vpop.f32.mrf.mxu1  ;;  %v5482_v20 = vld [vmem:[#allocation7 + $0xc] ss:$16 sps:$4 sm:$0xff]   ;;  %v5485_v48 = vld [vmem:[#allocation7] ss:$16 sps:$4 sm:$0xff]  }
 0xe01   :  { %3902 = vpow2.f32 %v3442_v49  ;;  %v5488_v49 = vld [vmem:[#allocation7 + $0x8] ss:$16 sps:$4 sm:$0xff]   ;;  %v5491_v30 = vld [vmem:[#allocation7 + $0xe4] ss:$16 sps:$4 sm:$0xff]   ;;  %v5494_v50 = vld [vmem:[#allocation7 + $0xec] ss:$16 sps:$4 sm:$0xff]  }
 0xe02   :  { %3904 = vpow2.f32 %v3443_v12  ;;  %v5751_v55 = vld [vmem:[#allocation21_spill] sm:$0xff] }
 0xe03   :  { %3906 = vtanh.f32 %v2643_v60  ;;  %v1821_v12 = vadd.f32 %v5751_v55, %v5178_v57 }
 0xe0c   :  { %v3901_v58 = vpop.eup %3900 }
 0xe0d   :  { %v2653_v17 = vadd.f32 1.0, %v3901_v58 }
 0xe0e   :  { %v3903_v13 = vpop.eup %3902 }
 0xe0f   :  { %3908 = vrcp.f32 %v2653_v17  ;;  %v2654_v35 = vadd.f32 1.0, %v3903_v13  ;;  %v3905_v62 = vpop.eup %3904 }
 0xe10   :  { %v3907_v39 = vpop.eup %3906  ;;  %v2655_v27 = vadd.f32 1.0, %v3905_v62 }
 0xe11   :  { %3910 = vrcp.f32 %v2654_v35 }
 0xe12   :  { %3912 = vrcp.f32 %v2655_v27  ;;  %v5752_v27 = vld [vmem:[#allocation33_spill] sm:$0xff] }
 0xe1c   :  { %v3909_v43 = vpop.eup %3908 }
 0xe1d   :  { %v2664_v45 = vmul.f32 %v3909_v43, %v3907_v39 }
 0xe1e   :  { %v3911_v29 = vpop.eup %3910 }
 0xe1f   :  { %v2663_v18 = vmul.f32 %v3911_v29, %v5342_v32  ;;  %v3913_v14 = vpop.eup %3912  ;;  %v5437_v32 = vld [vmem:[#allocation7 + $0x80] ss:$16 sps:$4 sm:$0xff]  }
 0xe21   :  { %v5392_v2 = vadd.f32 %v2664_v45, %v2663_v18  ;;  %v1900_v18 = vadd.f32 %v5752_v27, %v5184_v3 }
 0xe23   :  { %3914 = vtanh.f32 %v5392_v2 }
 0xe30   :  { %v3915_v9 = vpop.eup %3914 }
 0xe31   :  { %v5395_v5 = vmul.f32 %v3915_v9, %v3913_v14  ;;  %v5753_v9 = vld [vmem:[#allocation22_spill] sm:$0xff] }
 0xe33   :  { %v2668_v41 = vpack.c.bf16 %v5395_v5, %v5395_v5 }
 0xe35   :  { %2702 = vmatmul.mubr.bf16.vlgmr.msra.gmra.mxu0 %v2668_v41  ;;  %2743 = vmatmul.mubr.bf16.vlgmr.msra.gmra.mxu1 %v2668_v41  ;;  %v1902_v41 = vadd.f32 %v5753_v9, %v5189_v42 }
 0xe36   :  { %2781 = vmatpush1.bf16.msra.mxu0 %v5399_v40  ;;  %2822 = vmatpush1.bf16.msra.mxu1 %v5402_v1 }
 0xe37   :  { %2782 = vmatprep.subr.bf16.mxu0 %v5405_v6  ;;  %2823 = vmatprep.subr.bf16.mxu1 %v5408_v23 }
 0xe38   :  { %2812 = vmatprep.mubr.bf16.mxu0 %v5688_v26  ;;  %2853 = vmatprep.mubr.bf16.mxu1 %v5688_v26 }
 0xe3a   :  { %2783 = vmatpush1.bf16.msra.mxu0 %v5413_v16  ;;  %2824 = vmatpush1.bf16.msra.mxu1 %v5416_v25 }
 0xe3b   :  { %2784 = vmatprep.subr.bf16.mxu0 %v5419_v8  ;;  %2825 = vmatprep.subr.bf16.mxu1 %v5422_v34 }
 0xe3e   :  { %2785 = vmatpush1.bf16.msra.mxu0 %v5425_v19  ;;  %2826 = vmatpush1.bf16.msra.mxu1 %v5428_v15 }
 0xe3f   :  { %2786 = vmatprep.subr.bf16.mxu0 %v5431_v56  ;;  %2827 = vmatprep.subr.bf16.mxu1 %v5434_v22 }
 0xe42   :  { %2787 = vmatpush1.bf16.msra.mxu0 %v5437_v32  ;;  %2828 = vmatpush1.bf16.msra.mxu1 %v5440_v61 }
 0xe43   :  { %2788 = vmatprep.subr.bf16.mxu0 %v5443_v31  ;;  %2829 = vmatprep.subr.bf16.mxu1 %v5446_v59 }
 0xe46   :  { %2789 = vmatpush1.bf16.msra.mxu0 %v5449_v11  ;;  %2830 = vmatpush1.bf16.msra.mxu1 %v5452_v7 }
 0xe47   :  { %2790 = vmatprep.subr.bf16.mxu0 %v5455_v44  ;;  %2831 = vmatprep.subr.bf16.mxu1 %v5458_v0 }
 0xe4a   :  { %2791 = vmatpush1.bf16.msra.mxu0 %v5461_v4  ;;  %2832 = vmatpush1.bf16.msra.mxu1 %v5464_v36 }
 0xe4b   :  { %2792 = vmatprep.subr.bf16.mxu0 %v5467_v38  ;;  %2833 = vmatprep.subr.bf16.mxu1 %v5470_v37 }
 0xe4e   :  { %2793 = vmatpush1.bf16.msra.mxu0 %v5473_v46  ;;  %2834 = vmatpush1.bf16.msra.mxu1 %v5476_v47 }
 0xe4f   :  { %2794 = vmatprep.subr.bf16.mxu0 %v5479_v21  ;;  %2835 = vmatprep.subr.bf16.mxu1 %v5482_v20 }
 0xe52   :  { %2795 = vmatpush1.bf16.msra.mxu0 %v5485_v48  ;;  %2836 = vmatpush1.bf16.msra.mxu1 %v5488_v49 }
 0xe53   :  { %2891 = vmatprep.subr.bf16.mxu0 %v5491_v30  ;;  %2932 = vmatprep.subr.bf16.mxu1 %v5494_v50 }
 0xef5   :  { %v2703_v52 = vpop.f32.mrf.mxu0  ;;  %v2744_v53 = vpop.f32.mrf.mxu1 }
 0xef6   :  { %v2751_v60 = vadd.f32 %v2703_v52, %v1819_v51  ;;  %v2753_v14 = vadd.f32 %v2744_v53, %v1900_v18 }
 0xef7   :  { %v2705_v58 = vpop.f32.mrf.mxu0  ;;  %v2746_v17 = vpop.f32.mrf.mxu1 }
 0xef8   :  { %v3444_v13 = vmul.f32 -1.442695, %v2751_v60  ;;  %v2752_v35 = vadd.f32 %v2705_v58, %v1821_v12  ;;  %v3446_v10 = vmul.f32 -1.442695, %v2753_v14  ;;  %v2754_v51 = vadd.f32 %v2746_v17, %v1902_v41 }
 0xef9   :  { %v2707_v62 = vpop.f32.mrf.mxu0  ;;  %v2748_v39 = vpop.f32.mrf.mxu1 }
 0xefa   :  { %3916 = vpow2.f32 %v3444_v13  ;;  %v3445_v43 = vmul.f32 -1.442695, %v2752_v35 }
 0xefb   :  { %v2708_v45 = vpop.f32.mrf.mxu0  ;;  %v2749_v29 = vpop.f32.mrf.mxu1 }
 0xefc   :  { %3918 = vpow2.f32 %v3445_v43 }
 0xefd   :  { %3920 = vpow2.f32 %v3446_v10  ;;  %v5755_v10 = vld [vmem:[#allocation23_spill] sm:$0xff] }
 0xefe   :  { %3922 = vtanh.f32 %v2754_v51  ;;  %v1827_v51 = vadd.f32 %v5755_v10, %v5178_v57 }
 0xf07   :  { %v3917_v52 = vpop.eup %3916 }
 0xf08   :  { %v2764_v55 = vadd.f32 1.0, %v3917_v52 }
 0xf09   :  { %v3919_v12 = vpop.eup %3918 }
 0xf0a   :  { %3924 = vrcp.f32 %v2764_v55  ;;  %v2765_v60 = vadd.f32 1.0, %v3919_v12  ;;  %v3921_v58 = vpop.eup %3920 }
 0xf0b   :  { %v3923_v13 = vpop.eup %3922  ;;  %v2766_v43 = vadd.f32 1.0, %v3921_v58 }
 0xf0c   :  { %3926 = vrcp.f32 %v2765_v60 }
 0xf0d   :  { %3928 = vrcp.f32 %v2766_v43 }
 0xf17   :  { %v3925_v35 = vpop.eup %3924 }
 0xf18   :  { %v2775_v62 = vmul.f32 %v3925_v35, %v3923_v13 }
 0xf19   :  { %v3927_v39 = vpop.eup %3926 }
 0xf1a   :  { %v2774_v53 = vmul.f32 %v3927_v39, %v5392_v2  ;;  %v3929_v17 = vpop.eup %3928  ;;  %v5754_v2 = vld [vmem:[#allocation35_spill] sm:$0xff] }
 0xf1b   :  { %v1825_v14 = vadd.f32 %v5754_v2, %v5174_v28 }
 0xf1c   :  { %v5506_v45 = vadd.f32 %v2775_v62, %v2774_v53 }
 0xf1e   :  { %3930 = vtanh.f32 %v5506_v45 }
 0xf2b   :  { %v3931_v29 = vpop.eup %3930 }
 0xf2c   :  { %v5509_v27 = vmul.f32 %v3931_v29, %v3929_v17  ;;  %v5757_v17 = vld [vmem:[#allocation24_spill] sm:$0xff] }
 0xf2d   :  { %v1908_v29 = vadd.f32 %v5757_v17, %v5189_v42 }
 0xf2e   :  { %v2779_v18 = vpack.c.bf16 %v5509_v27, %v5509_v27 }
 0xf30   :  { %2813 = vmatmul.mubr.bf16.vlgmr.msra.gmra.mxu0 %v2779_v18  ;;  %2854 = vmatmul.mubr.bf16.vlgmr.msra.gmra.mxu1 %v2779_v18 }
 0xf31   :  { %2892 = vmatpush1.bf16.msra.mxu0 %v5399_v40  ;;  %2933 = vmatpush1.bf16.msra.mxu1 %v5402_v1 }
 0xf32   :  { %2893 = vmatprep.subr.bf16.mxu0 %v5405_v6  ;;  %2934 = vmatprep.subr.bf16.mxu1 %v5408_v23 }
 0xf33   :  { %2923 = vmatprep.mubr.bf16.mxu0 %v5688_v26  ;;  %2964 = vmatprep.mubr.bf16.mxu1 %v5688_v26 }
 0xf35   :  { %2894 = vmatpush1.bf16.msra.mxu0 %v5413_v16  ;;  %2935 = vmatpush1.bf16.msra.mxu1 %v5416_v25 }
 0xf36   :  { %2895 = vmatprep.subr.bf16.mxu0 %v5419_v8  ;;  %2936 = vmatprep.subr.bf16.mxu1 %v5422_v34 }
 0xf39   :  { %2896 = vmatpush1.bf16.msra.mxu0 %v5425_v19  ;;  %2937 = vmatpush1.bf16.msra.mxu1 %v5428_v15 }
 0xf3a   :  { %2897 = vmatprep.subr.bf16.mxu0 %v5431_v56  ;;  %2938 = vmatprep.subr.bf16.mxu1 %v5434_v22 }
 0xf3d   :  { %2898 = vmatpush1.bf16.msra.mxu0 %v5437_v32  ;;  %2939 = vmatpush1.bf16.msra.mxu1 %v5440_v61 }
 0xf3e   :  { %2899 = vmatprep.subr.bf16.mxu0 %v5443_v31  ;;  %2940 = vmatprep.subr.bf16.mxu1 %v5446_v59 }
 0xf41   :  { %2900 = vmatpush1.bf16.msra.mxu0 %v5449_v11  ;;  %2941 = vmatpush1.bf16.msra.mxu1 %v5452_v7 }
 0xf42   :  { %2901 = vmatprep.subr.bf16.mxu0 %v5455_v44  ;;  %2942 = vmatprep.subr.bf16.mxu1 %v5458_v0 }
 0xf45   :  { %2902 = vmatpush1.bf16.msra.mxu0 %v5461_v4  ;;  %2943 = vmatpush1.bf16.msra.mxu1 %v5464_v36 }
 0xf46   :  { %2903 = vmatprep.subr.bf16.mxu0 %v5467_v38  ;;  %2944 = vmatprep.subr.bf16.mxu1 %v5470_v37 }
 0xf49   :  { %2904 = vmatpush1.bf16.msra.mxu0 %v5473_v46  ;;  %2945 = vmatpush1.bf16.msra.mxu1 %v5476_v47 }
 0xf4a   :  { %2905 = vmatprep.subr.bf16.mxu0 %v5479_v21  ;;  %2946 = vmatprep.subr.bf16.mxu1 %v5482_v20 }
 0xf4d   :  { %2906 = vmatpush1.bf16.msra.mxu0 %v5485_v48  ;;  %2947 = vmatpush1.bf16.msra.mxu1 %v5488_v49 }
 0xf4e   :  { %3002 = vmatprep.subr.bf16.mxu0 %v5491_v30  ;;  %3043 = vmatprep.subr.bf16.mxu1 %v5494_v50  ;;  %v5756_v50 = vld [vmem:[#allocation36_spill] sm:$0xff] }
 0xf4f   :  { %v1906_v43 = vadd.f32 %v5756_v50, %v5184_v3 }
 0xff0   :  { %v2814_v9 = vpop.f32.mrf.mxu0  ;;  %v2855_v41 = vpop.f32.mrf.mxu1 }
 0xff1   :  { %v2862_v52 = vadd.f32 %v2814_v9, %v1825_v14  ;;  %v2864_v53 = vadd.f32 %v2855_v41, %v1906_v43 }
 0xff2   :  { %v2816_v55 = vpop.f32.mrf.mxu0  ;;  %v2857_v12 = vpop.f32.mrf.mxu1 }
 0xff3   :  { %v3447_v60 = vmul.f32 -1.442695, %v2862_v52  ;;  %v2863_v58 = vadd.f32 %v2816_v55, %v1827_v51  ;;  %v3449_v18 = vmul.f32 -1.442695, %v2864_v53  ;;  %v2865_v2 = vadd.f32 %v2857_v12, %v1908_v29 }
 0xff4   :  { %v2818_v13 = vpop.f32.mrf.mxu0  ;;  %v2859_v35 = vpop.f32.mrf.mxu1 }
 0xff5   :  { %3932 = vpow2.f32 %v3447_v60  ;;  %v3448_v62 = vmul.f32 -1.442695, %v2863_v58 }
 0xff6   :  { %v2819_v30 = vpop.f32.mrf.mxu0  ;;  %v2860_v39 = vpop.f32.mrf.mxu1 }
 0xff7   :  { %3934 = vpow2.f32 %v3448_v62 }
 0xff8   :  { %3936 = vpow2.f32 %v3449_v18 }
 0xff9   :  { %3938 = vtanh.f32 %v2865_v2 }
0x1002   :  { %v3933_v14 = vpop.eup %3932 }
0x1003   :  { %v2875_v9 = vadd.f32 1.0, %v3933_v14 }
0x1004   :  { %v3935_v10 = vpop.eup %3934 }
0x1005   :  { %3940 = vrcp.f32 %v2875_v9  ;;  %v2876_v51 = vadd.f32 1.0, %v3935_v10  ;;  %v3937_v52 = vpop.eup %3936  ;;  %v3684_v9 = vld [vmem:[#allocation8 + $0x38] sm:$0xff]  }
0x1006   :  { %v3939_v55 = vpop.eup %3938  ;;  %v2877_v35 = vadd.f32 1.0, %v3937_v52  ;;  %v3686_v52 = vld [vmem:[#allocation8 + $0x28] sm:$0xff]  }
0x1007   :  { %3942 = vrcp.f32 %v2876_v51  ;;  %v3685_v51 = vld [vmem:[#allocation8 + $0x30] sm:$0xff]  }
0x1008   :  { %3944 = vrcp.f32 %v2877_v35  ;;  %v3691_v35 = vld [vmem:[#allocation8] sm:$0xff]  }
0x1012   :  { %v3941_v60 = vpop.eup %3940 }
0x1013   :  { %v2886_v58 = vmul.f32 %v3941_v60, %v3939_v55  ;;  %v3687_v55 = vld [vmem:[#allocation8 + $0x20] sm:$0xff]   ;;  %v3688_v60 = vld [vmem:[#allocation8 + $0x18] sm:$0xff]  }
0x1014   :  { %v3943_v13 = vpop.eup %3942 }
0x1015   :  { %v2885_v41 = vmul.f32 %v3943_v13, %v5506_v45  ;;  %v3945_v12 = vpop.eup %3944  ;;  %v3690_v13 = vld [vmem:[#allocation8 + $0x8] sm:$0xff]  }
0x1017   :  { %v5556_v62 = vadd.f32 %v2886_v58, %v2885_v41  ;;  %v3689_v58 = vld [vmem:[#allocation8 + $0x10] sm:$0xff]   ;;  %v3112_v41 = vpack.c.bf16 %v5245_v63, %v5195_v54 }
0x1018   :  { %v5762_v63 = vld [vmem:[#allocation32_spill] sm:$0xff] }
0x1019   :  { %3946 = vtanh.f32 %v5556_v62 }
0x1026   :  { %v3947_v30 = vpop.eup %3946 }
0x1027   :  { %v5559_v39 = vmul.f32 %v3947_v30, %v3945_v12  ;;  %v3114_v12 = vpack.c.bf16 %v5509_v27, %v5395_v5 }
0x1029   :  { %v2890_v50 = vpack.c.bf16 %v5559_v39, %v5559_v39 }
0x102b   :  { %2924 = vmatmul.mubr.bf16.vlgmr.msra.gmra.mxu0 %v2890_v50  ;;  %2965 = vmatmul.mubr.bf16.vlgmr.msra.gmra.mxu1 %v2890_v50  ;;  %v5763_v50 = vld [vmem:[#allocation39_spill] sm:$0xff] }
0x102c   :  { %3003 = vmatpush1.bf16.msra.mxu0 %v5399_v40  ;;  %3044 = vmatpush1.bf16.msra.mxu1 %v5402_v1  ;;  %v5758_v40 = vld [vmem:[#allocation37_spill] sm:$0xff] }
0x102d   :  { %3004 = vmatprep.subr.bf16.mxu0 %v5405_v6  ;;  %3045 = vmatprep.subr.bf16.mxu1 %v5408_v23  ;;  %v1829_v1 = vadd.f32 %v5758_v40, %v5174_v28  ;;  %v1837_v40 = vadd.f32 %v5763_v50, %v5178_v57 }
0x102e   :  { %3034 = vmatprep.mubr.bf16.mxu0 %v5688_v26  ;;  %3075 = vmatprep.mubr.bf16.mxu1 %v5688_v26  ;;  %v4161_v26 = vmov 0.0  }
0x1030   :  { %3005 = vmatpush1.bf16.msra.mxu0 %v5413_v16  ;;  %3046 = vmatpush1.bf16.msra.mxu1 %v5416_v25  ;;  %v5759_v16 = vld [vmem:[#allocation28_spill] sm:$0xff] }
0x1031   :  { %3006 = vmatprep.subr.bf16.mxu0 %v5419_v8  ;;  %3047 = vmatprep.subr.bf16.mxu1 %v5422_v34  ;;  %v1831_v25 = vadd.f32 %v5759_v16, %v5178_v57 }
0x1034   :  { %3007 = vmatpush1.bf16.msra.mxu0 %v5425_v19  ;;  %3048 = vmatpush1.bf16.msra.mxu1 %v5428_v15 }
0x1035   :  { %3008 = vmatprep.subr.bf16.mxu0 %v5431_v56  ;;  %3049 = vmatprep.subr.bf16.mxu1 %v5434_v22 }
0x1038   :  { %3009 = vmatpush1.bf16.msra.mxu0 %v5437_v32  ;;  %3050 = vmatpush1.bf16.msra.mxu1 %v5440_v61 }
0x1039   :  { %3010 = vmatprep.subr.bf16.mxu0 %v5443_v31  ;;  %3051 = vmatprep.subr.bf16.mxu1 %v5446_v59 }
0x103c   :  { %3011 = vmatpush1.bf16.msra.mxu0 %v5449_v11  ;;  %3052 = vmatpush1.bf16.msra.mxu1 %v5452_v7  ;;  %v5760_v11 = vld [vmem:[#allocation27_spill] sm:$0xff] }
0x103d   :  { %3012 = vmatprep.subr.bf16.mxu0 %v5455_v44  ;;  %3053 = vmatprep.subr.bf16.mxu1 %v5458_v0  ;;  %v1910_v7 = vadd.f32 %v5760_v11, %v5184_v3  ;;  %v5761_v0 = vld [vmem:[#allocation30_spill] sm:$0xff] }
0x103e   :  { %v3456_v11 = vld [vmem:[%s5655_s8] ss:$0 sm:$0xff]  ;;  %s4163_s8 = smov [#allocation10]  }
0x103f   :  { %s3274_s19 = sshll.u32 %s4163_s8, 4  ;;  %s3275_s19 = int_to_ptr.vmem [resolvable:$true] %s3274_s19 }
0x1040   :  { %3013 = vmatpush1.bf16.msra.mxu0 %v5461_v4  ;;  %3054 = vmatpush1.bf16.msra.mxu1 %v5464_v36  ;;  %v1912_v4 = vadd.f32 %v5761_v0, %v5189_v42  ;;  %s4124_s20 = scalar_lea.vmem %s3275_s19, 1152  ;;  %p4129_p7 = scmp.lt.s32.totalorder %s3275_s19, %s3275_s19 }
0x1041   :  { %3014 = vmatprep.subr.bf16.mxu0 %v5467_v38  ;;  %3055 = vmatprep.subr.bf16.mxu1 %v5470_v37  ;;  %p4125_p6 = scmp.ne.s32.totalorder %s3275_s19, %s4124_s20  ;;  %p4130_p8 = scmp.lt.s32.totalorder %s4124_s20, %s4124_s20 }
0x1043   :  { %p4131_p9 = por %p4130_p8, %p4129_p7 }
0x1044   :  { %3015 = vmatpush1.bf16.msra.mxu0 %v5473_v46  ;;  %3056 = vmatpush1.bf16.msra.mxu1 %v5476_v47 }
0x1045   :  { %3016 = vmatprep.subr.bf16.mxu0 %v5479_v21  ;;  %3057 = vmatprep.subr.bf16.mxu1 %v5482_v20  ;;  %p4132_p10 = pnand %p4131_p9, %p4125_p6 }
0x1048   :  { %3017 = vmatpush1.bf16.msra.mxu0 %v5485_v48  ;;  %3058 = vmatpush1.bf16.msra.mxu1 %v5488_v49 }
0x1049   :  { %3478 = vmatprep.subr.bf16.mxu0 %v4161_v26 }
0x10eb   :  { %v2925_v6 = vpop.f32.mrf.mxu0  ;;  %v2966_v23 = vpop.f32.mrf.mxu1 }
0x10ec   :  { %v2973_v8 = vadd.f32 %v2925_v6, %v1829_v1  ;;  %v2975_v44 = vadd.f32 %v2966_v23, %v1910_v7 }
0x10ed   :  { %v2927_v34 = vpop.f32.mrf.mxu0  ;;  %v2968_v19 = vpop.f32.mrf.mxu1 }
0x10ee   :  { %v3450_v15 = vmul.f32 -1.442695, %v2973_v8  ;;  %v2974_v56 = vadd.f32 %v2927_v34, %v1831_v25  ;;  %v3452_v36 = vmul.f32 -1.442695, %v2975_v44  ;;  %v2976_v37 = vadd.f32 %v2968_v19, %v1912_v4 }
0x10ef   :  { %v2929_v22 = vpop.f32.mrf.mxu0  ;;  %v2970_v32 = vpop.f32.mrf.mxu1 }
0x10f0   :  { %3948 = vpow2.f32 %v3450_v15  ;;  %v3451_v61 = vmul.f32 -1.442695, %v2974_v56  ;;  %v5765_v15 = vld [vmem:[#allocation40_spill] sm:$0xff] }
0x10f1   :  { %v2930_v31 = vpop.f32.mrf.mxu0  ;;  %v2971_v59 = vpop.f32.mrf.mxu1  ;;  %v1918_v56 = vadd.f32 %v5765_v15, %v5189_v42 }
0x10f2   :  { %3950 = vpow2.f32 %v3451_v61 }
0x10f3   :  { %3952 = vpow2.f32 %v3452_v36 }
0x10fd   :  { %v3949_v38 = vpop.eup %3948 }
0x10fe   :  { %v2986_v46 = vadd.f32 1.0, %v3949_v38 }
0x10ff   :  { %v3951_v47 = vpop.eup %3950 }
0x1100   :  { %3954 = vrcp.f32 %v2986_v46  ;;  %v2987_v21 = vadd.f32 1.0, %v3951_v47  ;;  %v3953_v20 = vpop.eup %3952 }
0x1101   :  { %3956 = vtanh.f32 %v2976_v37  ;;  %v2988_v43 = vadd.f32 1.0, %v3953_v20 }
0x1102   :  { %3958 = vrcp.f32 %v2987_v21 }
0x1103   :  { %3960 = vrcp.f32 %v2988_v43 }
0x110d   :  { %v3955_v48 = vpop.eup %3954 }
0x110e   :  { %v3957_v49 = vpop.eup %3956 }
0x110f   :  { %v3959_v45 = vpop.eup %3958  ;;  %v2997_v17 = vmul.f32 %v3957_v49, %v3955_v48 }
0x1110   :  { %v2996_v53 = vmul.f32 %v3959_v45, %v5556_v62  ;;  %v3961_v18 = vpop.eup %3960  ;;  %v3113_v62 = vpack.c.bf16 %v5345_v24, %v5295_v33  ;;  %v1835_v33 = vadd.f32 %v5762_v63, %v5174_v28 }
0x1112   :  { %v5605_v29 = vadd.f32 %v2997_v17, %v2996_v53 }
0x1114   :  { %3962 = vtanh.f32 %v5605_v29 }
0x1121   :  { %v3963_v2 = vpop.eup %3962 }
0x1122   :  { %v3000_v14 = vmul.f32 %v3963_v2, %v3961_v18 }
0x1124   :  { %v3001_v10 = vpack.c.bf16 %v3000_v14, %v3000_v14  ;;  %v3115_v54 = vpack.c.bf16 %v3000_v14, %v5559_v39 }
0x1126   :  { %3035 = vmatmul.mubr.bf16.vlgmr.msra.gmra.mxu0 %v3001_v10  ;;  %3076 = vmatmul.mubr.bf16.vlgmr.msra.gmra.mxu1 %v3001_v10 }
0x1127   :  { %3479 = vmatpush3.bf16.msra.mxu0 %v3684_v9  ;;  %3494 = vmatprep.mubr.msk.bf16.mxu0 %vm4162_vm1, %v4161_v26 }
0x1128   :  { %3480 = vmatprep.subr.bf16.mxu0 %v4161_v26 }
0x112b   :  { %3481 = vmatpush3.bf16.msra.mxu0 %v3685_v51 }
0x112c   :  { %3482 = vmatprep.subr.bf16.mxu0 %v4161_v26 }
0x112f   :  { %3483 = vmatpush3.bf16.msra.mxu0 %v3686_v52 }
0x1130   :  { %3484 = vmatprep.subr.bf16.mxu0 %v4161_v26 }
0x1133   :  { %3485 = vmatpush3.bf16.msra.mxu0 %v3687_v55 }
0x1134   :  { %3486 = vmatprep.subr.bf16.mxu0 %v4161_v26 }
0x1137   :  { %3487 = vmatpush3.bf16.msra.mxu0 %v3688_v60 }
0x1138   :  { %3488 = vmatprep.subr.bf16.mxu0 %v4161_v26 }
0x113b   :  { %3489 = vmatpush3.bf16.msra.mxu0 %v3689_v58 }
0x113c   :  { %3490 = vmatprep.subr.bf16.mxu0 %v4161_v26 }
0x113f   :  { %3491 = vmatpush3.bf16.msra.mxu0 %v3690_v13 }
0x1140   :  { %3492 = vmatprep.subr.bf16.mxu0 %v4161_v26 }
0x1143   :  { %3493 = vmatpush3.bf16.msra.mxu0 %v3691_v35 }
0x1146   :  { %3495 = vmatmul.mubr.bf16.vlgmr.msra.gmra.mxu0 %v3112_v41 }
0x1147   :  { %3498 = vmatprep.mubr.msk.bf16.mxu0 %vm4162_vm1, %v4161_v26 }
0x114e   :  { %3499 = vmatmul.mubr.bf16.gmra.mxu0 %v3113_v62 }
0x114f   :  { %3502 = vmatprep.mubr.msk.bf16.mxu0 %vm4162_vm1, %v4161_v26 }
0x1156   :  { %3503 = vmatmul.mubr.bf16.gmra.mxu0 %v3114_v12 }
0x1157   :  { %3506 = vmatprep.mubr.msk.bf16.mxu0 %vm4162_vm1, %v4161_v26 }
0x115e   :  { %3507 = vmatmul.mubr.bf16.gmra.mxu0 %v3115_v54 }
0x115f   :  { %3510 = vmatprep.mubr.msk.bf16.mxu0 %vm4162_vm1, %v4161_v26  ;;  %v5764_v26 = vld [vmem:[#allocation38_spill] sm:$0xff] }
0x1160   :  { %v1916_v28 = vadd.f32 %v5764_v26, %v5184_v3 }
0x11e6   :  { %v3036_v24 = vpop.f32.mrf.mxu0  ;;  %v3077_v30 = vpop.f32.mrf.mxu1 }
0x11e7   :  { %v3084_v1 = vadd.f32 %v3036_v24, %v1835_v33  ;;  %v3086_v19 = vadd.f32 %v3077_v30, %v1916_v28 }
0x11e8   :  { %v3038_v5 = vpop.f32.mrf.mxu0  ;;  %v3079_v27 = vpop.f32.mrf.mxu1 }
0x11e9   :  { %v3453_v6 = vmul.f32 -1.442695, %v3084_v1  ;;  %v3085_v23 = vadd.f32 %v3038_v5, %v1837_v40  ;;  %v3455_v57 = vmul.f32 -1.442695, %v3086_v19  ;;  %v3087_v22 = vadd.f32 %v3079_v27, %v1918_v56 }
0x11ea   :  { %v3040_v16 = vpop.f32.mrf.mxu0  ;;  %v3081_v25 = vpop.f32.mrf.mxu1 }
0x11eb   :  { %3964 = vpow2.f32 %v3453_v6  ;;  %v3454_v39 = vmul.f32 -1.442695, %v3085_v23 }
0x11ec   :  { %v3041_v8 = vpop.f32.mrf.mxu0  ;;  %v3082_v34 = vpop.f32.mrf.mxu1 }
0x11ed   :  { %3966 = vpow2.f32 %v3454_v39 }
0x11ee   :  { %3968 = vpow2.f32 %v3455_v57 }
0x11ef   :  { %3970 = vtanh.f32 %v3087_v22 }
0x11f8   :  { %v3965_v32 = vpop.eup %3964 }
0x11f9   :  { %v3097_v61 = vadd.f32 1.0, %v3965_v32 }
0x11fa   :  { %v3967_v31 = vpop.eup %3966 }
0x11fb   :  { %3972 = vrcp.f32 %v3097_v61  ;;  %v3098_v59 = vadd.f32 1.0, %v3967_v31  ;;  %v3969_v7 = vpop.eup %3968 }
0x11fc   :  { %v3971_v44 = vpop.eup %3970  ;;  %v3099_v37 = vadd.f32 1.0, %v3969_v7 }
0x11fd   :  { %3974 = vrcp.f32 %v3098_v59 }
0x11fe   :  { %3976 = vrcp.f32 %v3099_v37 }
0x1206   :  { %v3222_v3 = vpop.f32.mrf.mxu0 }
0x1207   :  { %v3223_v0 = vadd.f32 %v3456_v11, %v3222_v3 }
0x1208   :  { %v3973_v4 = vpop.eup %3972  ;;  %v3496_v42 = vpop.f32.mrf.mxu0 }
0x1209   :  { %v3108_v36 = vmul.f32 %v3973_v4, %v3971_v44  ;;  %3260 = vst [vmem:[#allocation10] sm:$0xff] %v3223_v0 }
0x120a   :  { %v3975_v38 = vpop.eup %3974  ;;  %v3225_v46 = vpop.f32.mrf.mxu0 }
0x120b   :  { %v3107_v47 = vmul.f32 %v3975_v38, %v5605_v29  ;;  %v3226_v21 = vadd.f32 %v3456_v11, %v3225_v46  ;;  %v3977_v29 = vpop.eup %3976 }
0x120c   :  { %v3497_v20 = vpop.f32.mrf.mxu0 }
0x120d   :  { %v3109_v48 = vadd.f32 %v3108_v36, %v3107_v47  ;;  %3261 = vst [vmem:[#allocation10 + $0x8] sm:$0xff] %v3226_v21 }
0x120e   :  { %v3230_v49 = vpop.f32.mrf.mxu0 }
0x120f   :  { %3978 = vtanh.f32 %v3109_v48  ;;  %v3231_v45 = vadd.f32 %v3456_v11, %v3230_v49 }
0x1210   :  { %v3500_v43 = vpop.f32.mrf.mxu0 }
0x1211   :  { %3262 = vst [vmem:[#allocation10 + $0x10] sm:$0xff] %v3231_v45 }
0x1212   :  { %v3233_v53 = vpop.f32.mrf.mxu0 }
0x1213   :  { %v3234_v17 = vadd.f32 %v3456_v11, %v3233_v53 }
0x1214   :  { %v3501_v18 = vpop.f32.mrf.mxu0 }
0x1215   :  { %3263 = vst [vmem:[#allocation10 + $0x18] sm:$0xff] %v3234_v17 }
0x1216   :  { %v3238_v2 = vpop.f32.mrf.mxu0 }
0x1217   :  { %v3239_v14 = vadd.f32 %v3456_v11, %v3238_v2 }
0x1218   :  { %v3504_v9 = vpop.f32.mrf.mxu0 }
0x1219   :  { %3264 = vst [vmem:[#allocation10 + $0x20] sm:$0xff] %v3239_v14 }
0x121a   :  { %v3241_v10 = vpop.f32.mrf.mxu0 }
0x121b   :  { %v3242_v51 = vadd.f32 %v3456_v11, %v3241_v10 }
0x121c   :  { %v3979_v52 = vpop.eup %3978  ;;  %v3505_v55 = vpop.f32.mrf.mxu0 }
0x121d   :  { %3265 = vst [vmem:[#allocation10 + $0x28] sm:$0xff] %v3242_v51  ;;  %v3111_v60 = vmul.f32 %v3979_v52, %v3977_v29 }
0x121e   :  { %v3246_v58 = vpop.f32.mrf.mxu0 }
0x121f   :  { %v3247_v13 = vadd.f32 %v3456_v11, %v3246_v58  ;;  %v3116_v35 = vpack.c.bf16 %v3111_v60, %v3111_v60 }
0x1220   :  { %v3508_v41 = vpop.f32.mrf.mxu0 }
0x1221   :  { %3266 = vst [vmem:[#allocation10 + $0x30] sm:$0xff] %v3247_v13  ;;  %3511 = vmatmul.mubr.bf16.gmra.mxu0 %v3116_v35 }
0x1222   :  { %v3249_v62 = vpop.f32.mrf.mxu0 }
0x1223   :  { %v3250_v12 = vadd.f32 %v3456_v11, %v3249_v62 }
0x1224   :  { %v3509_v54 = vpop.f32.mrf.mxu0 }
0x1225   :  { %3267 = vst [vmem:[#allocation10 + $0x38] sm:$0xff] %v3250_v12 }
0x12e1   :  { %v3254_v63 = vpop.f32.mrf.mxu0 }
0x12e2   :  { %v3255_v33 = vadd.f32 %v3456_v11, %v3254_v63 }
0x12e3   :  { %v3512_v24 = vpop.f32.mrf.mxu0 }
0x12e4   :  { %3268 = vst [vmem:[#allocation10 + $0x40] sm:$0xff] %v3255_v33 }
0x12e5   :  { %v3257_v30 = vpop.f32.mrf.mxu0 }
0x12e6   :  { %4135 = shalt.err (!%p4132_p10)
}
0x12e7   :  { %s4164_s21 = smov 128   ;;  %s4165_s22 = smov 8   ;;  %v3513_v50 = vpop.f32.mrf.mxu0 }
0x12e8   :  { %3280 = dma.vmem_to_hbm [thread:$0]  %s3275_s19, 1152, %s5656_s9, [#allocation4], %s4164_s21, %s4164_s21, %s4165_s22  }
0x12e9   :  { %4150 = dma.done.wait [#allocation4], 1152  }
0x12ea   :  { %4151 = vsyncadd [#allocation4], 4294966144 }
0x12eb   :  { %3284 = vsyncpa [#allocation3], 1 }
0x12ec   :  { %3285 = vsyncpa [#allocation6], 1 }
0x12ed   :  { %3286 = vsyncpa [#allocation9], 1 }
0x12ee   :  { %3287 = vsyncpa [#allocation4], 1 }

</bundles_post_ra>
